<compile_context>
chip_gen: v7x
topology: tpu7x:2x2x1
jax: 0.10.0
libtpu: 0.0.40
codegen_flags: <defaults>
</compile_context>

<pallas_src>
import jax
import jax.numpy as jnp
import numpy as np
from jax import lax
from jax.experimental import pallas as pl
from jax.experimental.pallas import tpu as pltpu

# Conv configs from the module __init__: (in_channels, out_channels, kernel_size)
_CONV_CFGS = [
    (1, 2, 2),  # conv_1
    (2, 3, 2),  # conv_2
    (1, 2, 3),  # conv_3
    (2, 3, 1),  # conv_4
    (3, 2, 1),  # conv_5
    (2, 3, 1),  # conv_6
]

# Static offsets of each conv's (weights, bias) inside the single flat SMEM buffer.
_OFFSETS = []
_off = 0
for _cin, _cout, _k in _CONV_CFGS:
    _w_off = _off
    _off += _cout * _cin * _k * _k
    _b_off = _off
    _off += _cout
    _OFFSETS.append((_w_off, _b_off))
_WB_SIZE = _off  # 83 f32 words total

_SUBLANES = 8
_LANES = 128
_IMG_PER_SLAB = _SUBLANES * _LANES   # 1024 images per (8,128) slab
_MAX_SLABS_PER_BLOCK = 16            # 16K images / grid step; ~1 MiB input tile (v7x-safe)


def _tree_sum(vals):
    """Pairwise-tree reduction of a list of arrays (better ILP than a serial chain)."""
    while len(vals) > 1:
        nxt = [a + b for a, b in zip(vals[::2], vals[1::2])]
        if len(vals) % 2:
            nxt.append(vals[-1])
        vals = nxt
    return vals[0]


def _make_kernel(slabs_per_block):
    def kernel(x_ref, wb_ref, out_ref):
        # x_ref  : (slabs_per_block, 16, 8, 128) f32  -- 16 = 4x4 spatial (h*4+w)
        # wb_ref : (_WB_SIZE,) f32 in SMEM            -- all conv weights+biases, flat
        # out_ref: (slabs_per_block, 6, 8, 128) f32   -- 6 = path*3 + channel

        # Hoist all SMEM scalar reads out of the per-slab loop (read once per step).
        wb = [wb_ref[i] for i in range(_WB_SIZE)]

        def conv(feats, idx):
            """Valid-padding stride-1 conv on nested lists of full-(8,128) planes.

            feats[ci][h][w] is an (8,128) plane; returns out[co][h][w] planes."""
            cin, cout, k = _CONV_CFGS[idx]
            w_off, b_off = _OFFSETS[idx]
            H, W = len(feats[0]), len(feats[0][0])
            Ho, Wo = H - k + 1, W - k + 1
            out = []
            for co in range(cout):
                rows = []
                for oh in range(Ho):
                    row = []
                    for ow in range(Wo):
                        prods = []
                        for ci in range(cin):
                            for i in range(k):
                                for j in range(k):
                                    widx = w_off + ((co * cin + ci) * k + i) * k + j
                                    prods.append(feats[ci][oh + i][ow + j] * wb[widx])
                        # Tree-sum tap products; bias added once at the end.
                        row.append(_tree_sum(prods) + wb[b_off + co])
                    rows.append(row)
                out.append(rows)
            return out

        def relu(feats):
            return [[[jnp.maximum(p, 0.0) for p in row] for row in ch] for ch in feats]

        def maxpool2x2(feats):  # per channel: 2x2 spatial -> 1x1
            return [[[jnp.maximum(jnp.maximum(ch[0][0], ch[0][1]),
                                  jnp.maximum(ch[1][0], ch[1][1]))]] for ch in feats]

        def process_slab(s):
            x = x_ref[s]                                               # (16, 8, 128)
            feats = [[[x[h * 4 + w] for w in range(4)] for h in range(4)]]  # 1 in-channel

            x1 = conv(feats, 0)                    # conv_1 -> 2ch, 3x3
            x1 = conv(relu(x1), 1)                 # conv_2 -> 3ch, 2x2
            x2 = conv(feats, 2)                    # conv_3 -> 2ch, 2x2
            x2 = conv(relu(x2), 3)                 # conv_4 -> 3ch, 2x2

            # torch.concat([x_1, x_2]) stacks the two paths on the batch axis, so
            # conv_5 / maxpool / conv_6 apply to each path independently.
            for p, feats_p in enumerate((x1, x2)):
                y = conv(relu(feats_p), 4)         # conv_5 -> 2ch, 2x2
                y = maxpool2x2(y)                  # maxpool -> 2ch, 1x1
                y = conv(y, 5)                     # conv_6 -> 3ch, 1x1
                for c in range(3):
                    out_ref[s, p * 3 + c] = y[c][0][0]   # full-vreg (8,128) store

        if slabs_per_block == 1:
            process_slab(0)
        else:
            # In-kernel loop bounds vreg pressure (~46 live vregs per slab) while
            # amortizing the ~600-cycle grid-step overhead over many slabs.
            @pl.loop(0, slabs_per_block)
            def _(s):
                process_slab(s)

    return kernel


def _pack_params(params):
    """Concatenate all conv weights (OIHW, row-major) and biases into one flat f32 buffer."""
    flat = []
    for w, b in params:
        flat.append(jnp.asarray(w, jnp.float32).reshape(-1))
        flat.append(jnp.asarray(b, jnp.float32).reshape(-1))
    wb = jnp.concatenate(flat)
    assert wb.shape == (_WB_SIZE,)
    return wb


def _block_config(n_images):
    total_slabs = -(-n_images // _IMG_PER_SLAB)
    if total_slabs <= 1:
        spb = 1
    else:
        # Keep >= 2 grid blocks so v7x's 2 TensorCores both get work, while still
        # packing up to 16 slabs (16K images) per grid step.
        spb = min(_MAX_SLABS_PER_BLOCK, (total_slabs + 1) // 2)
    num_blocks = -(-total_slabs // spb)
    spb = -(-total_slabs // num_blocks)   # re-balance -> padding < num_blocks slabs
    return spb, num_blocks


def pack_inputs(x, padded_slabs):
    """(N,1,4,4) NCHW -> sublane/lane-packed (padded_slabs, 16, 8, 128) layout.

    Image n maps to (slab, sublane, lane) = (n // 1024, (n // 128) % 8, n % 128)."""
    N = x.shape[0]
    n_pad = padded_slabs * _IMG_PER_SLAB
    xf = jnp.asarray(x, jnp.float32).reshape(N, 16)
    if n_pad != N:
        xf = jnp.pad(xf, ((0, n_pad - N), (0, 0)))
    return xf.reshape(padded_slabs, _SUBLANES, _LANES, 16).transpose(0, 3, 1, 2)


def multiple_conv_forward(x, params):
    """x: (N, 1, 4, 4) f32 NCHW; params: list of 6 (weight, bias) pairs (OIHW, [O]).

    Returns (2N, 3, 1, 1), matching the PyTorch module forward on a batch of N images.
    """
    N = x.shape[0]
    assert x.shape[1:] == (1, 4, 4)

    spb, num_blocks = _block_config(N)
    padded_slabs = spb * num_blocks
    n_pad = padded_slabs * _IMG_PER_SLAB

    # TODO(synk): in a real pipeline, produce x already in this packed layout upstream
    # (or pack once and reuse across calls); the transpose below re-reads the input.
    x_packed = pack_inputs(x, padded_slabs)
    wb_flat = _pack_params(params)

    out = pl.pallas_call(
        _make_kernel(spb),
        out_shape=jax.ShapeDtypeStruct((padded_slabs, 6, _SUBLANES, _LANES), jnp.float32),
        grid_spec=pltpu.PrefetchScalarGridSpec(
            num_scalar_prefetch=0,
            grid=(num_blocks,),
            in_specs=[
                pl.BlockSpec((spb, 16, _SUBLANES, _LANES), lambda g: (g, 0, 0, 0)),
                pl.BlockSpec(memory_space=pltpu.MemorySpace.SMEM),  # flat weights+biases
            ],
            out_specs=pl.BlockSpec((spb, 6, _SUBLANES, _LANES), lambda g: (g, 0, 0, 0)),
        ),
        compiler_params=pltpu.CompilerParams(
            dimension_semantics=("parallel",),  # shards batch blocks across v7x's 2 TCs
        ),
        cost_estimate=pl.CostEstimate(
            flops=1300 * n_pad,                      # ~650 mul + ~650 add per image
            transcendentals=0,
            bytes_accessed=88 * n_pad + 4 * _WB_SIZE),
    )(x_packed, wb_flat)

    # (slabs, 6, 8, 128) -> (2, n_pad, 3) -> (2N, 3, 1, 1); path-major ordering
    # matches torch.concat([x_1, x_2]).
    out = out.reshape(padded_slabs, 2, 3, _SUBLANES, _LANES)
    out = out.transpose(1, 0, 3, 4, 2).reshape(2, n_pad, 3)[:, :N]
    return out.reshape(2 * N, 3, 1, 1)


def _ref_forward(x, params):
    """Pure-JAX reference (lax.conv / reduce_window) mirroring the PyTorch forward."""
    def conv(v, w, b):
        y = lax.conv_general_dilated(
            v, w, window_strides=(1, 1), padding="VALID",
            dimension_numbers=("NCHW", "OIHW", "NCHW"),
            precision=lax.Precision.HIGHEST)
        return y + b.reshape(1, -1, 1, 1)

    (w1, b1), (w2, b2), (w3, b3), (w4, b4), (w5, b5), (w6, b6) = params
    x1 = conv(x, w1, b1)
    x1 = conv(jax.nn.relu(x1), w2, b2)
    x2 = conv(x, w3, b3)
    x2 = conv(jax.nn.relu(x2), w4, b4)
    x12 = jnp.concatenate([x1, x2], axis=0)
    y = conv(jax.nn.relu(x12), w5, b5)
    y = lax.reduce_window(y, -jnp.inf, lax.max,
                          window_dimensions=(1, 1, 2, 2),
                          window_strides=(1, 1, 2, 2), padding="VALID")
    return conv(y, w6, b6)


def _make_params(key):
    # Deterministic "randn"-style init matching the module's parameter shapes.
    params = []
    for cin, cout, k in _CONV_CFGS:
        key, kw, kb = jax.random.split(key, 3)
        w = jax.random.normal(kw, (cout, cin, k, k), dtype=jnp.float32)
        b = jax.random.normal(kb, (cout,), dtype=jnp.float32)
        params.append((w, b))
    return params


if __name__ == "__main__":
    key = jax.random.PRNGKey(0)
    key, kx = jax.random.split(key)

    # Batch of N images at the module's INPUT_SIZE spatial shape (1, 4, 4):
    # 4 slabs of 1024 images -> 2 grid blocks of 2 slabs each (exercises the
    # in-kernel slab loop and the multi-block/megacore path).
    N = 4096
    x = jax.random.normal(kx, (N, 1, 4, 4), dtype=jnp.float32)
    params = _make_params(key)

    fwd = jax.jit(multiple_conv_forward)
    out = jax.block_until_ready(fwd(x, params))
    ref = jax.block_until_ready(_ref_forward(x, params))

    assert out.shape == (2 * N, 3, 1, 1), out.shape
    np.testing.assert_allclose(np.asarray(out), np.asarray(ref), rtol=1e-5, atol=1e-5)

    print("KERNEL_OK")
</pallas_src>

<mosaic_0001>
module attributes {stable_mosaic.version = 11 : i64} {
  func.func @kernel(%arg0: i32, %arg1: memref<2x16x8x128xf32, #tpu.memory_space<vmem>>, %arg2: memref<83xf32, #tpu.memory_space<smem>>, %arg3: memref<2x6x8x128xf32, #tpu.memory_space<vmem>>) attributes {dimension_semantics = [#tpu.dimension_semantics<parallel>], iteration_bounds = array<i64: 2>, scalar_prefetch = 0 : i64, scratch_operands = 0 : i64, tpu.core_type = #tpu.core_type<tc>, window_params = [{transform_indices = @transform_0, window_bounds = array<i64: 2, 16, 8, 128>}, {transform_indices = @transform_1, window_bounds = array<i64: 83>}, {transform_indices = @transform_2, window_bounds = array<i64: 2, 6, 8, 128>}]} {
    %c0 = arith.constant 0 : index
    %0 = memref.load %arg2[%c0] : memref<83xf32, #tpu.memory_space<smem>>
    %c1 = arith.constant 1 : index
    %1 = memref.load %arg2[%c1] : memref<83xf32, #tpu.memory_space<smem>>
    %c2 = arith.constant 2 : index
    %2 = memref.load %arg2[%c2] : memref<83xf32, #tpu.memory_space<smem>>
    %c3 = arith.constant 3 : index
    %3 = memref.load %arg2[%c3] : memref<83xf32, #tpu.memory_space<smem>>
    %c4 = arith.constant 4 : index
    %4 = memref.load %arg2[%c4] : memref<83xf32, #tpu.memory_space<smem>>
    %c5 = arith.constant 5 : index
    %5 = memref.load %arg2[%c5] : memref<83xf32, #tpu.memory_space<smem>>
    %c6 = arith.constant 6 : index
    %6 = memref.load %arg2[%c6] : memref<83xf32, #tpu.memory_space<smem>>
    %c7 = arith.constant 7 : index
    %7 = memref.load %arg2[%c7] : memref<83xf32, #tpu.memory_space<smem>>
    %c8 = arith.constant 8 : index
    %8 = memref.load %arg2[%c8] : memref<83xf32, #tpu.memory_space<smem>>
    %c9 = arith.constant 9 : index
    %9 = memref.load %arg2[%c9] : memref<83xf32, #tpu.memory_space<smem>>
    %c10 = arith.constant 10 : index
    %10 = memref.load %arg2[%c10] : memref<83xf32, #tpu.memory_space<smem>>
    %c11 = arith.constant 11 : index
    %11 = memref.load %arg2[%c11] : memref<83xf32, #tpu.memory_space<smem>>
    %c12 = arith.constant 12 : index
    %12 = memref.load %arg2[%c12] : memref<83xf32, #tpu.memory_space<smem>>
    %c13 = arith.constant 13 : index
    %13 = memref.load %arg2[%c13] : memref<83xf32, #tpu.memory_space<smem>>
    %c14 = arith.constant 14 : index
    %14 = memref.load %arg2[%c14] : memref<83xf32, #tpu.memory_space<smem>>
    %c15 = arith.constant 15 : index
    %15 = memref.load %arg2[%c15] : memref<83xf32, #tpu.memory_space<smem>>
    %c16 = arith.constant 16 : index
    %16 = memref.load %arg2[%c16] : memref<83xf32, #tpu.memory_space<smem>>
    %c17 = arith.constant 17 : index
    %17 = memref.load %arg2[%c17] : memref<83xf32, #tpu.memory_space<smem>>
    %c18 = arith.constant 18 : index
    %18 = memref.load %arg2[%c18] : memref<83xf32, #tpu.memory_space<smem>>
    %c19 = arith.constant 19 : index
    %19 = memref.load %arg2[%c19] : memref<83xf32, #tpu.memory_space<smem>>
    %c20 = arith.constant 20 : index
    %20 = memref.load %arg2[%c20] : memref<83xf32, #tpu.memory_space<smem>>
    %c21 = arith.constant 21 : index
    %21 = memref.load %arg2[%c21] : memref<83xf32, #tpu.memory_space<smem>>
    %c22 = arith.constant 22 : index
    %22 = memref.load %arg2[%c22] : memref<83xf32, #tpu.memory_space<smem>>
    %c23 = arith.constant 23 : index
    %23 = memref.load %arg2[%c23] : memref<83xf32, #tpu.memory_space<smem>>
    %c24 = arith.constant 24 : index
    %24 = memref.load %arg2[%c24] : memref<83xf32, #tpu.memory_space<smem>>
    %c25 = arith.constant 25 : index
    %25 = memref.load %arg2[%c25] : memref<83xf32, #tpu.memory_space<smem>>
    %c26 = arith.constant 26 : index
    %26 = memref.load %arg2[%c26] : memref<83xf32, #tpu.memory_space<smem>>
    %c27 = arith.constant 27 : index
    %27 = memref.load %arg2[%c27] : memref<83xf32, #tpu.memory_space<smem>>
    %c28 = arith.constant 28 : index
    %28 = memref.load %arg2[%c28] : memref<83xf32, #tpu.memory_space<smem>>
    %c29 = arith.constant 29 : index
    %29 = memref.load %arg2[%c29] : memref<83xf32, #tpu.memory_space<smem>>
    %c30 = arith.constant 30 : index
    %30 = memref.load %arg2[%c30] : memref<83xf32, #tpu.memory_space<smem>>
    %c31 = arith.constant 31 : index
    %31 = memref.load %arg2[%c31] : memref<83xf32, #tpu.memory_space<smem>>
    %c32 = arith.constant 32 : index
    %32 = memref.load %arg2[%c32] : memref<83xf32, #tpu.memory_space<smem>>
    %c33 = arith.constant 33 : index
    %33 = memref.load %arg2[%c33] : memref<83xf32, #tpu.memory_space<smem>>
    %c34 = arith.constant 34 : index
    %34 = memref.load %arg2[%c34] : memref<83xf32, #tpu.memory_space<smem>>
    %c35 = arith.constant 35 : index
    %35 = memref.load %arg2[%c35] : memref<83xf32, #tpu.memory_space<smem>>
    %c36 = arith.constant 36 : index
    %36 = memref.load %arg2[%c36] : memref<83xf32, #tpu.memory_space<smem>>
    %c37 = arith.constant 37 : index
    %37 = memref.load %arg2[%c37] : memref<83xf32, #tpu.memory_space<smem>>
    %c38 = arith.constant 38 : index
    %38 = memref.load %arg2[%c38] : memref<83xf32, #tpu.memory_space<smem>>
    %c39 = arith.constant 39 : index
    %39 = memref.load %arg2[%c39] : memref<83xf32, #tpu.memory_space<smem>>
    %c40 = arith.constant 40 : index
    %40 = memref.load %arg2[%c40] : memref<83xf32, #tpu.memory_space<smem>>
    %c41 = arith.constant 41 : index
    %41 = memref.load %arg2[%c41] : memref<83xf32, #tpu.memory_space<smem>>
    %c42 = arith.constant 42 : index
    %42 = memref.load %arg2[%c42] : memref<83xf32, #tpu.memory_space<smem>>
    %c43 = arith.constant 43 : index
    %43 = memref.load %arg2[%c43] : memref<83xf32, #tpu.memory_space<smem>>
    %c44 = arith.constant 44 : index
    %44 = memref.load %arg2[%c44] : memref<83xf32, #tpu.memory_space<smem>>
    %c45 = arith.constant 45 : index
    %45 = memref.load %arg2[%c45] : memref<83xf32, #tpu.memory_space<smem>>
    %c46 = arith.constant 46 : index
    %46 = memref.load %arg2[%c46] : memref<83xf32, #tpu.memory_space<smem>>
    %c47 = arith.constant 47 : index
    %47 = memref.load %arg2[%c47] : memref<83xf32, #tpu.memory_space<smem>>
    %c48 = arith.constant 48 : index
    %48 = memref.load %arg2[%c48] : memref<83xf32, #tpu.memory_space<smem>>
    %c49 = arith.constant 49 : index
    %49 = memref.load %arg2[%c49] : memref<83xf32, #tpu.memory_space<smem>>
    %c50 = arith.constant 50 : index
    %50 = memref.load %arg2[%c50] : memref<83xf32, #tpu.memory_space<smem>>
    %c51 = arith.constant 51 : index
    %51 = memref.load %arg2[%c51] : memref<83xf32, #tpu.memory_space<smem>>
    %c52 = arith.constant 52 : index
    %52 = memref.load %arg2[%c52] : memref<83xf32, #tpu.memory_space<smem>>
    %c53 = arith.constant 53 : index
    %53 = memref.load %arg2[%c53] : memref<83xf32, #tpu.memory_space<smem>>
    %c54 = arith.constant 54 : index
    %54 = memref.load %arg2[%c54] : memref<83xf32, #tpu.memory_space<smem>>
    %c55 = arith.constant 55 : index
    %55 = memref.load %arg2[%c55] : memref<83xf32, #tpu.memory_space<smem>>
    %c56 = arith.constant 56 : index
    %56 = memref.load %arg2[%c56] : memref<83xf32, #tpu.memory_space<smem>>
    %c57 = arith.constant 57 : index
    %57 = memref.load %arg2[%c57] : memref<83xf32, #tpu.memory_space<smem>>
    %c58 = arith.constant 58 : index
    %58 = memref.load %arg2[%c58] : memref<83xf32, #tpu.memory_space<smem>>
    %c59 = arith.constant 59 : index
    %59 = memref.load %arg2[%c59] : memref<83xf32, #tpu.memory_space<smem>>
    %c60 = arith.constant 60 : index
    %60 = memref.load %arg2[%c60] : memref<83xf32, #tpu.memory_space<smem>>
    %c61 = arith.constant 61 : index
    %61 = memref.load %arg2[%c61] : memref<83xf32, #tpu.memory_space<smem>>
    %c62 = arith.constant 62 : index
    %62 = memref.load %arg2[%c62] : memref<83xf32, #tpu.memory_space<smem>>
    %c63 = arith.constant 63 : index
    %63 = memref.load %arg2[%c63] : memref<83xf32, #tpu.memory_space<smem>>
    %c64 = arith.constant 64 : index
    %64 = memref.load %arg2[%c64] : memref<83xf32, #tpu.memory_space<smem>>
    %c65 = arith.constant 65 : index
    %65 = memref.load %arg2[%c65] : memref<83xf32, #tpu.memory_space<smem>>
    %c66 = arith.constant 66 : index
    %66 = memref.load %arg2[%c66] : memref<83xf32, #tpu.memory_space<smem>>
    %c67 = arith.constant 67 : index
    %67 = memref.load %arg2[%c67] : memref<83xf32, #tpu.memory_space<smem>>
    %c68 = arith.constant 68 : index
    %68 = memref.load %arg2[%c68] : memref<83xf32, #tpu.memory_space<smem>>
    %c69 = arith.constant 69 : index
    %69 = memref.load %arg2[%c69] : memref<83xf32, #tpu.memory_space<smem>>
    %c70 = arith.constant 70 : index
    %70 = memref.load %arg2[%c70] : memref<83xf32, #tpu.memory_space<smem>>
    %c71 = arith.constant 71 : index
    %71 = memref.load %arg2[%c71] : memref<83xf32, #tpu.memory_space<smem>>
    %c72 = arith.constant 72 : index
    %72 = memref.load %arg2[%c72] : memref<83xf32, #tpu.memory_space<smem>>
    %c73 = arith.constant 73 : index
    %73 = memref.load %arg2[%c73] : memref<83xf32, #tpu.memory_space<smem>>
    %c74 = arith.constant 74 : index
    %74 = memref.load %arg2[%c74] : memref<83xf32, #tpu.memory_space<smem>>
    %c75 = arith.constant 75 : index
    %75 = memref.load %arg2[%c75] : memref<83xf32, #tpu.memory_space<smem>>
    %c76 = arith.constant 76 : index
    %76 = memref.load %arg2[%c76] : memref<83xf32, #tpu.memory_space<smem>>
    %c77 = arith.constant 77 : index
    %77 = memref.load %arg2[%c77] : memref<83xf32, #tpu.memory_space<smem>>
    %c78 = arith.constant 78 : index
    %78 = memref.load %arg2[%c78] : memref<83xf32, #tpu.memory_space<smem>>
    %c79 = arith.constant 79 : index
    %79 = memref.load %arg2[%c79] : memref<83xf32, #tpu.memory_space<smem>>
    %c80 = arith.constant 80 : index
    %80 = memref.load %arg2[%c80] : memref<83xf32, #tpu.memory_space<smem>>
    %c81 = arith.constant 81 : index
    %81 = memref.load %arg2[%c81] : memref<83xf32, #tpu.memory_space<smem>>
    %c82 = arith.constant 82 : index
    %82 = memref.load %arg2[%c82] : memref<83xf32, #tpu.memory_space<smem>>
    %c0_i32 = arith.constant 0 : i32
    %c2_i32 = arith.constant 2 : i32
    %83 = arith.addi %c0_i32, %c2_i32 : i32
    %c1_i32 = arith.constant 1 : i32
    scf.for %arg4 = %c0_i32 to %83 step %c1_i32  : i32 {
      %c1_i32_1 = arith.constant 1 : i32
      %84 = arith.muli %arg4, %c1_i32_1 : i32
      %c0_i32_2 = arith.constant 0 : i32
      %85 = arith.addi %c0_i32_2, %84 : i32
      %86 = arith.index_cast %85 : i32 to index
      %c0_3 = arith.constant 0 : index
      %c0_4 = arith.constant 0 : index
      %c0_5 = arith.constant 0 : index
      %87 = vector.load %arg1[%86, %c0_3, %c0_4, %c0_5] : memref<2x16x8x128xf32, #tpu.memory_space<vmem>>, vector<1x16x8x128xf32>
      %88 = vector.shape_cast %87 : vector<1x16x8x128xf32> to vector<16x8x128xf32>
      %89 = vector.extract_strided_slice %88 {offsets = [0, 0, 0], sizes = [1, 8, 128], strides = [1, 1, 1]} : vector<16x8x128xf32> to vector<1x8x128xf32>
      %90 = vector.shape_cast %89 : vector<1x8x128xf32> to vector<8x128xf32>
      %91 = vector.extract_strided_slice %88 {offsets = [1, 0, 0], sizes = [1, 8, 128], strides = [1, 1, 1]} : vector<16x8x128xf32> to vector<1x8x128xf32>
      %92 = vector.shape_cast %91 : vector<1x8x128xf32> to vector<8x128xf32>
      %93 = vector.extract_strided_slice %88 {offsets = [2, 0, 0], sizes = [1, 8, 128], strides = [1, 1, 1]} : vector<16x8x128xf32> to vector<1x8x128xf32>
      %94 = vector.shape_cast %93 : vector<1x8x128xf32> to vector<8x128xf32>
      %95 = vector.extract_strided_slice %88 {offsets = [3, 0, 0], sizes = [1, 8, 128], strides = [1, 1, 1]} : vector<16x8x128xf32> to vector<1x8x128xf32>
      %96 = vector.shape_cast %95 : vector<1x8x128xf32> to vector<8x128xf32>
      %97 = vector.extract_strided_slice %88 {offsets = [4, 0, 0], sizes = [1, 8, 128], strides = [1, 1, 1]} : vector<16x8x128xf32> to vector<1x8x128xf32>
      %98 = vector.shape_cast %97 : vector<1x8x128xf32> to vector<8x128xf32>
      %99 = vector.extract_strided_slice %88 {offsets = [5, 0, 0], sizes = [1, 8, 128], strides = [1, 1, 1]} : vector<16x8x128xf32> to vector<1x8x128xf32>
      %100 = vector.shape_cast %99 : vector<1x8x128xf32> to vector<8x128xf32>
      %101 = vector.extract_strided_slice %88 {offsets = [6, 0, 0], sizes = [1, 8, 128], strides = [1, 1, 1]} : vector<16x8x128xf32> to vector<1x8x128xf32>
      %102 = vector.shape_cast %101 : vector<1x8x128xf32> to vector<8x128xf32>
      %103 = vector.extract_strided_slice %88 {offsets = [7, 0, 0], sizes = [1, 8, 128], strides = [1, 1, 1]} : vector<16x8x128xf32> to vector<1x8x128xf32>
      %104 = vector.shape_cast %103 : vector<1x8x128xf32> to vector<8x128xf32>
      %105 = vector.extract_strided_slice %88 {offsets = [8, 0, 0], sizes = [1, 8, 128], strides = [1, 1, 1]} : vector<16x8x128xf32> to vector<1x8x128xf32>
      %106 = vector.shape_cast %105 : vector<1x8x128xf32> to vector<8x128xf32>
      %107 = vector.extract_strided_slice %88 {offsets = [9, 0, 0], sizes = [1, 8, 128], strides = [1, 1, 1]} : vector<16x8x128xf32> to vector<1x8x128xf32>
      %108 = vector.shape_cast %107 : vector<1x8x128xf32> to vector<8x128xf32>
      %109 = vector.extract_strided_slice %88 {offsets = [10, 0, 0], sizes = [1, 8, 128], strides = [1, 1, 1]} : vector<16x8x128xf32> to vector<1x8x128xf32>
      %110 = vector.shape_cast %109 : vector<1x8x128xf32> to vector<8x128xf32>
      %111 = vector.extract_strided_slice %88 {offsets = [11, 0, 0], sizes = [1, 8, 128], strides = [1, 1, 1]} : vector<16x8x128xf32> to vector<1x8x128xf32>
      %112 = vector.shape_cast %111 : vector<1x8x128xf32> to vector<8x128xf32>
      %113 = vector.extract_strided_slice %88 {offsets = [12, 0, 0], sizes = [1, 8, 128], strides = [1, 1, 1]} : vector<16x8x128xf32> to vector<1x8x128xf32>
      %114 = vector.shape_cast %113 : vector<1x8x128xf32> to vector<8x128xf32>
      %115 = vector.extract_strided_slice %88 {offsets = [13, 0, 0], sizes = [1, 8, 128], strides = [1, 1, 1]} : vector<16x8x128xf32> to vector<1x8x128xf32>
      %116 = vector.shape_cast %115 : vector<1x8x128xf32> to vector<8x128xf32>
      %117 = vector.extract_strided_slice %88 {offsets = [14, 0, 0], sizes = [1, 8, 128], strides = [1, 1, 1]} : vector<16x8x128xf32> to vector<1x8x128xf32>
      %118 = vector.shape_cast %117 : vector<1x8x128xf32> to vector<8x128xf32>
      %119 = vector.extract_strided_slice %88 {offsets = [15, 0, 0], sizes = [1, 8, 128], strides = [1, 1, 1]} : vector<16x8x128xf32> to vector<1x8x128xf32>
      %120 = vector.shape_cast %119 : vector<1x8x128xf32> to vector<8x128xf32>
      %121 = vector.broadcast %0 : f32 to vector<8x128xf32>
      %122 = arith.mulf %90, %121 : vector<8x128xf32>
      %123 = vector.broadcast %1 : f32 to vector<8x128xf32>
      %124 = arith.mulf %92, %123 : vector<8x128xf32>
      %125 = vector.broadcast %2 : f32 to vector<8x128xf32>
      %126 = arith.mulf %98, %125 : vector<8x128xf32>
      %127 = vector.broadcast %3 : f32 to vector<8x128xf32>
      %128 = arith.mulf %100, %127 : vector<8x128xf32>
      %129 = arith.addf %122, %124 : vector<8x128xf32>
      %130 = arith.addf %126, %128 : vector<8x128xf32>
      %131 = arith.addf %129, %130 : vector<8x128xf32>
      %132 = vector.broadcast %8 : f32 to vector<8x128xf32>
      %133 = arith.addf %131, %132 : vector<8x128xf32>
      %134 = vector.broadcast %0 : f32 to vector<8x128xf32>
      %135 = arith.mulf %92, %134 : vector<8x128xf32>
      %136 = vector.broadcast %1 : f32 to vector<8x128xf32>
      %137 = arith.mulf %94, %136 : vector<8x128xf32>
      %138 = vector.broadcast %2 : f32 to vector<8x128xf32>
      %139 = arith.mulf %100, %138 : vector<8x128xf32>
      %140 = vector.broadcast %3 : f32 to vector<8x128xf32>
      %141 = arith.mulf %102, %140 : vector<8x128xf32>
      %142 = arith.addf %135, %137 : vector<8x128xf32>
      %143 = arith.addf %139, %141 : vector<8x128xf32>
      %144 = arith.addf %142, %143 : vector<8x128xf32>
      %145 = vector.broadcast %8 : f32 to vector<8x128xf32>
      %146 = arith.addf %144, %145 : vector<8x128xf32>
      %147 = vector.broadcast %0 : f32 to vector<8x128xf32>
      %148 = arith.mulf %94, %147 : vector<8x128xf32>
      %149 = vector.broadcast %1 : f32 to vector<8x128xf32>
      %150 = arith.mulf %96, %149 : vector<8x128xf32>
      %151 = vector.broadcast %2 : f32 to vector<8x128xf32>
      %152 = arith.mulf %102, %151 : vector<8x128xf32>
      %153 = vector.broadcast %3 : f32 to vector<8x128xf32>
      %154 = arith.mulf %104, %153 : vector<8x128xf32>
      %155 = arith.addf %148, %150 : vector<8x128xf32>
      %156 = arith.addf %152, %154 : vector<8x128xf32>
      %157 = arith.addf %155, %156 : vector<8x128xf32>
      %158 = vector.broadcast %8 : f32 to vector<8x128xf32>
      %159 = arith.addf %157, %158 : vector<8x128xf32>
      %160 = vector.broadcast %0 : f32 to vector<8x128xf32>
      %161 = arith.mulf %98, %160 : vector<8x128xf32>
      %162 = vector.broadcast %1 : f32 to vector<8x128xf32>
      %163 = arith.mulf %100, %162 : vector<8x128xf32>
      %164 = vector.broadcast %2 : f32 to vector<8x128xf32>
      %165 = arith.mulf %106, %164 : vector<8x128xf32>
      %166 = vector.broadcast %3 : f32 to vector<8x128xf32>
      %167 = arith.mulf %108, %166 : vector<8x128xf32>
      %168 = arith.addf %161, %163 : vector<8x128xf32>
      %169 = arith.addf %165, %167 : vector<8x128xf32>
      %170 = arith.addf %168, %169 : vector<8x128xf32>
      %171 = vector.broadcast %8 : f32 to vector<8x128xf32>
      %172 = arith.addf %170, %171 : vector<8x128xf32>
      %173 = vector.broadcast %0 : f32 to vector<8x128xf32>
      %174 = arith.mulf %100, %173 : vector<8x128xf32>
      %175 = vector.broadcast %1 : f32 to vector<8x128xf32>
      %176 = arith.mulf %102, %175 : vector<8x128xf32>
      %177 = vector.broadcast %2 : f32 to vector<8x128xf32>
      %178 = arith.mulf %108, %177 : vector<8x128xf32>
      %179 = vector.broadcast %3 : f32 to vector<8x128xf32>
      %180 = arith.mulf %110, %179 : vector<8x128xf32>
      %181 = arith.addf %174, %176 : vector<8x128xf32>
      %182 = arith.addf %178, %180 : vector<8x128xf32>
      %183 = arith.addf %181, %182 : vector<8x128xf32>
      %184 = vector.broadcast %8 : f32 to vector<8x128xf32>
      %185 = arith.addf %183, %184 : vector<8x128xf32>
      %186 = vector.broadcast %0 : f32 to vector<8x128xf32>
      %187 = arith.mulf %102, %186 : vector<8x128xf32>
      %188 = vector.broadcast %1 : f32 to vector<8x128xf32>
      %189 = arith.mulf %104, %188 : vector<8x128xf32>
      %190 = vector.broadcast %2 : f32 to vector<8x128xf32>
      %191 = arith.mulf %110, %190 : vector<8x128xf32>
      %192 = vector.broadcast %3 : f32 to vector<8x128xf32>
      %193 = arith.mulf %112, %192 : vector<8x128xf32>
      %194 = arith.addf %187, %189 : vector<8x128xf32>
      %195 = arith.addf %191, %193 : vector<8x128xf32>
      %196 = arith.addf %194, %195 : vector<8x128xf32>
      %197 = vector.broadcast %8 : f32 to vector<8x128xf32>
      %198 = arith.addf %196, %197 : vector<8x128xf32>
      %199 = vector.broadcast %0 : f32 to vector<8x128xf32>
      %200 = arith.mulf %106, %199 : vector<8x128xf32>
      %201 = vector.broadcast %1 : f32 to vector<8x128xf32>
      %202 = arith.mulf %108, %201 : vector<8x128xf32>
      %203 = vector.broadcast %2 : f32 to vector<8x128xf32>
      %204 = arith.mulf %114, %203 : vector<8x128xf32>
      %205 = vector.broadcast %3 : f32 to vector<8x128xf32>
      %206 = arith.mulf %116, %205 : vector<8x128xf32>
      %207 = arith.addf %200, %202 : vector<8x128xf32>
      %208 = arith.addf %204, %206 : vector<8x128xf32>
      %209 = arith.addf %207, %208 : vector<8x128xf32>
      %210 = vector.broadcast %8 : f32 to vector<8x128xf32>
      %211 = arith.addf %209, %210 : vector<8x128xf32>
      %212 = vector.broadcast %0 : f32 to vector<8x128xf32>
      %213 = arith.mulf %108, %212 : vector<8x128xf32>
      %214 = vector.broadcast %1 : f32 to vector<8x128xf32>
      %215 = arith.mulf %110, %214 : vector<8x128xf32>
      %216 = vector.broadcast %2 : f32 to vector<8x128xf32>
      %217 = arith.mulf %116, %216 : vector<8x128xf32>
      %218 = vector.broadcast %3 : f32 to vector<8x128xf32>
      %219 = arith.mulf %118, %218 : vector<8x128xf32>
      %220 = arith.addf %213, %215 : vector<8x128xf32>
      %221 = arith.addf %217, %219 : vector<8x128xf32>
      %222 = arith.addf %220, %221 : vector<8x128xf32>
      %223 = vector.broadcast %8 : f32 to vector<8x128xf32>
      %224 = arith.addf %222, %223 : vector<8x128xf32>
      %225 = vector.broadcast %0 : f32 to vector<8x128xf32>
      %226 = arith.mulf %110, %225 : vector<8x128xf32>
      %227 = vector.broadcast %1 : f32 to vector<8x128xf32>
      %228 = arith.mulf %112, %227 : vector<8x128xf32>
      %229 = vector.broadcast %2 : f32 to vector<8x128xf32>
      %230 = arith.mulf %118, %229 : vector<8x128xf32>
      %231 = vector.broadcast %3 : f32 to vector<8x128xf32>
      %232 = arith.mulf %120, %231 : vector<8x128xf32>
      %233 = arith.addf %226, %228 : vector<8x128xf32>
      %234 = arith.addf %230, %232 : vector<8x128xf32>
      %235 = arith.addf %233, %234 : vector<8x128xf32>
      %236 = vector.broadcast %8 : f32 to vector<8x128xf32>
      %237 = arith.addf %235, %236 : vector<8x128xf32>
      %238 = vector.broadcast %4 : f32 to vector<8x128xf32>
      %239 = arith.mulf %90, %238 : vector<8x128xf32>
      %240 = vector.broadcast %5 : f32 to vector<8x128xf32>
      %241 = arith.mulf %92, %240 : vector<8x128xf32>
      %242 = vector.broadcast %6 : f32 to vector<8x128xf32>
      %243 = arith.mulf %98, %242 : vector<8x128xf32>
      %244 = vector.broadcast %7 : f32 to vector<8x128xf32>
      %245 = arith.mulf %100, %244 : vector<8x128xf32>
      %246 = arith.addf %239, %241 : vector<8x128xf32>
      %247 = arith.addf %243, %245 : vector<8x128xf32>
      %248 = arith.addf %246, %247 : vector<8x128xf32>
      %249 = vector.broadcast %9 : f32 to vector<8x128xf32>
      %250 = arith.addf %248, %249 : vector<8x128xf32>
      %251 = vector.broadcast %4 : f32 to vector<8x128xf32>
      %252 = arith.mulf %92, %251 : vector<8x128xf32>
      %253 = vector.broadcast %5 : f32 to vector<8x128xf32>
      %254 = arith.mulf %94, %253 : vector<8x128xf32>
      %255 = vector.broadcast %6 : f32 to vector<8x128xf32>
      %256 = arith.mulf %100, %255 : vector<8x128xf32>
      %257 = vector.broadcast %7 : f32 to vector<8x128xf32>
      %258 = arith.mulf %102, %257 : vector<8x128xf32>
      %259 = arith.addf %252, %254 : vector<8x128xf32>
      %260 = arith.addf %256, %258 : vector<8x128xf32>
      %261 = arith.addf %259, %260 : vector<8x128xf32>
      %262 = vector.broadcast %9 : f32 to vector<8x128xf32>
      %263 = arith.addf %261, %262 : vector<8x128xf32>
      %264 = vector.broadcast %4 : f32 to vector<8x128xf32>
      %265 = arith.mulf %94, %264 : vector<8x128xf32>
      %266 = vector.broadcast %5 : f32 to vector<8x128xf32>
      %267 = arith.mulf %96, %266 : vector<8x128xf32>
      %268 = vector.broadcast %6 : f32 to vector<8x128xf32>
      %269 = arith.mulf %102, %268 : vector<8x128xf32>
      %270 = vector.broadcast %7 : f32 to vector<8x128xf32>
      %271 = arith.mulf %104, %270 : vector<8x128xf32>
      %272 = arith.addf %265, %267 : vector<8x128xf32>
      %273 = arith.addf %269, %271 : vector<8x128xf32>
      %274 = arith.addf %272, %273 : vector<8x128xf32>
      %275 = vector.broadcast %9 : f32 to vector<8x128xf32>
      %276 = arith.addf %274, %275 : vector<8x128xf32>
      %277 = vector.broadcast %4 : f32 to vector<8x128xf32>
      %278 = arith.mulf %98, %277 : vector<8x128xf32>
      %279 = vector.broadcast %5 : f32 to vector<8x128xf32>
      %280 = arith.mulf %100, %279 : vector<8x128xf32>
      %281 = vector.broadcast %6 : f32 to vector<8x128xf32>
      %282 = arith.mulf %106, %281 : vector<8x128xf32>
      %283 = vector.broadcast %7 : f32 to vector<8x128xf32>
      %284 = arith.mulf %108, %283 : vector<8x128xf32>
      %285 = arith.addf %278, %280 : vector<8x128xf32>
      %286 = arith.addf %282, %284 : vector<8x128xf32>
      %287 = arith.addf %285, %286 : vector<8x128xf32>
      %288 = vector.broadcast %9 : f32 to vector<8x128xf32>
      %289 = arith.addf %287, %288 : vector<8x128xf32>
      %290 = vector.broadcast %4 : f32 to vector<8x128xf32>
      %291 = arith.mulf %100, %290 : vector<8x128xf32>
      %292 = vector.broadcast %5 : f32 to vector<8x128xf32>
      %293 = arith.mulf %102, %292 : vector<8x128xf32>
      %294 = vector.broadcast %6 : f32 to vector<8x128xf32>
      %295 = arith.mulf %108, %294 : vector<8x128xf32>
      %296 = vector.broadcast %7 : f32 to vector<8x128xf32>
      %297 = arith.mulf %110, %296 : vector<8x128xf32>
      %298 = arith.addf %291, %293 : vector<8x128xf32>
      %299 = arith.addf %295, %297 : vector<8x128xf32>
      %300 = arith.addf %298, %299 : vector<8x128xf32>
      %301 = vector.broadcast %9 : f32 to vector<8x128xf32>
      %302 = arith.addf %300, %301 : vector<8x128xf32>
      %303 = vector.broadcast %4 : f32 to vector<8x128xf32>
      %304 = arith.mulf %102, %303 : vector<8x128xf32>
      %305 = vector.broadcast %5 : f32 to vector<8x128xf32>
      %306 = arith.mulf %104, %305 : vector<8x128xf32>
      %307 = vector.broadcast %6 : f32 to vector<8x128xf32>
      %308 = arith.mulf %110, %307 : vector<8x128xf32>
      %309 = vector.broadcast %7 : f32 to vector<8x128xf32>
      %310 = arith.mulf %112, %309 : vector<8x128xf32>
      %311 = arith.addf %304, %306 : vector<8x128xf32>
      %312 = arith.addf %308, %310 : vector<8x128xf32>
      %313 = arith.addf %311, %312 : vector<8x128xf32>
      %314 = vector.broadcast %9 : f32 to vector<8x128xf32>
      %315 = arith.addf %313, %314 : vector<8x128xf32>
      %316 = vector.broadcast %4 : f32 to vector<8x128xf32>
      %317 = arith.mulf %106, %316 : vector<8x128xf32>
      %318 = vector.broadcast %5 : f32 to vector<8x128xf32>
      %319 = arith.mulf %108, %318 : vector<8x128xf32>
      %320 = vector.broadcast %6 : f32 to vector<8x128xf32>
      %321 = arith.mulf %114, %320 : vector<8x128xf32>
      %322 = vector.broadcast %7 : f32 to vector<8x128xf32>
      %323 = arith.mulf %116, %322 : vector<8x128xf32>
      %324 = arith.addf %317, %319 : vector<8x128xf32>
      %325 = arith.addf %321, %323 : vector<8x128xf32>
      %326 = arith.addf %324, %325 : vector<8x128xf32>
      %327 = vector.broadcast %9 : f32 to vector<8x128xf32>
      %328 = arith.addf %326, %327 : vector<8x128xf32>
      %329 = vector.broadcast %4 : f32 to vector<8x128xf32>
      %330 = arith.mulf %108, %329 : vector<8x128xf32>
      %331 = vector.broadcast %5 : f32 to vector<8x128xf32>
      %332 = arith.mulf %110, %331 : vector<8x128xf32>
      %333 = vector.broadcast %6 : f32 to vector<8x128xf32>
      %334 = arith.mulf %116, %333 : vector<8x128xf32>
      %335 = vector.broadcast %7 : f32 to vector<8x128xf32>
      %336 = arith.mulf %118, %335 : vector<8x128xf32>
      %337 = arith.addf %330, %332 : vector<8x128xf32>
      %338 = arith.addf %334, %336 : vector<8x128xf32>
      %339 = arith.addf %337, %338 : vector<8x128xf32>
      %340 = vector.broadcast %9 : f32 to vector<8x128xf32>
      %341 = arith.addf %339, %340 : vector<8x128xf32>
      %342 = vector.broadcast %4 : f32 to vector<8x128xf32>
      %343 = arith.mulf %110, %342 : vector<8x128xf32>
      %344 = vector.broadcast %5 : f32 to vector<8x128xf32>
      %345 = arith.mulf %112, %344 : vector<8x128xf32>
      %346 = vector.broadcast %6 : f32 to vector<8x128xf32>
      %347 = arith.mulf %118, %346 : vector<8x128xf32>
      %348 = vector.broadcast %7 : f32 to vector<8x128xf32>
      %349 = arith.mulf %120, %348 : vector<8x128xf32>
      %350 = arith.addf %343, %345 : vector<8x128xf32>
      %351 = arith.addf %347, %349 : vector<8x128xf32>
      %352 = arith.addf %350, %351 : vector<8x128xf32>
      %353 = vector.broadcast %9 : f32 to vector<8x128xf32>
      %354 = arith.addf %352, %353 : vector<8x128xf32>
      %cst = arith.constant 0.000000e+00 : f32
      %355 = vector.broadcast %cst : f32 to vector<8x128xf32>
      %356 = arith.maximumf %133, %355 : vector<8x128xf32>
      %cst_6 = arith.constant 0.000000e+00 : f32
      %357 = vector.broadcast %cst_6 : f32 to vector<8x128xf32>
      %358 = arith.maximumf %146, %357 : vector<8x128xf32>
      %cst_7 = arith.constant 0.000000e+00 : f32
      %359 = vector.broadcast %cst_7 : f32 to vector<8x128xf32>
      %360 = arith.maximumf %159, %359 : vector<8x128xf32>
      %cst_8 = arith.constant 0.000000e+00 : f32
      %361 = vector.broadcast %cst_8 : f32 to vector<8x128xf32>
      %362 = arith.maximumf %172, %361 : vector<8x128xf32>
      %cst_9 = arith.constant 0.000000e+00 : f32
      %363 = vector.broadcast %cst_9 : f32 to vector<8x128xf32>
      %364 = arith.maximumf %185, %363 : vector<8x128xf32>
      %cst_10 = arith.constant 0.000000e+00 : f32
      %365 = vector.broadcast %cst_10 : f32 to vector<8x128xf32>
      %366 = arith.maximumf %198, %365 : vector<8x128xf32>
      %cst_11 = arith.constant 0.000000e+00 : f32
      %367 = vector.broadcast %cst_11 : f32 to vector<8x128xf32>
      %368 = arith.maximumf %211, %367 : vector<8x128xf32>
      %cst_12 = arith.constant 0.000000e+00 : f32
      %369 = vector.broadcast %cst_12 : f32 to vector<8x128xf32>
      %370 = arith.maximumf %224, %369 : vector<8x128xf32>
      %cst_13 = arith.constant 0.000000e+00 : f32
      %371 = vector.broadcast %cst_13 : f32 to vector<8x128xf32>
      %372 = arith.maximumf %237, %371 : vector<8x128xf32>
      %cst_14 = arith.constant 0.000000e+00 : f32
      %373 = vector.broadcast %cst_14 : f32 to vector<8x128xf32>
      %374 = arith.maximumf %250, %373 : vector<8x128xf32>
      %cst_15 = arith.constant 0.000000e+00 : f32
      %375 = vector.broadcast %cst_15 : f32 to vector<8x128xf32>
      %376 = arith.maximumf %263, %375 : vector<8x128xf32>
      %cst_16 = arith.constant 0.000000e+00 : f32
      %377 = vector.broadcast %cst_16 : f32 to vector<8x128xf32>
      %378 = arith.maximumf %276, %377 : vector<8x128xf32>
      %cst_17 = arith.constant 0.000000e+00 : f32
      %379 = vector.broadcast %cst_17 : f32 to vector<8x128xf32>
      %380 = arith.maximumf %289, %379 : vector<8x128xf32>
      %cst_18 = arith.constant 0.000000e+00 : f32
      %381 = vector.broadcast %cst_18 : f32 to vector<8x128xf32>
      %382 = arith.maximumf %302, %381 : vector<8x128xf32>
      %cst_19 = arith.constant 0.000000e+00 : f32
      %383 = vector.broadcast %cst_19 : f32 to vector<8x128xf32>
      %384 = arith.maximumf %315, %383 : vector<8x128xf32>
      %cst_20 = arith.constant 0.000000e+00 : f32
      %385 = vector.broadcast %cst_20 : f32 to vector<8x128xf32>
      %386 = arith.maximumf %328, %385 : vector<8x128xf32>
      %cst_21 = arith.constant 0.000000e+00 : f32
      %387 = vector.broadcast %cst_21 : f32 to vector<8x128xf32>
      %388 = arith.maximumf %341, %387 : vector<8x128xf32>
      %cst_22 = arith.constant 0.000000e+00 : f32
      %389 = vector.broadcast %cst_22 : f32 to vector<8x128xf32>
      %390 = arith.maximumf %354, %389 : vector<8x128xf32>
      %391 = vector.broadcast %10 : f32 to vector<8x128xf32>
      %392 = arith.mulf %356, %391 : vector<8x128xf32>
      %393 = vector.broadcast %11 : f32 to vector<8x128xf32>
      %394 = arith.mulf %358, %393 : vector<8x128xf32>
      %395 = vector.broadcast %12 : f32 to vector<8x128xf32>
      %396 = arith.mulf %362, %395 : vector<8x128xf32>
      %397 = vector.broadcast %13 : f32 to vector<8x128xf32>
      %398 = arith.mulf %364, %397 : vector<8x128xf32>
      %399 = vector.broadcast %14 : f32 to vector<8x128xf32>
      %400 = arith.mulf %374, %399 : vector<8x128xf32>
      %401 = vector.broadcast %15 : f32 to vector<8x128xf32>
      %402 = arith.mulf %376, %401 : vector<8x128xf32>
      %403 = vector.broadcast %16 : f32 to vector<8x128xf32>
      %404 = arith.mulf %380, %403 : vector<8x128xf32>
      %405 = vector.broadcast %17 : f32 to vector<8x128xf32>
      %406 = arith.mulf %382, %405 : vector<8x128xf32>
      %407 = arith.addf %392, %394 : vector<8x128xf32>
      %408 = arith.addf %396, %398 : vector<8x128xf32>
      %409 = arith.addf %400, %402 : vector<8x128xf32>
      %410 = arith.addf %404, %406 : vector<8x128xf32>
      %411 = arith.addf %407, %408 : vector<8x128xf32>
      %412 = arith.addf %409, %410 : vector<8x128xf32>
      %413 = arith.addf %411, %412 : vector<8x128xf32>
      %414 = vector.broadcast %34 : f32 to vector<8x128xf32>
      %415 = arith.addf %413, %414 : vector<8x128xf32>
      %416 = vector.broadcast %10 : f32 to vector<8x128xf32>
      %417 = arith.mulf %358, %416 : vector<8x128xf32>
      %418 = vector.broadcast %11 : f32 to vector<8x128xf32>
      %419 = arith.mulf %360, %418 : vector<8x128xf32>
      %420 = vector.broadcast %12 : f32 to vector<8x128xf32>
      %421 = arith.mulf %364, %420 : vector<8x128xf32>
      %422 = vector.broadcast %13 : f32 to vector<8x128xf32>
      %423 = arith.mulf %366, %422 : vector<8x128xf32>
      %424 = vector.broadcast %14 : f32 to vector<8x128xf32>
      %425 = arith.mulf %376, %424 : vector<8x128xf32>
      %426 = vector.broadcast %15 : f32 to vector<8x128xf32>
      %427 = arith.mulf %378, %426 : vector<8x128xf32>
      %428 = vector.broadcast %16 : f32 to vector<8x128xf32>
      %429 = arith.mulf %382, %428 : vector<8x128xf32>
      %430 = vector.broadcast %17 : f32 to vector<8x128xf32>
      %431 = arith.mulf %384, %430 : vector<8x128xf32>
      %432 = arith.addf %417, %419 : vector<8x128xf32>
      %433 = arith.addf %421, %423 : vector<8x128xf32>
      %434 = arith.addf %425, %427 : vector<8x128xf32>
      %435 = arith.addf %429, %431 : vector<8x128xf32>
      %436 = arith.addf %432, %433 : vector<8x128xf32>
      %437 = arith.addf %434, %435 : vector<8x128xf32>
      %438 = arith.addf %436, %437 : vector<8x128xf32>
      %439 = vector.broadcast %34 : f32 to vector<8x128xf32>
      %440 = arith.addf %438, %439 : vector<8x128xf32>
      %441 = vector.broadcast %10 : f32 to vector<8x128xf32>
      %442 = arith.mulf %362, %441 : vector<8x128xf32>
      %443 = vector.broadcast %11 : f32 to vector<8x128xf32>
      %444 = arith.mulf %364, %443 : vector<8x128xf32>
      %445 = vector.broadcast %12 : f32 to vector<8x128xf32>
      %446 = arith.mulf %368, %445 : vector<8x128xf32>
      %447 = vector.broadcast %13 : f32 to vector<8x128xf32>
      %448 = arith.mulf %370, %447 : vector<8x128xf32>
      %449 = vector.broadcast %14 : f32 to vector<8x128xf32>
      %450 = arith.mulf %380, %449 : vector<8x128xf32>
      %451 = vector.broadcast %15 : f32 to vector<8x128xf32>
      %452 = arith.mulf %382, %451 : vector<8x128xf32>
      %453 = vector.broadcast %16 : f32 to vector<8x128xf32>
      %454 = arith.mulf %386, %453 : vector<8x128xf32>
      %455 = vector.broadcast %17 : f32 to vector<8x128xf32>
      %456 = arith.mulf %388, %455 : vector<8x128xf32>
      %457 = arith.addf %442, %444 : vector<8x128xf32>
      %458 = arith.addf %446, %448 : vector<8x128xf32>
      %459 = arith.addf %450, %452 : vector<8x128xf32>
      %460 = arith.addf %454, %456 : vector<8x128xf32>
      %461 = arith.addf %457, %458 : vector<8x128xf32>
      %462 = arith.addf %459, %460 : vector<8x128xf32>
      %463 = arith.addf %461, %462 : vector<8x128xf32>
      %464 = vector.broadcast %34 : f32 to vector<8x128xf32>
      %465 = arith.addf %463, %464 : vector<8x128xf32>
      %466 = vector.broadcast %10 : f32 to vector<8x128xf32>
      %467 = arith.mulf %364, %466 : vector<8x128xf32>
      %468 = vector.broadcast %11 : f32 to vector<8x128xf32>
      %469 = arith.mulf %366, %468 : vector<8x128xf32>
      %470 = vector.broadcast %12 : f32 to vector<8x128xf32>
      %471 = arith.mulf %370, %470 : vector<8x128xf32>
      %472 = vector.broadcast %13 : f32 to vector<8x128xf32>
      %473 = arith.mulf %372, %472 : vector<8x128xf32>
      %474 = vector.broadcast %14 : f32 to vector<8x128xf32>
      %475 = arith.mulf %382, %474 : vector<8x128xf32>
      %476 = vector.broadcast %15 : f32 to vector<8x128xf32>
      %477 = arith.mulf %384, %476 : vector<8x128xf32>
      %478 = vector.broadcast %16 : f32 to vector<8x128xf32>
      %479 = arith.mulf %388, %478 : vector<8x128xf32>
      %480 = vector.broadcast %17 : f32 to vector<8x128xf32>
      %481 = arith.mulf %390, %480 : vector<8x128xf32>
      %482 = arith.addf %467, %469 : vector<8x128xf32>
      %483 = arith.addf %471, %473 : vector<8x128xf32>
      %484 = arith.addf %475, %477 : vector<8x128xf32>
      %485 = arith.addf %479, %481 : vector<8x128xf32>
      %486 = arith.addf %482, %483 : vector<8x128xf32>
      %487 = arith.addf %484, %485 : vector<8x128xf32>
      %488 = arith.addf %486, %487 : vector<8x128xf32>
      %489 = vector.broadcast %34 : f32 to vector<8x128xf32>
      %490 = arith.addf %488, %489 : vector<8x128xf32>
      %491 = vector.broadcast %18 : f32 to vector<8x128xf32>
      %492 = arith.mulf %356, %491 : vector<8x128xf32>
      %493 = vector.broadcast %19 : f32 to vector<8x128xf32>
      %494 = arith.mulf %358, %493 : vector<8x128xf32>
      %495 = vector.broadcast %20 : f32 to vector<8x128xf32>
      %496 = arith.mulf %362, %495 : vector<8x128xf32>
      %497 = vector.broadcast %21 : f32 to vector<8x128xf32>
      %498 = arith.mulf %364, %497 : vector<8x128xf32>
      %499 = vector.broadcast %22 : f32 to vector<8x128xf32>
      %500 = arith.mulf %374, %499 : vector<8x128xf32>
      %501 = vector.broadcast %23 : f32 to vector<8x128xf32>
      %502 = arith.mulf %376, %501 : vector<8x128xf32>
      %503 = vector.broadcast %24 : f32 to vector<8x128xf32>
      %504 = arith.mulf %380, %503 : vector<8x128xf32>
      %505 = vector.broadcast %25 : f32 to vector<8x128xf32>
      %506 = arith.mulf %382, %505 : vector<8x128xf32>
      %507 = arith.addf %492, %494 : vector<8x128xf32>
      %508 = arith.addf %496, %498 : vector<8x128xf32>
      %509 = arith.addf %500, %502 : vector<8x128xf32>
      %510 = arith.addf %504, %506 : vector<8x128xf32>
      %511 = arith.addf %507, %508 : vector<8x128xf32>
      %512 = arith.addf %509, %510 : vector<8x128xf32>
      %513 = arith.addf %511, %512 : vector<8x128xf32>
      %514 = vector.broadcast %35 : f32 to vector<8x128xf32>
      %515 = arith.addf %513, %514 : vector<8x128xf32>
      %516 = vector.broadcast %18 : f32 to vector<8x128xf32>
      %517 = arith.mulf %358, %516 : vector<8x128xf32>
      %518 = vector.broadcast %19 : f32 to vector<8x128xf32>
      %519 = arith.mulf %360, %518 : vector<8x128xf32>
      %520 = vector.broadcast %20 : f32 to vector<8x128xf32>
      %521 = arith.mulf %364, %520 : vector<8x128xf32>
      %522 = vector.broadcast %21 : f32 to vector<8x128xf32>
      %523 = arith.mulf %366, %522 : vector<8x128xf32>
      %524 = vector.broadcast %22 : f32 to vector<8x128xf32>
      %525 = arith.mulf %376, %524 : vector<8x128xf32>
      %526 = vector.broadcast %23 : f32 to vector<8x128xf32>
      %527 = arith.mulf %378, %526 : vector<8x128xf32>
      %528 = vector.broadcast %24 : f32 to vector<8x128xf32>
      %529 = arith.mulf %382, %528 : vector<8x128xf32>
      %530 = vector.broadcast %25 : f32 to vector<8x128xf32>
      %531 = arith.mulf %384, %530 : vector<8x128xf32>
      %532 = arith.addf %517, %519 : vector<8x128xf32>
      %533 = arith.addf %521, %523 : vector<8x128xf32>
      %534 = arith.addf %525, %527 : vector<8x128xf32>
      %535 = arith.addf %529, %531 : vector<8x128xf32>
      %536 = arith.addf %532, %533 : vector<8x128xf32>
      %537 = arith.addf %534, %535 : vector<8x128xf32>
      %538 = arith.addf %536, %537 : vector<8x128xf32>
      %539 = vector.broadcast %35 : f32 to vector<8x128xf32>
      %540 = arith.addf %538, %539 : vector<8x128xf32>
      %541 = vector.broadcast %18 : f32 to vector<8x128xf32>
      %542 = arith.mulf %362, %541 : vector<8x128xf32>
      %543 = vector.broadcast %19 : f32 to vector<8x128xf32>
      %544 = arith.mulf %364, %543 : vector<8x128xf32>
      %545 = vector.broadcast %20 : f32 to vector<8x128xf32>
      %546 = arith.mulf %368, %545 : vector<8x128xf32>
      %547 = vector.broadcast %21 : f32 to vector<8x128xf32>
      %548 = arith.mulf %370, %547 : vector<8x128xf32>
      %549 = vector.broadcast %22 : f32 to vector<8x128xf32>
      %550 = arith.mulf %380, %549 : vector<8x128xf32>
      %551 = vector.broadcast %23 : f32 to vector<8x128xf32>
      %552 = arith.mulf %382, %551 : vector<8x128xf32>
      %553 = vector.broadcast %24 : f32 to vector<8x128xf32>
      %554 = arith.mulf %386, %553 : vector<8x128xf32>
      %555 = vector.broadcast %25 : f32 to vector<8x128xf32>
      %556 = arith.mulf %388, %555 : vector<8x128xf32>
      %557 = arith.addf %542, %544 : vector<8x128xf32>
      %558 = arith.addf %546, %548 : vector<8x128xf32>
      %559 = arith.addf %550, %552 : vector<8x128xf32>
      %560 = arith.addf %554, %556 : vector<8x128xf32>
      %561 = arith.addf %557, %558 : vector<8x128xf32>
      %562 = arith.addf %559, %560 : vector<8x128xf32>
      %563 = arith.addf %561, %562 : vector<8x128xf32>
      %564 = vector.broadcast %35 : f32 to vector<8x128xf32>
      %565 = arith.addf %563, %564 : vector<8x128xf32>
      %566 = vector.broadcast %18 : f32 to vector<8x128xf32>
      %567 = arith.mulf %364, %566 : vector<8x128xf32>
      %568 = vector.broadcast %19 : f32 to vector<8x128xf32>
      %569 = arith.mulf %366, %568 : vector<8x128xf32>
      %570 = vector.broadcast %20 : f32 to vector<8x128xf32>
      %571 = arith.mulf %370, %570 : vector<8x128xf32>
      %572 = vector.broadcast %21 : f32 to vector<8x128xf32>
      %573 = arith.mulf %372, %572 : vector<8x128xf32>
      %574 = vector.broadcast %22 : f32 to vector<8x128xf32>
      %575 = arith.mulf %382, %574 : vector<8x128xf32>
      %576 = vector.broadcast %23 : f32 to vector<8x128xf32>
      %577 = arith.mulf %384, %576 : vector<8x128xf32>
      %578 = vector.broadcast %24 : f32 to vector<8x128xf32>
      %579 = arith.mulf %388, %578 : vector<8x128xf32>
      %580 = vector.broadcast %25 : f32 to vector<8x128xf32>
      %581 = arith.mulf %390, %580 : vector<8x128xf32>
      %582 = arith.addf %567, %569 : vector<8x128xf32>
      %583 = arith.addf %571, %573 : vector<8x128xf32>
      %584 = arith.addf %575, %577 : vector<8x128xf32>
      %585 = arith.addf %579, %581 : vector<8x128xf32>
      %586 = arith.addf %582, %583 : vector<8x128xf32>
      %587 = arith.addf %584, %585 : vector<8x128xf32>
      %588 = arith.addf %586, %587 : vector<8x128xf32>
      %589 = vector.broadcast %35 : f32 to vector<8x128xf32>
      %590 = arith.addf %588, %589 : vector<8x128xf32>
      %591 = vector.broadcast %26 : f32 to vector<8x128xf32>
      %592 = arith.mulf %356, %591 : vector<8x128xf32>
      %593 = vector.broadcast %27 : f32 to vector<8x128xf32>
      %594 = arith.mulf %358, %593 : vector<8x128xf32>
      %595 = vector.broadcast %28 : f32 to vector<8x128xf32>
      %596 = arith.mulf %362, %595 : vector<8x128xf32>
      %597 = vector.broadcast %29 : f32 to vector<8x128xf32>
      %598 = arith.mulf %364, %597 : vector<8x128xf32>
      %599 = vector.broadcast %30 : f32 to vector<8x128xf32>
      %600 = arith.mulf %374, %599 : vector<8x128xf32>
      %601 = vector.broadcast %31 : f32 to vector<8x128xf32>
      %602 = arith.mulf %376, %601 : vector<8x128xf32>
      %603 = vector.broadcast %32 : f32 to vector<8x128xf32>
      %604 = arith.mulf %380, %603 : vector<8x128xf32>
      %605 = vector.broadcast %33 : f32 to vector<8x128xf32>
      %606 = arith.mulf %382, %605 : vector<8x128xf32>
      %607 = arith.addf %592, %594 : vector<8x128xf32>
      %608 = arith.addf %596, %598 : vector<8x128xf32>
      %609 = arith.addf %600, %602 : vector<8x128xf32>
      %610 = arith.addf %604, %606 : vector<8x128xf32>
      %611 = arith.addf %607, %608 : vector<8x128xf32>
      %612 = arith.addf %609, %610 : vector<8x128xf32>
      %613 = arith.addf %611, %612 : vector<8x128xf32>
      %614 = vector.broadcast %36 : f32 to vector<8x128xf32>
      %615 = arith.addf %613, %614 : vector<8x128xf32>
      %616 = vector.broadcast %26 : f32 to vector<8x128xf32>
      %617 = arith.mulf %358, %616 : vector<8x128xf32>
      %618 = vector.broadcast %27 : f32 to vector<8x128xf32>
      %619 = arith.mulf %360, %618 : vector<8x128xf32>
      %620 = vector.broadcast %28 : f32 to vector<8x128xf32>
      %621 = arith.mulf %364, %620 : vector<8x128xf32>
      %622 = vector.broadcast %29 : f32 to vector<8x128xf32>
      %623 = arith.mulf %366, %622 : vector<8x128xf32>
      %624 = vector.broadcast %30 : f32 to vector<8x128xf32>
      %625 = arith.mulf %376, %624 : vector<8x128xf32>
      %626 = vector.broadcast %31 : f32 to vector<8x128xf32>
      %627 = arith.mulf %378, %626 : vector<8x128xf32>
      %628 = vector.broadcast %32 : f32 to vector<8x128xf32>
      %629 = arith.mulf %382, %628 : vector<8x128xf32>
      %630 = vector.broadcast %33 : f32 to vector<8x128xf32>
      %631 = arith.mulf %384, %630 : vector<8x128xf32>
      %632 = arith.addf %617, %619 : vector<8x128xf32>
      %633 = arith.addf %621, %623 : vector<8x128xf32>
      %634 = arith.addf %625, %627 : vector<8x128xf32>
      %635 = arith.addf %629, %631 : vector<8x128xf32>
      %636 = arith.addf %632, %633 : vector<8x128xf32>
      %637 = arith.addf %634, %635 : vector<8x128xf32>
      %638 = arith.addf %636, %637 : vector<8x128xf32>
      %639 = vector.broadcast %36 : f32 to vector<8x128xf32>
      %640 = arith.addf %638, %639 : vector<8x128xf32>
      %641 = vector.broadcast %26 : f32 to vector<8x128xf32>
      %642 = arith.mulf %362, %641 : vector<8x128xf32>
      %643 = vector.broadcast %27 : f32 to vector<8x128xf32>
      %644 = arith.mulf %364, %643 : vector<8x128xf32>
      %645 = vector.broadcast %28 : f32 to vector<8x128xf32>
      %646 = arith.mulf %368, %645 : vector<8x128xf32>
      %647 = vector.broadcast %29 : f32 to vector<8x128xf32>
      %648 = arith.mulf %370, %647 : vector<8x128xf32>
      %649 = vector.broadcast %30 : f32 to vector<8x128xf32>
      %650 = arith.mulf %380, %649 : vector<8x128xf32>
      %651 = vector.broadcast %31 : f32 to vector<8x128xf32>
      %652 = arith.mulf %382, %651 : vector<8x128xf32>
      %653 = vector.broadcast %32 : f32 to vector<8x128xf32>
      %654 = arith.mulf %386, %653 : vector<8x128xf32>
      %655 = vector.broadcast %33 : f32 to vector<8x128xf32>
      %656 = arith.mulf %388, %655 : vector<8x128xf32>
      %657 = arith.addf %642, %644 : vector<8x128xf32>
      %658 = arith.addf %646, %648 : vector<8x128xf32>
      %659 = arith.addf %650, %652 : vector<8x128xf32>
      %660 = arith.addf %654, %656 : vector<8x128xf32>
      %661 = arith.addf %657, %658 : vector<8x128xf32>
      %662 = arith.addf %659, %660 : vector<8x128xf32>
      %663 = arith.addf %661, %662 : vector<8x128xf32>
      %664 = vector.broadcast %36 : f32 to vector<8x128xf32>
      %665 = arith.addf %663, %664 : vector<8x128xf32>
      %666 = vector.broadcast %26 : f32 to vector<8x128xf32>
      %667 = arith.mulf %364, %666 : vector<8x128xf32>
      %668 = vector.broadcast %27 : f32 to vector<8x128xf32>
      %669 = arith.mulf %366, %668 : vector<8x128xf32>
      %670 = vector.broadcast %28 : f32 to vector<8x128xf32>
      %671 = arith.mulf %370, %670 : vector<8x128xf32>
      %672 = vector.broadcast %29 : f32 to vector<8x128xf32>
      %673 = arith.mulf %372, %672 : vector<8x128xf32>
      %674 = vector.broadcast %30 : f32 to vector<8x128xf32>
      %675 = arith.mulf %382, %674 : vector<8x128xf32>
      %676 = vector.broadcast %31 : f32 to vector<8x128xf32>
      %677 = arith.mulf %384, %676 : vector<8x128xf32>
      %678 = vector.broadcast %32 : f32 to vector<8x128xf32>
      %679 = arith.mulf %388, %678 : vector<8x128xf32>
      %680 = vector.broadcast %33 : f32 to vector<8x128xf32>
      %681 = arith.mulf %390, %680 : vector<8x128xf32>
      %682 = arith.addf %667, %669 : vector<8x128xf32>
      %683 = arith.addf %671, %673 : vector<8x128xf32>
      %684 = arith.addf %675, %677 : vector<8x128xf32>
      %685 = arith.addf %679, %681 : vector<8x128xf32>
      %686 = arith.addf %682, %683 : vector<8x128xf32>
      %687 = arith.addf %684, %685 : vector<8x128xf32>
      %688 = arith.addf %686, %687 : vector<8x128xf32>
      %689 = vector.broadcast %36 : f32 to vector<8x128xf32>
      %690 = arith.addf %688, %689 : vector<8x128xf32>
      %691 = vector.broadcast %37 : f32 to vector<8x128xf32>
      %692 = arith.mulf %90, %691 : vector<8x128xf32>
      %693 = vector.broadcast %38 : f32 to vector<8x128xf32>
      %694 = arith.mulf %92, %693 : vector<8x128xf32>
      %695 = vector.broadcast %39 : f32 to vector<8x128xf32>
      %696 = arith.mulf %94, %695 : vector<8x128xf32>
      %697 = vector.broadcast %40 : f32 to vector<8x128xf32>
      %698 = arith.mulf %98, %697 : vector<8x128xf32>
      %699 = vector.broadcast %41 : f32 to vector<8x128xf32>
      %700 = arith.mulf %100, %699 : vector<8x128xf32>
      %701 = vector.broadcast %42 : f32 to vector<8x128xf32>
      %702 = arith.mulf %102, %701 : vector<8x128xf32>
      %703 = vector.broadcast %43 : f32 to vector<8x128xf32>
      %704 = arith.mulf %106, %703 : vector<8x128xf32>
      %705 = vector.broadcast %44 : f32 to vector<8x128xf32>
      %706 = arith.mulf %108, %705 : vector<8x128xf32>
      %707 = vector.broadcast %45 : f32 to vector<8x128xf32>
      %708 = arith.mulf %110, %707 : vector<8x128xf32>
      %709 = arith.addf %692, %694 : vector<8x128xf32>
      %710 = arith.addf %696, %698 : vector<8x128xf32>
      %711 = arith.addf %700, %702 : vector<8x128xf32>
      %712 = arith.addf %704, %706 : vector<8x128xf32>
      %713 = arith.addf %709, %710 : vector<8x128xf32>
      %714 = arith.addf %711, %712 : vector<8x128xf32>
      %715 = arith.addf %713, %714 : vector<8x128xf32>
      %716 = arith.addf %715, %708 : vector<8x128xf32>
      %717 = vector.broadcast %55 : f32 to vector<8x128xf32>
      %718 = arith.addf %716, %717 : vector<8x128xf32>
      %719 = vector.broadcast %37 : f32 to vector<8x128xf32>
      %720 = arith.mulf %92, %719 : vector<8x128xf32>
      %721 = vector.broadcast %38 : f32 to vector<8x128xf32>
      %722 = arith.mulf %94, %721 : vector<8x128xf32>
      %723 = vector.broadcast %39 : f32 to vector<8x128xf32>
      %724 = arith.mulf %96, %723 : vector<8x128xf32>
      %725 = vector.broadcast %40 : f32 to vector<8x128xf32>
      %726 = arith.mulf %100, %725 : vector<8x128xf32>
      %727 = vector.broadcast %41 : f32 to vector<8x128xf32>
      %728 = arith.mulf %102, %727 : vector<8x128xf32>
      %729 = vector.broadcast %42 : f32 to vector<8x128xf32>
      %730 = arith.mulf %104, %729 : vector<8x128xf32>
      %731 = vector.broadcast %43 : f32 to vector<8x128xf32>
      %732 = arith.mulf %108, %731 : vector<8x128xf32>
      %733 = vector.broadcast %44 : f32 to vector<8x128xf32>
      %734 = arith.mulf %110, %733 : vector<8x128xf32>
      %735 = vector.broadcast %45 : f32 to vector<8x128xf32>
      %736 = arith.mulf %112, %735 : vector<8x128xf32>
      %737 = arith.addf %720, %722 : vector<8x128xf32>
      %738 = arith.addf %724, %726 : vector<8x128xf32>
      %739 = arith.addf %728, %730 : vector<8x128xf32>
      %740 = arith.addf %732, %734 : vector<8x128xf32>
      %741 = arith.addf %737, %738 : vector<8x128xf32>
      %742 = arith.addf %739, %740 : vector<8x128xf32>
      %743 = arith.addf %741, %742 : vector<8x128xf32>
      %744 = arith.addf %743, %736 : vector<8x128xf32>
      %745 = vector.broadcast %55 : f32 to vector<8x128xf32>
      %746 = arith.addf %744, %745 : vector<8x128xf32>
      %747 = vector.broadcast %37 : f32 to vector<8x128xf32>
      %748 = arith.mulf %98, %747 : vector<8x128xf32>
      %749 = vector.broadcast %38 : f32 to vector<8x128xf32>
      %750 = arith.mulf %100, %749 : vector<8x128xf32>
      %751 = vector.broadcast %39 : f32 to vector<8x128xf32>
      %752 = arith.mulf %102, %751 : vector<8x128xf32>
      %753 = vector.broadcast %40 : f32 to vector<8x128xf32>
      %754 = arith.mulf %106, %753 : vector<8x128xf32>
      %755 = vector.broadcast %41 : f32 to vector<8x128xf32>
      %756 = arith.mulf %108, %755 : vector<8x128xf32>
      %757 = vector.broadcast %42 : f32 to vector<8x128xf32>
      %758 = arith.mulf %110, %757 : vector<8x128xf32>
      %759 = vector.broadcast %43 : f32 to vector<8x128xf32>
      %760 = arith.mulf %114, %759 : vector<8x128xf32>
      %761 = vector.broadcast %44 : f32 to vector<8x128xf32>
      %762 = arith.mulf %116, %761 : vector<8x128xf32>
      %763 = vector.broadcast %45 : f32 to vector<8x128xf32>
      %764 = arith.mulf %118, %763 : vector<8x128xf32>
      %765 = arith.addf %748, %750 : vector<8x128xf32>
      %766 = arith.addf %752, %754 : vector<8x128xf32>
      %767 = arith.addf %756, %758 : vector<8x128xf32>
      %768 = arith.addf %760, %762 : vector<8x128xf32>
      %769 = arith.addf %765, %766 : vector<8x128xf32>
      %770 = arith.addf %767, %768 : vector<8x128xf32>
      %771 = arith.addf %769, %770 : vector<8x128xf32>
      %772 = arith.addf %771, %764 : vector<8x128xf32>
      %773 = vector.broadcast %55 : f32 to vector<8x128xf32>
      %774 = arith.addf %772, %773 : vector<8x128xf32>
      %775 = vector.broadcast %37 : f32 to vector<8x128xf32>
      %776 = arith.mulf %100, %775 : vector<8x128xf32>
      %777 = vector.broadcast %38 : f32 to vector<8x128xf32>
      %778 = arith.mulf %102, %777 : vector<8x128xf32>
      %779 = vector.broadcast %39 : f32 to vector<8x128xf32>
      %780 = arith.mulf %104, %779 : vector<8x128xf32>
      %781 = vector.broadcast %40 : f32 to vector<8x128xf32>
      %782 = arith.mulf %108, %781 : vector<8x128xf32>
      %783 = vector.broadcast %41 : f32 to vector<8x128xf32>
      %784 = arith.mulf %110, %783 : vector<8x128xf32>
      %785 = vector.broadcast %42 : f32 to vector<8x128xf32>
      %786 = arith.mulf %112, %785 : vector<8x128xf32>
      %787 = vector.broadcast %43 : f32 to vector<8x128xf32>
      %788 = arith.mulf %116, %787 : vector<8x128xf32>
      %789 = vector.broadcast %44 : f32 to vector<8x128xf32>
      %790 = arith.mulf %118, %789 : vector<8x128xf32>
      %791 = vector.broadcast %45 : f32 to vector<8x128xf32>
      %792 = arith.mulf %120, %791 : vector<8x128xf32>
      %793 = arith.addf %776, %778 : vector<8x128xf32>
      %794 = arith.addf %780, %782 : vector<8x128xf32>
      %795 = arith.addf %784, %786 : vector<8x128xf32>
      %796 = arith.addf %788, %790 : vector<8x128xf32>
      %797 = arith.addf %793, %794 : vector<8x128xf32>
      %798 = arith.addf %795, %796 : vector<8x128xf32>
      %799 = arith.addf %797, %798 : vector<8x128xf32>
      %800 = arith.addf %799, %792 : vector<8x128xf32>
      %801 = vector.broadcast %55 : f32 to vector<8x128xf32>
      %802 = arith.addf %800, %801 : vector<8x128xf32>
      %803 = vector.broadcast %46 : f32 to vector<8x128xf32>
      %804 = arith.mulf %90, %803 : vector<8x128xf32>
      %805 = vector.broadcast %47 : f32 to vector<8x128xf32>
      %806 = arith.mulf %92, %805 : vector<8x128xf32>
      %807 = vector.broadcast %48 : f32 to vector<8x128xf32>
      %808 = arith.mulf %94, %807 : vector<8x128xf32>
      %809 = vector.broadcast %49 : f32 to vector<8x128xf32>
      %810 = arith.mulf %98, %809 : vector<8x128xf32>
      %811 = vector.broadcast %50 : f32 to vector<8x128xf32>
      %812 = arith.mulf %100, %811 : vector<8x128xf32>
      %813 = vector.broadcast %51 : f32 to vector<8x128xf32>
      %814 = arith.mulf %102, %813 : vector<8x128xf32>
      %815 = vector.broadcast %52 : f32 to vector<8x128xf32>
      %816 = arith.mulf %106, %815 : vector<8x128xf32>
      %817 = vector.broadcast %53 : f32 to vector<8x128xf32>
      %818 = arith.mulf %108, %817 : vector<8x128xf32>
      %819 = vector.broadcast %54 : f32 to vector<8x128xf32>
      %820 = arith.mulf %110, %819 : vector<8x128xf32>
      %821 = arith.addf %804, %806 : vector<8x128xf32>
      %822 = arith.addf %808, %810 : vector<8x128xf32>
      %823 = arith.addf %812, %814 : vector<8x128xf32>
      %824 = arith.addf %816, %818 : vector<8x128xf32>
      %825 = arith.addf %821, %822 : vector<8x128xf32>
      %826 = arith.addf %823, %824 : vector<8x128xf32>
      %827 = arith.addf %825, %826 : vector<8x128xf32>
      %828 = arith.addf %827, %820 : vector<8x128xf32>
      %829 = vector.broadcast %56 : f32 to vector<8x128xf32>
      %830 = arith.addf %828, %829 : vector<8x128xf32>
      %831 = vector.broadcast %46 : f32 to vector<8x128xf32>
      %832 = arith.mulf %92, %831 : vector<8x128xf32>
      %833 = vector.broadcast %47 : f32 to vector<8x128xf32>
      %834 = arith.mulf %94, %833 : vector<8x128xf32>
      %835 = vector.broadcast %48 : f32 to vector<8x128xf32>
      %836 = arith.mulf %96, %835 : vector<8x128xf32>
      %837 = vector.broadcast %49 : f32 to vector<8x128xf32>
      %838 = arith.mulf %100, %837 : vector<8x128xf32>
      %839 = vector.broadcast %50 : f32 to vector<8x128xf32>
      %840 = arith.mulf %102, %839 : vector<8x128xf32>
      %841 = vector.broadcast %51 : f32 to vector<8x128xf32>
      %842 = arith.mulf %104, %841 : vector<8x128xf32>
      %843 = vector.broadcast %52 : f32 to vector<8x128xf32>
      %844 = arith.mulf %108, %843 : vector<8x128xf32>
      %845 = vector.broadcast %53 : f32 to vector<8x128xf32>
      %846 = arith.mulf %110, %845 : vector<8x128xf32>
      %847 = vector.broadcast %54 : f32 to vector<8x128xf32>
      %848 = arith.mulf %112, %847 : vector<8x128xf32>
      %849 = arith.addf %832, %834 : vector<8x128xf32>
      %850 = arith.addf %836, %838 : vector<8x128xf32>
      %851 = arith.addf %840, %842 : vector<8x128xf32>
      %852 = arith.addf %844, %846 : vector<8x128xf32>
      %853 = arith.addf %849, %850 : vector<8x128xf32>
      %854 = arith.addf %851, %852 : vector<8x128xf32>
      %855 = arith.addf %853, %854 : vector<8x128xf32>
      %856 = arith.addf %855, %848 : vector<8x128xf32>
      %857 = vector.broadcast %56 : f32 to vector<8x128xf32>
      %858 = arith.addf %856, %857 : vector<8x128xf32>
      %859 = vector.broadcast %46 : f32 to vector<8x128xf32>
      %860 = arith.mulf %98, %859 : vector<8x128xf32>
      %861 = vector.broadcast %47 : f32 to vector<8x128xf32>
      %862 = arith.mulf %100, %861 : vector<8x128xf32>
      %863 = vector.broadcast %48 : f32 to vector<8x128xf32>
      %864 = arith.mulf %102, %863 : vector<8x128xf32>
      %865 = vector.broadcast %49 : f32 to vector<8x128xf32>
      %866 = arith.mulf %106, %865 : vector<8x128xf32>
      %867 = vector.broadcast %50 : f32 to vector<8x128xf32>
      %868 = arith.mulf %108, %867 : vector<8x128xf32>
      %869 = vector.broadcast %51 : f32 to vector<8x128xf32>
      %870 = arith.mulf %110, %869 : vector<8x128xf32>
      %871 = vector.broadcast %52 : f32 to vector<8x128xf32>
      %872 = arith.mulf %114, %871 : vector<8x128xf32>
      %873 = vector.broadcast %53 : f32 to vector<8x128xf32>
      %874 = arith.mulf %116, %873 : vector<8x128xf32>
      %875 = vector.broadcast %54 : f32 to vector<8x128xf32>
      %876 = arith.mulf %118, %875 : vector<8x128xf32>
      %877 = arith.addf %860, %862 : vector<8x128xf32>
      %878 = arith.addf %864, %866 : vector<8x128xf32>
      %879 = arith.addf %868, %870 : vector<8x128xf32>
      %880 = arith.addf %872, %874 : vector<8x128xf32>
      %881 = arith.addf %877, %878 : vector<8x128xf32>
      %882 = arith.addf %879, %880 : vector<8x128xf32>
      %883 = arith.addf %881, %882 : vector<8x128xf32>
      %884 = arith.addf %883, %876 : vector<8x128xf32>
      %885 = vector.broadcast %56 : f32 to vector<8x128xf32>
      %886 = arith.addf %884, %885 : vector<8x128xf32>
      %887 = vector.broadcast %46 : f32 to vector<8x128xf32>
      %888 = arith.mulf %100, %887 : vector<8x128xf32>
      %889 = vector.broadcast %47 : f32 to vector<8x128xf32>
      %890 = arith.mulf %102, %889 : vector<8x128xf32>
      %891 = vector.broadcast %48 : f32 to vector<8x128xf32>
      %892 = arith.mulf %104, %891 : vector<8x128xf32>
      %893 = vector.broadcast %49 : f32 to vector<8x128xf32>
      %894 = arith.mulf %108, %893 : vector<8x128xf32>
      %895 = vector.broadcast %50 : f32 to vector<8x128xf32>
      %896 = arith.mulf %110, %895 : vector<8x128xf32>
      %897 = vector.broadcast %51 : f32 to vector<8x128xf32>
      %898 = arith.mulf %112, %897 : vector<8x128xf32>
      %899 = vector.broadcast %52 : f32 to vector<8x128xf32>
      %900 = arith.mulf %116, %899 : vector<8x128xf32>
      %901 = vector.broadcast %53 : f32 to vector<8x128xf32>
      %902 = arith.mulf %118, %901 : vector<8x128xf32>
      %903 = vector.broadcast %54 : f32 to vector<8x128xf32>
      %904 = arith.mulf %120, %903 : vector<8x128xf32>
      %905 = arith.addf %888, %890 : vector<8x128xf32>
      %906 = arith.addf %892, %894 : vector<8x128xf32>
      %907 = arith.addf %896, %898 : vector<8x128xf32>
      %908 = arith.addf %900, %902 : vector<8x128xf32>
      %909 = arith.addf %905, %906 : vector<8x128xf32>
      %910 = arith.addf %907, %908 : vector<8x128xf32>
      %911 = arith.addf %909, %910 : vector<8x128xf32>
      %912 = arith.addf %911, %904 : vector<8x128xf32>
      %913 = vector.broadcast %56 : f32 to vector<8x128xf32>
      %914 = arith.addf %912, %913 : vector<8x128xf32>
      %cst_23 = arith.constant 0.000000e+00 : f32
      %915 = vector.broadcast %cst_23 : f32 to vector<8x128xf32>
      %916 = arith.maximumf %718, %915 : vector<8x128xf32>
      %cst_24 = arith.constant 0.000000e+00 : f32
      %917 = vector.broadcast %cst_24 : f32 to vector<8x128xf32>
      %918 = arith.maximumf %746, %917 : vector<8x128xf32>
      %cst_25 = arith.constant 0.000000e+00 : f32
      %919 = vector.broadcast %cst_25 : f32 to vector<8x128xf32>
      %920 = arith.maximumf %774, %919 : vector<8x128xf32>
      %cst_26 = arith.constant 0.000000e+00 : f32
      %921 = vector.broadcast %cst_26 : f32 to vector<8x128xf32>
      %922 = arith.maximumf %802, %921 : vector<8x128xf32>
      %cst_27 = arith.constant 0.000000e+00 : f32
      %923 = vector.broadcast %cst_27 : f32 to vector<8x128xf32>
      %924 = arith.maximumf %830, %923 : vector<8x128xf32>
      %cst_28 = arith.constant 0.000000e+00 : f32
      %925 = vector.broadcast %cst_28 : f32 to vector<8x128xf32>
      %926 = arith.maximumf %858, %925 : vector<8x128xf32>
      %cst_29 = arith.constant 0.000000e+00 : f32
      %927 = vector.broadcast %cst_29 : f32 to vector<8x128xf32>
      %928 = arith.maximumf %886, %927 : vector<8x128xf32>
      %cst_30 = arith.constant 0.000000e+00 : f32
      %929 = vector.broadcast %cst_30 : f32 to vector<8x128xf32>
      %930 = arith.maximumf %914, %929 : vector<8x128xf32>
      %931 = vector.broadcast %57 : f32 to vector<8x128xf32>
      %932 = arith.mulf %916, %931 : vector<8x128xf32>
      %933 = vector.broadcast %58 : f32 to vector<8x128xf32>
      %934 = arith.mulf %924, %933 : vector<8x128xf32>
      %935 = arith.addf %932, %934 : vector<8x128xf32>
      %936 = vector.broadcast %63 : f32 to vector<8x128xf32>
      %937 = arith.addf %935, %936 : vector<8x128xf32>
      %938 = vector.broadcast %57 : f32 to vector<8x128xf32>
      %939 = arith.mulf %918, %938 : vector<8x128xf32>
      %940 = vector.broadcast %58 : f32 to vector<8x128xf32>
      %941 = arith.mulf %926, %940 : vector<8x128xf32>
      %942 = arith.addf %939, %941 : vector<8x128xf32>
      %943 = vector.broadcast %63 : f32 to vector<8x128xf32>
      %944 = arith.addf %942, %943 : vector<8x128xf32>
      %945 = vector.broadcast %57 : f32 to vector<8x128xf32>
      %946 = arith.mulf %920, %945 : vector<8x128xf32>
      %947 = vector.broadcast %58 : f32 to vector<8x128xf32>
      %948 = arith.mulf %928, %947 : vector<8x128xf32>
      %949 = arith.addf %946, %948 : vector<8x128xf32>
      %950 = vector.broadcast %63 : f32 to vector<8x128xf32>
      %951 = arith.addf %949, %950 : vector<8x128xf32>
      %952 = vector.broadcast %57 : f32 to vector<8x128xf32>
      %953 = arith.mulf %922, %952 : vector<8x128xf32>
      %954 = vector.broadcast %58 : f32 to vector<8x128xf32>
      %955 = arith.mulf %930, %954 : vector<8x128xf32>
      %956 = arith.addf %953, %955 : vector<8x128xf32>
      %957 = vector.broadcast %63 : f32 to vector<8x128xf32>
      %958 = arith.addf %956, %957 : vector<8x128xf32>
      %959 = vector.broadcast %59 : f32 to vector<8x128xf32>
      %960 = arith.mulf %916, %959 : vector<8x128xf32>
      %961 = vector.broadcast %60 : f32 to vector<8x128xf32>
      %962 = arith.mulf %924, %961 : vector<8x128xf32>
      %963 = arith.addf %960, %962 : vector<8x128xf32>
      %964 = vector.broadcast %64 : f32 to vector<8x128xf32>
      %965 = arith.addf %963, %964 : vector<8x128xf32>
      %966 = vector.broadcast %59 : f32 to vector<8x128xf32>
      %967 = arith.mulf %918, %966 : vector<8x128xf32>
      %968 = vector.broadcast %60 : f32 to vector<8x128xf32>
      %969 = arith.mulf %926, %968 : vector<8x128xf32>
      %970 = arith.addf %967, %969 : vector<8x128xf32>
      %971 = vector.broadcast %64 : f32 to vector<8x128xf32>
      %972 = arith.addf %970, %971 : vector<8x128xf32>
      %973 = vector.broadcast %59 : f32 to vector<8x128xf32>
      %974 = arith.mulf %920, %973 : vector<8x128xf32>
      %975 = vector.broadcast %60 : f32 to vector<8x128xf32>
      %976 = arith.mulf %928, %975 : vector<8x128xf32>
      %977 = arith.addf %974, %976 : vector<8x128xf32>
      %978 = vector.broadcast %64 : f32 to vector<8x128xf32>
      %979 = arith.addf %977, %978 : vector<8x128xf32>
      %980 = vector.broadcast %59 : f32 to vector<8x128xf32>
      %981 = arith.mulf %922, %980 : vector<8x128xf32>
      %982 = vector.broadcast %60 : f32 to vector<8x128xf32>
      %983 = arith.mulf %930, %982 : vector<8x128xf32>
      %984 = arith.addf %981, %983 : vector<8x128xf32>
      %985 = vector.broadcast %64 : f32 to vector<8x128xf32>
      %986 = arith.addf %984, %985 : vector<8x128xf32>
      %987 = vector.broadcast %61 : f32 to vector<8x128xf32>
      %988 = arith.mulf %916, %987 : vector<8x128xf32>
      %989 = vector.broadcast %62 : f32 to vector<8x128xf32>
      %990 = arith.mulf %924, %989 : vector<8x128xf32>
      %991 = arith.addf %988, %990 : vector<8x128xf32>
      %992 = vector.broadcast %65 : f32 to vector<8x128xf32>
      %993 = arith.addf %991, %992 : vector<8x128xf32>
      %994 = vector.broadcast %61 : f32 to vector<8x128xf32>
      %995 = arith.mulf %918, %994 : vector<8x128xf32>
      %996 = vector.broadcast %62 : f32 to vector<8x128xf32>
      %997 = arith.mulf %926, %996 : vector<8x128xf32>
      %998 = arith.addf %995, %997 : vector<8x128xf32>
      %999 = vector.broadcast %65 : f32 to vector<8x128xf32>
      %1000 = arith.addf %998, %999 : vector<8x128xf32>
      %1001 = vector.broadcast %61 : f32 to vector<8x128xf32>
      %1002 = arith.mulf %920, %1001 : vector<8x128xf32>
      %1003 = vector.broadcast %62 : f32 to vector<8x128xf32>
      %1004 = arith.mulf %928, %1003 : vector<8x128xf32>
      %1005 = arith.addf %1002, %1004 : vector<8x128xf32>
      %1006 = vector.broadcast %65 : f32 to vector<8x128xf32>
      %1007 = arith.addf %1005, %1006 : vector<8x128xf32>
      %1008 = vector.broadcast %61 : f32 to vector<8x128xf32>
      %1009 = arith.mulf %922, %1008 : vector<8x128xf32>
      %1010 = vector.broadcast %62 : f32 to vector<8x128xf32>
      %1011 = arith.mulf %930, %1010 : vector<8x128xf32>
      %1012 = arith.addf %1009, %1011 : vector<8x128xf32>
      %1013 = vector.broadcast %65 : f32 to vector<8x128xf32>
      %1014 = arith.addf %1012, %1013 : vector<8x128xf32>
      %cst_31 = arith.constant 0.000000e+00 : f32
      %1015 = vector.broadcast %cst_31 : f32 to vector<8x128xf32>
      %1016 = arith.maximumf %415, %1015 : vector<8x128xf32>
      %cst_32 = arith.constant 0.000000e+00 : f32
      %1017 = vector.broadcast %cst_32 : f32 to vector<8x128xf32>
      %1018 = arith.maximumf %440, %1017 : vector<8x128xf32>
      %cst_33 = arith.constant 0.000000e+00 : f32
      %1019 = vector.broadcast %cst_33 : f32 to vector<8x128xf32>
      %1020 = arith.maximumf %465, %1019 : vector<8x128xf32>
      %cst_34 = arith.constant 0.000000e+00 : f32
      %1021 = vector.broadcast %cst_34 : f32 to vector<8x128xf32>
      %1022 = arith.maximumf %490, %1021 : vector<8x128xf32>
      %cst_35 = arith.constant 0.000000e+00 : f32
      %1023 = vector.broadcast %cst_35 : f32 to vector<8x128xf32>
      %1024 = arith.maximumf %515, %1023 : vector<8x128xf32>
      %cst_36 = arith.constant 0.000000e+00 : f32
      %1025 = vector.broadcast %cst_36 : f32 to vector<8x128xf32>
      %1026 = arith.maximumf %540, %1025 : vector<8x128xf32>
      %cst_37 = arith.constant 0.000000e+00 : f32
      %1027 = vector.broadcast %cst_37 : f32 to vector<8x128xf32>
      %1028 = arith.maximumf %565, %1027 : vector<8x128xf32>
      %cst_38 = arith.constant 0.000000e+00 : f32
      %1029 = vector.broadcast %cst_38 : f32 to vector<8x128xf32>
      %1030 = arith.maximumf %590, %1029 : vector<8x128xf32>
      %cst_39 = arith.constant 0.000000e+00 : f32
      %1031 = vector.broadcast %cst_39 : f32 to vector<8x128xf32>
      %1032 = arith.maximumf %615, %1031 : vector<8x128xf32>
      %cst_40 = arith.constant 0.000000e+00 : f32
      %1033 = vector.broadcast %cst_40 : f32 to vector<8x128xf32>
      %1034 = arith.maximumf %640, %1033 : vector<8x128xf32>
      %cst_41 = arith.constant 0.000000e+00 : f32
      %1035 = vector.broadcast %cst_41 : f32 to vector<8x128xf32>
      %1036 = arith.maximumf %665, %1035 : vector<8x128xf32>
      %cst_42 = arith.constant 0.000000e+00 : f32
      %1037 = vector.broadcast %cst_42 : f32 to vector<8x128xf32>
      %1038 = arith.maximumf %690, %1037 : vector<8x128xf32>
      %1039 = vector.broadcast %66 : f32 to vector<8x128xf32>
      %1040 = arith.mulf %1016, %1039 : vector<8x128xf32>
      %1041 = vector.broadcast %67 : f32 to vector<8x128xf32>
      %1042 = arith.mulf %1024, %1041 : vector<8x128xf32>
      %1043 = vector.broadcast %68 : f32 to vector<8x128xf32>
      %1044 = arith.mulf %1032, %1043 : vector<8x128xf32>
      %1045 = arith.addf %1040, %1042 : vector<8x128xf32>
      %1046 = arith.addf %1045, %1044 : vector<8x128xf32>
      %1047 = vector.broadcast %72 : f32 to vector<8x128xf32>
      %1048 = arith.addf %1046, %1047 : vector<8x128xf32>
      %1049 = vector.broadcast %66 : f32 to vector<8x128xf32>
      %1050 = arith.mulf %1018, %1049 : vector<8x128xf32>
      %1051 = vector.broadcast %67 : f32 to vector<8x128xf32>
      %1052 = arith.mulf %1026, %1051 : vector<8x128xf32>
      %1053 = vector.broadcast %68 : f32 to vector<8x128xf32>
      %1054 = arith.mulf %1034, %1053 : vector<8x128xf32>
      %1055 = arith.addf %1050, %1052 : vector<8x128xf32>
      %1056 = arith.addf %1055, %1054 : vector<8x128xf32>
      %1057 = vector.broadcast %72 : f32 to vector<8x128xf32>
      %1058 = arith.addf %1056, %1057 : vector<8x128xf32>
      %1059 = vector.broadcast %66 : f32 to vector<8x128xf32>
      %1060 = arith.mulf %1020, %1059 : vector<8x128xf32>
      %1061 = vector.broadcast %67 : f32 to vector<8x128xf32>
      %1062 = arith.mulf %1028, %1061 : vector<8x128xf32>
      %1063 = vector.broadcast %68 : f32 to vector<8x128xf32>
      %1064 = arith.mulf %1036, %1063 : vector<8x128xf32>
      %1065 = arith.addf %1060, %1062 : vector<8x128xf32>
      %1066 = arith.addf %1065, %1064 : vector<8x128xf32>
      %1067 = vector.broadcast %72 : f32 to vector<8x128xf32>
      %1068 = arith.addf %1066, %1067 : vector<8x128xf32>
      %1069 = vector.broadcast %66 : f32 to vector<8x128xf32>
      %1070 = arith.mulf %1022, %1069 : vector<8x128xf32>
      %1071 = vector.broadcast %67 : f32 to vector<8x128xf32>
      %1072 = arith.mulf %1030, %1071 : vector<8x128xf32>
      %1073 = vector.broadcast %68 : f32 to vector<8x128xf32>
      %1074 = arith.mulf %1038, %1073 : vector<8x128xf32>
      %1075 = arith.addf %1070, %1072 : vector<8x128xf32>
      %1076 = arith.addf %1075, %1074 : vector<8x128xf32>
      %1077 = vector.broadcast %72 : f32 to vector<8x128xf32>
      %1078 = arith.addf %1076, %1077 : vector<8x128xf32>
      %1079 = vector.broadcast %69 : f32 to vector<8x128xf32>
      %1080 = arith.mulf %1016, %1079 : vector<8x128xf32>
      %1081 = vector.broadcast %70 : f32 to vector<8x128xf32>
      %1082 = arith.mulf %1024, %1081 : vector<8x128xf32>
      %1083 = vector.broadcast %71 : f32 to vector<8x128xf32>
      %1084 = arith.mulf %1032, %1083 : vector<8x128xf32>
      %1085 = arith.addf %1080, %1082 : vector<8x128xf32>
      %1086 = arith.addf %1085, %1084 : vector<8x128xf32>
      %1087 = vector.broadcast %73 : f32 to vector<8x128xf32>
      %1088 = arith.addf %1086, %1087 : vector<8x128xf32>
      %1089 = vector.broadcast %69 : f32 to vector<8x128xf32>
      %1090 = arith.mulf %1018, %1089 : vector<8x128xf32>
      %1091 = vector.broadcast %70 : f32 to vector<8x128xf32>
      %1092 = arith.mulf %1026, %1091 : vector<8x128xf32>
      %1093 = vector.broadcast %71 : f32 to vector<8x128xf32>
      %1094 = arith.mulf %1034, %1093 : vector<8x128xf32>
      %1095 = arith.addf %1090, %1092 : vector<8x128xf32>
      %1096 = arith.addf %1095, %1094 : vector<8x128xf32>
      %1097 = vector.broadcast %73 : f32 to vector<8x128xf32>
      %1098 = arith.addf %1096, %1097 : vector<8x128xf32>
      %1099 = vector.broadcast %69 : f32 to vector<8x128xf32>
      %1100 = arith.mulf %1020, %1099 : vector<8x128xf32>
      %1101 = vector.broadcast %70 : f32 to vector<8x128xf32>
      %1102 = arith.mulf %1028, %1101 : vector<8x128xf32>
      %1103 = vector.broadcast %71 : f32 to vector<8x128xf32>
      %1104 = arith.mulf %1036, %1103 : vector<8x128xf32>
      %1105 = arith.addf %1100, %1102 : vector<8x128xf32>
      %1106 = arith.addf %1105, %1104 : vector<8x128xf32>
      %1107 = vector.broadcast %73 : f32 to vector<8x128xf32>
      %1108 = arith.addf %1106, %1107 : vector<8x128xf32>
      %1109 = vector.broadcast %69 : f32 to vector<8x128xf32>
      %1110 = arith.mulf %1022, %1109 : vector<8x128xf32>
      %1111 = vector.broadcast %70 : f32 to vector<8x128xf32>
      %1112 = arith.mulf %1030, %1111 : vector<8x128xf32>
      %1113 = vector.broadcast %71 : f32 to vector<8x128xf32>
      %1114 = arith.mulf %1038, %1113 : vector<8x128xf32>
      %1115 = arith.addf %1110, %1112 : vector<8x128xf32>
      %1116 = arith.addf %1115, %1114 : vector<8x128xf32>
      %1117 = vector.broadcast %73 : f32 to vector<8x128xf32>
      %1118 = arith.addf %1116, %1117 : vector<8x128xf32>
      %1119 = arith.maximumf %1048, %1058 : vector<8x128xf32>
      %1120 = arith.maximumf %1068, %1078 : vector<8x128xf32>
      %1121 = arith.maximumf %1119, %1120 : vector<8x128xf32>
      %1122 = arith.maximumf %1088, %1098 : vector<8x128xf32>
      %1123 = arith.maximumf %1108, %1118 : vector<8x128xf32>
      %1124 = arith.maximumf %1122, %1123 : vector<8x128xf32>
      %1125 = vector.broadcast %74 : f32 to vector<8x128xf32>
      %1126 = arith.mulf %1121, %1125 : vector<8x128xf32>
      %1127 = vector.broadcast %75 : f32 to vector<8x128xf32>
      %1128 = arith.mulf %1124, %1127 : vector<8x128xf32>
      %1129 = arith.addf %1126, %1128 : vector<8x128xf32>
      %1130 = vector.broadcast %80 : f32 to vector<8x128xf32>
      %1131 = arith.addf %1129, %1130 : vector<8x128xf32>
      %1132 = vector.broadcast %76 : f32 to vector<8x128xf32>
      %1133 = arith.mulf %1121, %1132 : vector<8x128xf32>
      %1134 = vector.broadcast %77 : f32 to vector<8x128xf32>
      %1135 = arith.mulf %1124, %1134 : vector<8x128xf32>
      %1136 = arith.addf %1133, %1135 : vector<8x128xf32>
      %1137 = vector.broadcast %81 : f32 to vector<8x128xf32>
      %1138 = arith.addf %1136, %1137 : vector<8x128xf32>
      %1139 = vector.broadcast %78 : f32 to vector<8x128xf32>
      %1140 = arith.mulf %1121, %1139 : vector<8x128xf32>
      %1141 = vector.broadcast %79 : f32 to vector<8x128xf32>
      %1142 = arith.mulf %1124, %1141 : vector<8x128xf32>
      %1143 = arith.addf %1140, %1142 : vector<8x128xf32>
      %1144 = vector.broadcast %82 : f32 to vector<8x128xf32>
      %1145 = arith.addf %1143, %1144 : vector<8x128xf32>
      %1146 = arith.index_cast %85 : i32 to index
      %c0_43 = arith.constant 0 : index
      %c0_44 = arith.constant 0 : index
      %c0_45 = arith.constant 0 : index
      %1147 = vector.load %arg3[%1146, %c0_43, %c0_44, %c0_45] : memref<2x6x8x128xf32, #tpu.memory_space<vmem>>, vector<1x1x8x128xf32>
      %1148 = vector.shape_cast %1147 : vector<1x1x8x128xf32> to vector<8x128xf32>
      %1149 = vector.shape_cast %1131 : vector<8x128xf32> to vector<1x1x8x128xf32>
      tpu.vector_store %arg3[%1146, %c0_43, %c0_44, %c0_45], %1149 {strides = array<i32>} : memref<2x6x8x128xf32, #tpu.memory_space<vmem>>, vector<1x1x8x128xf32>,
      %1150 = arith.index_cast %85 : i32 to index
      %c1_46 = arith.constant 1 : index
      %c0_47 = arith.constant 0 : index
      %c0_48 = arith.constant 0 : index
      %1151 = vector.load %arg3[%1150, %c1_46, %c0_47, %c0_48] : memref<2x6x8x128xf32, #tpu.memory_space<vmem>>, vector<1x1x8x128xf32>
      %1152 = vector.shape_cast %1151 : vector<1x1x8x128xf32> to vector<8x128xf32>
      %1153 = vector.shape_cast %1138 : vector<8x128xf32> to vector<1x1x8x128xf32>
      tpu.vector_store %arg3[%1150, %c1_46, %c0_47, %c0_48], %1153 {strides = array<i32>} : memref<2x6x8x128xf32, #tpu.memory_space<vmem>>, vector<1x1x8x128xf32>,
      %1154 = arith.index_cast %85 : i32 to index
      %c2_49 = arith.constant 2 : index
      %c0_50 = arith.constant 0 : index
      %c0_51 = arith.constant 0 : index
      %1155 = vector.load %arg3[%1154, %c2_49, %c0_50, %c0_51] : memref<2x6x8x128xf32, #tpu.memory_space<vmem>>, vector<1x1x8x128xf32>
      %1156 = vector.shape_cast %1155 : vector<1x1x8x128xf32> to vector<8x128xf32>
      %1157 = vector.shape_cast %1145 : vector<8x128xf32> to vector<1x1x8x128xf32>
      tpu.vector_store %arg3[%1154, %c2_49, %c0_50, %c0_51], %1157 {strides = array<i32>} : memref<2x6x8x128xf32, #tpu.memory_space<vmem>>, vector<1x1x8x128xf32>,
      %cst_52 = arith.constant 0.000000e+00 : f32
      %1158 = vector.broadcast %cst_52 : f32 to vector<8x128xf32>
      %1159 = arith.maximumf %937, %1158 : vector<8x128xf32>
      %cst_53 = arith.constant 0.000000e+00 : f32
      %1160 = vector.broadcast %cst_53 : f32 to vector<8x128xf32>
      %1161 = arith.maximumf %944, %1160 : vector<8x128xf32>
      %cst_54 = arith.constant 0.000000e+00 : f32
      %1162 = vector.broadcast %cst_54 : f32 to vector<8x128xf32>
      %1163 = arith.maximumf %951, %1162 : vector<8x128xf32>
      %cst_55 = arith.constant 0.000000e+00 : f32
      %1164 = vector.broadcast %cst_55 : f32 to vector<8x128xf32>
      %1165 = arith.maximumf %958, %1164 : vector<8x128xf32>
      %cst_56 = arith.constant 0.000000e+00 : f32
      %1166 = vector.broadcast %cst_56 : f32 to vector<8x128xf32>
      %1167 = arith.maximumf %965, %1166 : vector<8x128xf32>
      %cst_57 = arith.constant 0.000000e+00 : f32
      %1168 = vector.broadcast %cst_57 : f32 to vector<8x128xf32>
      %1169 = arith.maximumf %972, %1168 : vector<8x128xf32>
      %cst_58 = arith.constant 0.000000e+00 : f32
      %1170 = vector.broadcast %cst_58 : f32 to vector<8x128xf32>
      %1171 = arith.maximumf %979, %1170 : vector<8x128xf32>
      %cst_59 = arith.constant 0.000000e+00 : f32
      %1172 = vector.broadcast %cst_59 : f32 to vector<8x128xf32>
      %1173 = arith.maximumf %986, %1172 : vector<8x128xf32>
      %cst_60 = arith.constant 0.000000e+00 : f32
      %1174 = vector.broadcast %cst_60 : f32 to vector<8x128xf32>
      %1175 = arith.maximumf %993, %1174 : vector<8x128xf32>
      %cst_61 = arith.constant 0.000000e+00 : f32
      %1176 = vector.broadcast %cst_61 : f32 to vector<8x128xf32>
      %1177 = arith.maximumf %1000, %1176 : vector<8x128xf32>
      %cst_62 = arith.constant 0.000000e+00 : f32
      %1178 = vector.broadcast %cst_62 : f32 to vector<8x128xf32>
      %1179 = arith.maximumf %1007, %1178 : vector<8x128xf32>
      %cst_63 = arith.constant 0.000000e+00 : f32
      %1180 = vector.broadcast %cst_63 : f32 to vector<8x128xf32>
      %1181 = arith.maximumf %1014, %1180 : vector<8x128xf32>
      %1182 = vector.broadcast %66 : f32 to vector<8x128xf32>
      %1183 = arith.mulf %1159, %1182 : vector<8x128xf32>
      %1184 = vector.broadcast %67 : f32 to vector<8x128xf32>
      %1185 = arith.mulf %1167, %1184 : vector<8x128xf32>
      %1186 = vector.broadcast %68 : f32 to vector<8x128xf32>
      %1187 = arith.mulf %1175, %1186 : vector<8x128xf32>
      %1188 = arith.addf %1183, %1185 : vector<8x128xf32>
      %1189 = arith.addf %1188, %1187 : vector<8x128xf32>
      %1190 = vector.broadcast %72 : f32 to vector<8x128xf32>
      %1191 = arith.addf %1189, %1190 : vector<8x128xf32>
      %1192 = vector.broadcast %66 : f32 to vector<8x128xf32>
      %1193 = arith.mulf %1161, %1192 : vector<8x128xf32>
      %1194 = vector.broadcast %67 : f32 to vector<8x128xf32>
      %1195 = arith.mulf %1169, %1194 : vector<8x128xf32>
      %1196 = vector.broadcast %68 : f32 to vector<8x128xf32>
      %1197 = arith.mulf %1177, %1196 : vector<8x128xf32>
      %1198 = arith.addf %1193, %1195 : vector<8x128xf32>
      %1199 = arith.addf %1198, %1197 : vector<8x128xf32>
      %1200 = vector.broadcast %72 : f32 to vector<8x128xf32>
      %1201 = arith.addf %1199, %1200 : vector<8x128xf32>
      %1202 = vector.broadcast %66 : f32 to vector<8x128xf32>
      %1203 = arith.mulf %1163, %1202 : vector<8x128xf32>
      %1204 = vector.broadcast %67 : f32 to vector<8x128xf32>
      %1205 = arith.mulf %1171, %1204 : vector<8x128xf32>
      %1206 = vector.broadcast %68 : f32 to vector<8x128xf32>
      %1207 = arith.mulf %1179, %1206 : vector<8x128xf32>
      %1208 = arith.addf %1203, %1205 : vector<8x128xf32>
      %1209 = arith.addf %1208, %1207 : vector<8x128xf32>
      %1210 = vector.broadcast %72 : f32 to vector<8x128xf32>
      %1211 = arith.addf %1209, %1210 : vector<8x128xf32>
      %1212 = vector.broadcast %66 : f32 to vector<8x128xf32>
      %1213 = arith.mulf %1165, %1212 : vector<8x128xf32>
      %1214 = vector.broadcast %67 : f32 to vector<8x128xf32>
      %1215 = arith.mulf %1173, %1214 : vector<8x128xf32>
      %1216 = vector.broadcast %68 : f32 to vector<8x128xf32>
      %1217 = arith.mulf %1181, %1216 : vector<8x128xf32>
      %1218 = arith.addf %1213, %1215 : vector<8x128xf32>
      %1219 = arith.addf %1218, %1217 : vector<8x128xf32>
      %1220 = vector.broadcast %72 : f32 to vector<8x128xf32>
      %1221 = arith.addf %1219, %1220 : vector<8x128xf32>
      %1222 = vector.broadcast %69 : f32 to vector<8x128xf32>
      %1223 = arith.mulf %1159, %1222 : vector<8x128xf32>
      %1224 = vector.broadcast %70 : f32 to vector<8x128xf32>
      %1225 = arith.mulf %1167, %1224 : vector<8x128xf32>
      %1226 = vector.broadcast %71 : f32 to vector<8x128xf32>
      %1227 = arith.mulf %1175, %1226 : vector<8x128xf32>
      %1228 = arith.addf %1223, %1225 : vector<8x128xf32>
      %1229 = arith.addf %1228, %1227 : vector<8x128xf32>
      %1230 = vector.broadcast %73 : f32 to vector<8x128xf32>
      %1231 = arith.addf %1229, %1230 : vector<8x128xf32>
      %1232 = vector.broadcast %69 : f32 to vector<8x128xf32>
      %1233 = arith.mulf %1161, %1232 : vector<8x128xf32>
      %1234 = vector.broadcast %70 : f32 to vector<8x128xf32>
      %1235 = arith.mulf %1169, %1234 : vector<8x128xf32>
      %1236 = vector.broadcast %71 : f32 to vector<8x128xf32>
      %1237 = arith.mulf %1177, %1236 : vector<8x128xf32>
      %1238 = arith.addf %1233, %1235 : vector<8x128xf32>
      %1239 = arith.addf %1238, %1237 : vector<8x128xf32>
      %1240 = vector.broadcast %73 : f32 to vector<8x128xf32>
      %1241 = arith.addf %1239, %1240 : vector<8x128xf32>
      %1242 = vector.broadcast %69 : f32 to vector<8x128xf32>
      %1243 = arith.mulf %1163, %1242 : vector<8x128xf32>
      %1244 = vector.broadcast %70 : f32 to vector<8x128xf32>
      %1245 = arith.mulf %1171, %1244 : vector<8x128xf32>
      %1246 = vector.broadcast %71 : f32 to vector<8x128xf32>
      %1247 = arith.mulf %1179, %1246 : vector<8x128xf32>
      %1248 = arith.addf %1243, %1245 : vector<8x128xf32>
      %1249 = arith.addf %1248, %1247 : vector<8x128xf32>
      %1250 = vector.broadcast %73 : f32 to vector<8x128xf32>
      %1251 = arith.addf %1249, %1250 : vector<8x128xf32>
      %1252 = vector.broadcast %69 : f32 to vector<8x128xf32>
      %1253 = arith.mulf %1165, %1252 : vector<8x128xf32>
      %1254 = vector.broadcast %70 : f32 to vector<8x128xf32>
      %1255 = arith.mulf %1173, %1254 : vector<8x128xf32>
      %1256 = vector.broadcast %71 : f32 to vector<8x128xf32>
      %1257 = arith.mulf %1181, %1256 : vector<8x128xf32>
      %1258 = arith.addf %1253, %1255 : vector<8x128xf32>
      %1259 = arith.addf %1258, %1257 : vector<8x128xf32>
      %1260 = vector.broadcast %73 : f32 to vector<8x128xf32>
      %1261 = arith.addf %1259, %1260 : vector<8x128xf32>
      %1262 = arith.maximumf %1191, %1201 : vector<8x128xf32>
      %1263 = arith.maximumf %1211, %1221 : vector<8x128xf32>
      %1264 = arith.maximumf %1262, %1263 : vector<8x128xf32>
      %1265 = arith.maximumf %1231, %1241 : vector<8x128xf32>
      %1266 = arith.maximumf %1251, %1261 : vector<8x128xf32>
      %1267 = arith.maximumf %1265, %1266 : vector<8x128xf32>
      %1268 = vector.broadcast %74 : f32 to vector<8x128xf32>
      %1269 = arith.mulf %1264, %1268 : vector<8x128xf32>
      %1270 = vector.broadcast %75 : f32 to vector<8x128xf32>
      %1271 = arith.mulf %1267, %1270 : vector<8x128xf32>
      %1272 = arith.addf %1269, %1271 : vector<8x128xf32>
      %1273 = vector.broadcast %80 : f32 to vector<8x128xf32>
      %1274 = arith.addf %1272, %1273 : vector<8x128xf32>
      %1275 = vector.broadcast %76 : f32 to vector<8x128xf32>
      %1276 = arith.mulf %1264, %1275 : vector<8x128xf32>
      %1277 = vector.broadcast %77 : f32 to vector<8x128xf32>
      %1278 = arith.mulf %1267, %1277 : vector<8x128xf32>
      %1279 = arith.addf %1276, %1278 : vector<8x128xf32>
      %1280 = vector.broadcast %81 : f32 to vector<8x128xf32>
      %1281 = arith.addf %1279, %1280 : vector<8x128xf32>
      %1282 = vector.broadcast %78 : f32 to vector<8x128xf32>
      %1283 = arith.mulf %1264, %1282 : vector<8x128xf32>
      %1284 = vector.broadcast %79 : f32 to vector<8x128xf32>
      %1285 = arith.mulf %1267, %1284 : vector<8x128xf32>
      %1286 = arith.addf %1283, %1285 : vector<8x128xf32>
      %1287 = vector.broadcast %82 : f32 to vector<8x128xf32>
      %1288 = arith.addf %1286, %1287 : vector<8x128xf32>
      %1289 = arith.index_cast %85 : i32 to index
      %c3_64 = arith.constant 3 : index
      %c0_65 = arith.constant 0 : index
      %c0_66 = arith.constant 0 : index
      %1290 = vector.load %arg3[%1289, %c3_64, %c0_65, %c0_66] : memref<2x6x8x128xf32, #tpu.memory_space<vmem>>, vector<1x1x8x128xf32>
      %1291 = vector.shape_cast %1290 : vector<1x1x8x128xf32> to vector<8x128xf32>
      %1292 = vector.shape_cast %1274 : vector<8x128xf32> to vector<1x1x8x128xf32>
      tpu.vector_store %arg3[%1289, %c3_64, %c0_65, %c0_66], %1292 {strides = array<i32>} : memref<2x6x8x128xf32, #tpu.memory_space<vmem>>, vector<1x1x8x128xf32>,
      %1293 = arith.index_cast %85 : i32 to index
      %c4_67 = arith.constant 4 : index
      %c0_68 = arith.constant 0 : index
      %c0_69 = arith.constant 0 : index
      %1294 = vector.load %arg3[%1293, %c4_67, %c0_68, %c0_69] : memref<2x6x8x128xf32, #tpu.memory_space<vmem>>, vector<1x1x8x128xf32>
      %1295 = vector.shape_cast %1294 : vector<1x1x8x128xf32> to vector<8x128xf32>
      %1296 = vector.shape_cast %1281 : vector<8x128xf32> to vector<1x1x8x128xf32>
      tpu.vector_store %arg3[%1293, %c4_67, %c0_68, %c0_69], %1296 {strides = array<i32>} : memref<2x6x8x128xf32, #tpu.memory_space<vmem>>, vector<1x1x8x128xf32>,
      %1297 = arith.index_cast %85 : i32 to index
      %c5_70 = arith.constant 5 : index
      %c0_71 = arith.constant 0 : index
      %c0_72 = arith.constant 0 : index
      %1298 = vector.load %arg3[%1297, %c5_70, %c0_71, %c0_72] : memref<2x6x8x128xf32, #tpu.memory_space<vmem>>, vector<1x1x8x128xf32>
      %1299 = vector.shape_cast %1298 : vector<1x1x8x128xf32> to vector<8x128xf32>
      %1300 = vector.shape_cast %1288 : vector<8x128xf32> to vector<1x1x8x128xf32>
      tpu.vector_store %arg3[%1297, %c5_70, %c0_71, %c0_72], %1300 {strides = array<i32>} : memref<2x6x8x128xf32, #tpu.memory_space<vmem>>, vector<1x1x8x128xf32>,
    }
    %c2_i32_0 = arith.constant 2 : i32
    return
  }
  func.func @transform_0(%arg0: i32) -> (i32, i32, i32, i32) {
    %c0_i32 = arith.constant 0 : i32
    %c0_i32_0 = arith.constant 0 : i32
    %c0_i32_1 = arith.constant 0 : i32
    %c0_i32_2 = arith.constant 0 : i32
    return %arg0, %c0_i32, %c0_i32_0, %c0_i32_1 : i32, i32, i32, i32
  }
  func.func @transform_1(%arg0: i32) -> i32 {
    %c0_i32 = arith.constant 0 : i32
    %c0_i32_0 = arith.constant 0 : i32
    return %c0_i32 : i32
  }
  func.func @transform_2(%arg0: i32) -> (i32, i32, i32, i32) {
    %c0_i32 = arith.constant 0 : i32
    %c0_i32_0 = arith.constant 0 : i32
    %c0_i32_1 = arith.constant 0 : i32
    %c0_i32_2 = arith.constant 0 : i32
    return %arg0, %c0_i32, %c0_i32_0, %c0_i32_1 : i32, i32, i32, i32
  }
}

</mosaic_0001>

<bundles_post_ra>
// kernel: multiple_conv_forward.1
= control target key start
LH: loop header
LB: loop body
LE: loop exit
PB: predicated region body
PF: predicated region fallthrough
CT: control target
= control target key end

     0   :  { %s2443_s0 = inlined_call_operand.vmem [shape: f32[4,16,8,128], index: 0, kind: input, shape index: {}]   ;;  %s2444_s1 = inlined_call_operand.vmem [shape: f32[83], index: 1, kind: input, shape index: {}]   ;;  %s2445_s2 = inlined_call_operand.vmem [shape: f32[4,6,8,128], index: 2, kind: output, shape index: {}]  }
   0x1   :  { %2452 = sst [smem:[#allocation77_spill]] %s2443_s0 }
   0x2   :  { %2453 = sst [smem:[#allocation78_spill]] %s2444_s1 }
   0x3   :  { %2454 = sst [smem:[#allocation79_spill]] %s2445_s2 }
   0x4   :  { %7 = vsyncpa [#allocation3], 0  ;;  %s1364_s9 = smov 0  }
   0x5 LB: > { %2455 = sst [smem:[#allocation5_spill]] %s1342_s9  ;;  %s1178_s10 = sadd.s32 4294967295, %s1342_s9   ;;  %s1342_s9 = sphi %s1364_s9, %s13_s9  }
   0x6   : > { %p1180_p0 = scmp.ge.s32.totalorder %s1342_s9, 1  ;;  %p91_p1 = scmp.lt.s32.totalorder %s1342_s9, 3 }
   0x7   : > { %s2456_s1 = sld [smem:[#allocation78_spill]]  ;;  %p1379_p3 = scmp.eq.s32.totalorder %s1178_s10, 0 }
   0x8   : > { %p1375_p2 = pnand %p1180_p0, %p91_p1 }
   0xa   : > { %p1286_p4 = pneg %p1375_p2 }
   0xc   : > { %p1287_p5 = pnand %p1379_p3, %p1286_p4 }
   0xd   : > { %s104_s13 = sshll.u32 %s2456_s1, 4  ;;  %s105_s13 = int_to_ptr.vmem [resolvable:$true] %s104_s13 }
   0xe   : > { %s1313_s16 = scalar_lea.vmem %s105_s13, 16  ;;  %p1315_p7 = pneg %p1287_p5 }
   0xf   : > { %p1314_p6 = scmp.ne.s32.totalorder %s105_s13, %s1313_s16  ;;  %p1321_p10 = scmp.lt.s32.totalorder %s105_s13, %s105_s13 }
  0x10   : > { %p1322_p11 = scmp.lt.s32.totalorder %s1313_s16, %s1313_s16 }
  0x11   : > { %p1316_p8 = pnand %p1315_p7, %p1314_p6 }
  0x12   : > { %p1323_p12 = por %p1322_p11, %p1321_p10 }
  0x13   : > { %p1317_p9 = pneg %p1316_p8 }
  0x15   : > { %p1324_p13 = pnand %p1323_p12, %p1317_p9 }
  0x17   : > { %1327 = shalt.err (!%p1324_p13)
}
  0x18   : > { %s1348_s17 = smov [#allocation2]   ;;  %127 = sbr.rel (%p1375_p2) target bundleno = 333 (0x14d), region = 28 }
  0x19   : > { %1289 = dma.vmem_to_smem (!%p1287_p5), %s105_s13, 16, %s1348_s17, [#allocation3]  }
  0x1f   : > { %1337 = dma.done.wait (%p1379_p3), [#allocation3], 16  }
  0x20   : > { %1339 = vsyncadd (%p1379_p3), [#allocation3], 4294967280 }
  0x21   : > { %133 = sfence }
  0x22   : > { %s1185_s18 = sshll.u32 %s1178_s10, 1  ;;  %s1393_s19 = sld [smem:[#allocation2]] }
  0x23   : > { %p153_p0 = scmp.lt.s32.totalorder %s1185_s18, 3  ;;  %s1395_s20 = sld [smem:[#allocation2 + $0x1]] }
  0x24   : > { %s1397_s21 = sld [smem:[#allocation2 + $0x2]]  ;;  %s1399_s22 = sld [smem:[#allocation2 + $0x3]] }
  0x25   : > { %s2605_s18 = smov (!%p153_p0, %s1185_s18), 3  ;;  %s1401_s23 = sld [smem:[#allocation2 + $0x4]] }
  0x26   : > { %s1403_s24 = sld [smem:[#allocation2 + $0x5]]  ;;  %s1280_s25 = sshll.u32 %s2605_s18, 7 }
  0x27   : > { %s1281_s26 = smul.u32 48, %s2605_s18  ;;  %s2460_s0 = sld [smem:[#allocation77_spill]] }
  0x28   : > { %2459 = sst [smem:[#allocation6_spill]] %s1393_s19  ;;  %s1410_s30 = sld [smem:[#allocation2 + $0x6]] }
  0x29   : > { %s2461_s2 = sld [smem:[#allocation79_spill]]  ;;  %s1419_s7 = sld [smem:[#allocation2 + $0x8]] }
  0x2a   : > { %s1417_s6 = sld [smem:[#allocation2 + $0x7]]  ;;  %s1421_s8 = sld [smem:[#allocation2 + $0x9]] }
  0x2b   : > { %s1423_s10 = sld [smem:[#allocation2 + $0xa]]  ;;  %s1425_s11 = sld [smem:[#allocation2 + $0xb]] }
  0x2c   : > { %s1427_s12 = sld [smem:[#allocation2 + $0xc]]  ;;  %s1429_s13 = sld [smem:[#allocation2 + $0xd]] }
  0x2d   : > { %s1408_s29 = scalar_lea.vmem %s2460_s0, %s1280_s25  ;;  %s1431_s14 = sld [smem:[#allocation2 + $0xe]] }
  0x2e   : > { %s1433_s15 = sld [smem:[#allocation2 + $0xf]]  ;;  %s1435_s16 = sld [smem:[#allocation2 + $0x10]] }
  0x2f   : > { %s1415_s5 = scalar_lea.vmem %s2461_s2, %s1281_s26  ;;  %2464 = sst [smem:[#allocation9_spill]] %s1419_s7 }
  0x30   : > { %2462 = sst [smem:[#allocation7_spill]] %s1415_s5  ;;  %s1437_s17 = sld [smem:[#allocation2 + $0x11]] }
  0x31   : > { %2463 = sst [smem:[#allocation8_spill]] %s1417_s6  ;;  %s1439_s18 = sld [smem:[#allocation2 + $0x12]] }
  0x32   : > { %2465 = sst [smem:[#allocation10_spill]] %s1421_s8  ;;  %s1441_s25 = sld [smem:[#allocation2 + $0x13]] }
  0x33   : > { %2466 = sst [smem:[#allocation11_spill]] %s1423_s10  ;;  %s1443_s26 = sld [smem:[#allocation2 + $0x14]] }
  0x34   : > { %2467 = sst [smem:[#allocation12_spill]] %s1425_s11  ;;  %s1445_s27 = sld [smem:[#allocation2 + $0x15]] }
  0x35   : > { %2468 = sst [smem:[#allocation13_spill]] %s1427_s12  ;;  %s1447_s28 = sld [smem:[#allocation2 + $0x16]] }
  0x36   : > { %2469 = sst [smem:[#allocation14_spill]] %s1429_s13  ;;  %s1449_s3 = sld [smem:[#allocation2 + $0x17]] }
  0x37   : > { %2470 = sst [smem:[#allocation15_spill]] %s1439_s18  ;;  %s1451_s4 = sld [smem:[#allocation2 + $0x18]] }
  0x38   : > { %2471 = sst [smem:[#allocation16_spill]] %s1441_s25  ;;  %s1453_s0 = sld [smem:[#allocation2 + $0x19]] }
  0x39   : > { %2472 = sst [smem:[#allocation17_spill]] %s1443_s26  ;;  %s1455_s1 = sld [smem:[#allocation2 + $0x1a]] }
  0x3a   : > { %2473 = sst [smem:[#allocation18_spill]] %s1445_s27  ;;  %s1457_s2 = sld [smem:[#allocation2 + $0x1b]] }
  0x3b   : > { %2474 = sst [smem:[#allocation19_spill]] %s1447_s28  ;;  %s1459_s9 = sld [smem:[#allocation2 + $0x1c]] }
  0x3c   : > { %2475 = sst [smem:[#allocation20_spill]] %s1449_s3  ;;  %s1461_s5 = sld [smem:[#allocation2 + $0x1d]] }
  0x3d   : > { %2476 = sst [smem:[#allocation21_spill]] %s1451_s4  ;;  %s1463_s25 = sld [smem:[#allocation2 + $0x1e]] }
  0x3e   : > { %2477 = sst [smem:[#allocation22_spill]] %s1453_s0  ;;  %s1465_s26 = sld [smem:[#allocation2 + $0x1f]] }
  0x3f   : > { %2478 = sst [smem:[#allocation23_spill]] %s1455_s1  ;;  %s1467_s27 = sld [smem:[#allocation2 + $0x20]] }
  0x40   : > { %2479 = sst [smem:[#allocation24_spill]] %s1457_s2  ;;  %s1469_s28 = sld [smem:[#allocation2 + $0x21]] }
  0x41   : > { %2480 = sst [smem:[#allocation25_spill]] %s1459_s9  ;;  %s1471_s3 = sld [smem:[#allocation2 + $0x22]] }
  0x42   : > { %2481 = sst [smem:[#allocation26_spill]] %s1461_s5  ;;  %s1473_s4 = sld [smem:[#allocation2 + $0x23]] }
  0x43   : > { %2482 = sst [smem:[#allocation27_spill]] %s1463_s25  ;;  %s1475_s0 = sld [smem:[#allocation2 + $0x24]] }
  0x44   : > { %2483 = sst [smem:[#allocation28_spill]] %s1465_s26  ;;  %s1477_s1 = sld [smem:[#allocation2 + $0x25]] }
  0x45   : > { %2484 = sst [smem:[#allocation29_spill]] %s1467_s27  ;;  %s1479_s2 = sld [smem:[#allocation2 + $0x26]] }
  0x46   : > { %2485 = sst [smem:[#allocation30_spill]] %s1469_s28  ;;  %s1481_s9 = sld [smem:[#allocation2 + $0x27]] }
  0x47   : > { %2486 = sst [smem:[#allocation31_spill]] %s1471_s3  ;;  %s1483_s5 = sld [smem:[#allocation2 + $0x28]] }
  0x48   : > { %2487 = sst [smem:[#allocation32_spill]] %s1473_s4  ;;  %s1485_s25 = sld [smem:[#allocation2 + $0x29]] }
  0x49   : > { %2488 = sst [smem:[#allocation33_spill]] %s1475_s0  ;;  %s1487_s26 = sld [smem:[#allocation2 + $0x2a]] }
  0x4a   : > { %2489 = sst [smem:[#allocation34_spill]] %s1477_s1  ;;  %s1489_s27 = sld [smem:[#allocation2 + $0x2b]] }
  0x4b   : > { %2490 = sst [smem:[#allocation35_spill]] %s1479_s2  ;;  %s1491_s28 = sld [smem:[#allocation2 + $0x2c]] }
  0x4c   : > { %2491 = sst [smem:[#allocation36_spill]] %s1481_s9  ;;  %s1493_s18 = sld [smem:[#allocation2 + $0x2d]] }
  0x4d   : > { %2492 = sst [smem:[#allocation37_spill]] %s1483_s5  ;;  %s1495_s4 = sld [smem:[#allocation2 + $0x2e]] }
  0x4e   : > { %2493 = sst [smem:[#allocation38_spill]] %s1485_s25  ;;  %s1497_s0 = sld [smem:[#allocation2 + $0x2f]] }
  0x4f   : > { %2494 = sst [smem:[#allocation39_spill]] %s1487_s26  ;;  %s1499_s1 = sld [smem:[#allocation2 + $0x30]] }
  0x50   : > { %2495 = sst [smem:[#allocation40_spill]] %s1489_s27  ;;  %s1501_s2 = sld [smem:[#allocation2 + $0x31]] }
  0x51   : > { %2496 = sst [smem:[#allocation41_spill]] %s1491_s28  ;;  %s1503_s9 = sld [smem:[#allocation2 + $0x32]] }
  0x52   : > { %2497 = sst [smem:[#allocation42_spill]] %s1493_s18  ;;  %s1505_s5 = sld [smem:[#allocation2 + $0x33]] }
  0x53   : > { %2498 = sst [smem:[#allocation43_spill]] %s1495_s4  ;;  %s1507_s25 = sld [smem:[#allocation2 + $0x34]] }
  0x54   : > { %2499 = sst [smem:[#allocation44_spill]] %s1497_s0  ;;  %s1509_s26 = sld [smem:[#allocation2 + $0x35]] }
  0x55   : > { %2500 = sst [smem:[#allocation45_spill]] %s1499_s1  ;;  %s1511_s27 = sld [smem:[#allocation2 + $0x36]] }
  0x56   : > { %2501 = sst [smem:[#allocation46_spill]] %s1501_s2  ;;  %s1513_s28 = sld [smem:[#allocation2 + $0x37]] }
  0x57   : > { %2502 = sst [smem:[#allocation47_spill]] %s1503_s9  ;;  %s1515_s18 = sld [smem:[#allocation2 + $0x38]] }
  0x58   : > { %2503 = sst [smem:[#allocation48_spill]] %s1505_s5  ;;  %s1517_s4 = sld [smem:[#allocation2 + $0x39]] }
  0x59   : > { %2504 = sst [smem:[#allocation49_spill]] %s1507_s25  ;;  %s1519_s0 = sld [smem:[#allocation2 + $0x3a]] }
  0x5a   : > { %2505 = sst [smem:[#allocation50_spill]] %s1509_s26  ;;  %s1521_s1 = sld [smem:[#allocation2 + $0x3b]] }
  0x5b   : > { %2506 = sst [smem:[#allocation51_spill]] %s1511_s27  ;;  %s1523_s2 = sld [smem:[#allocation2 + $0x3c]] }
  0x5c   : > { %2507 = sst [smem:[#allocation52_spill]] %s1513_s28  ;;  %s1525_s9 = sld [smem:[#allocation2 + $0x3d]] }
  0x5d   : > { %2508 = sst [smem:[#allocation53_spill]] %s1515_s18  ;;  %s1527_s5 = sld [smem:[#allocation2 + $0x3e]] }
  0x5e   : > { %2509 = sst [smem:[#allocation54_spill]] %s1517_s4  ;;  %s1529_s25 = sld [smem:[#allocation2 + $0x3f]] }
  0x5f   : > { %2510 = sst [smem:[#allocation55_spill]] %s1519_s0  ;;  %s1531_s26 = sld [smem:[#allocation2 + $0x40]] }
  0x60   : > { %2511 = sst [smem:[#allocation56_spill]] %s1521_s1  ;;  %s1533_s27 = sld [smem:[#allocation2 + $0x41]] }
  0x61   : > { %2512 = sst [smem:[#allocation57_spill]] %s1523_s2  ;;  %s1535_s28 = sld [smem:[#allocation2 + $0x42]] }
  0x62   : > { %2513 = sst [smem:[#allocation58_spill]] %s1525_s9  ;;  %s1537_s18 = sld [smem:[#allocation2 + $0x43]] }
  0x63   : > { %2514 = sst [smem:[#allocation59_spill]] %s1527_s5  ;;  %s1539_s4 = sld [smem:[#allocation2 + $0x44]] }
  0x64   : > { %2515 = sst [smem:[#allocation60_spill]] %s1529_s25  ;;  %s1541_s0 = sld [smem:[#allocation2 + $0x45]] }
  0x65   : > { %2516 = sst [smem:[#allocation61_spill]] %s1531_s26  ;;  %s1543_s1 = sld [smem:[#allocation2 + $0x46]] }
  0x66   : > { %2517 = sst [smem:[#allocation62_spill]] %s1533_s27  ;;  %s1545_s2 = sld [smem:[#allocation2 + $0x47]] }
  0x67   : > { %2518 = sst [smem:[#allocation63_spill]] %s1535_s28  ;;  %s1547_s9 = sld [smem:[#allocation2 + $0x48]] }
  0x68   : > { %2519 = sst [smem:[#allocation64_spill]] %s1537_s18  ;;  %s1549_s5 = sld [smem:[#allocation2 + $0x49]] }
  0x69   : > { %2520 = sst [smem:[#allocation65_spill]] %s1539_s4  ;;  %s1551_s25 = sld [smem:[#allocation2 + $0x4a]] }
  0x6a   : > { %2521 = sst [smem:[#allocation66_spill]] %s1541_s0  ;;  %s1553_s26 = sld [smem:[#allocation2 + $0x4b]] }
  0x6b   : > { %2522 = sst [smem:[#allocation67_spill]] %s1543_s1  ;;  %s1555_s27 = sld [smem:[#allocation2 + $0x4c]] }
  0x6c   : > { %2523 = sst [smem:[#allocation68_spill]] %s1545_s2  ;;  %s1557_s28 = sld [smem:[#allocation2 + $0x4d]] }
  0x6d   : > { %2524 = sst [smem:[#allocation69_spill]] %s1547_s9  ;;  %s1559_s18 = sld [smem:[#allocation2 + $0x4e]] }
  0x6e   : > { %s1561_s4 = sld [smem:[#allocation2 + $0x4f]]  ;;  %s1563_s0 = sld [smem:[#allocation2 + $0x50]] }
  0x6f   : > { %s1565_s1 = sld [smem:[#allocation2 + $0x51]]  ;;  %s1567_s2 = sld [smem:[#allocation2 + $0x52]] }
  0x70   : > { %s1569_s9 = smov 0  }
  0x75   : > { %2525 = sst [smem:[#allocation70_spill]] %s1567_s2 }
  0x76 LB: >> { %s2526_s19 = sld [smem:[#allocation6_spill]]  ;;  %s2527_s7 = sld [smem:[#allocation9_spill]]  ;;  %v1578_v1 = vstv %s1395_s20  ;;  %v1581_v2 = vstv %s1397_s21  ;;  %v1584_v3 = vstv %s1399_s22  ;;  %v1590_v5 = vstv %s1401_s23  ;;  %s1346_s9 = sphi %s1569_s9, %s254_s9  }
  0x77   : >> { %s2528_s6 = sld [smem:[#allocation8_spill]]  ;;  %s2529_s8 = sld [smem:[#allocation10_spill]]  ;;  %v1593_v6 = vstv %s1403_s24  ;;  %v1596_v7 = vstv %s1410_s30  ;;  %v1621_v14 = vstv %s1431_s14  ;;  %v1624_v15 = vstv %s1433_s15 }
  0x78   : >> { %s2530_s10 = sld [smem:[#allocation11_spill]]  ;;  %s2531_s11 = sld [smem:[#allocation12_spill]]  ;;  %v1636_v19 = vstv %s1435_s16 }
  0x79   : >> { %s2532_s12 = sld [smem:[#allocation13_spill]]  ;;  %s2533_s13 = sld [smem:[#allocation14_spill]] }
  0x7a   : >> { %s1272_s2 = sshll.u32 %s1346_s9, 7  ;;  %s2536_s3 = sld [smem:[#allocation31_spill]] }
  0x7c   : >> { %v1575_v0 = vstv %s2526_s19  ;;  %v1587_v4 = vstv %s2527_s7  ;;  %s1612_s19 = scalar_lea.vmem %s1408_s29, %s1272_s2  ;;  %s2538_s2 = sld [smem:[#allocation15_spill]] }
  0x7d   : >> { %v1600_v8 = vstv %s2528_s6  ;;  %v1603_v9 = vstv %s2529_s8  ;;  %v1627_v16 = vld [vmem:[%s1612_s19] sm:$0xff]  ;;  %v1630_v17 = vld [vmem:[%s1612_s19 + $0x8] sm:$0xff]  ;;  %s2540_s6 = sld [smem:[#allocation17_spill]]  ;;  %s2541_s7 = sld [smem:[#allocation18_spill]] }
  0x7e   : >> { %v1606_v10 = vstv %s2530_s10  ;;  %v1609_v11 = vstv %s2531_s11  ;;  %v1633_v18 = vld [vmem:[%s1612_s19 + $0x10] sm:$0xff]  ;;  %v1639_v20 = vld [vmem:[%s1612_s19 + $0x18] sm:$0xff]  ;;  %v274_v23 = vmul.f32 %v1575_v0, %v1627_v16  ;;  %v276_v24 = vmul.f32 %v1578_v1, %v1630_v17  ;;  %s2542_s8 = sld [smem:[#allocation19_spill]]  ;;  %s2544_s10 = sld [smem:[#allocation20_spill]] }
  0x7f   : >> { %v1615_v12 = vstv %s2532_s12  ;;  %v1618_v13 = vstv %s2533_s13  ;;  %v1642_v21 = vld [vmem:[%s1612_s19 + $0x20] sm:$0xff]  ;;  %v1645_v22 = vld [vmem:[%s1612_s19 + $0x28] sm:$0xff]  ;;  %v286_v25 = vmul.f32 %v1575_v0, %v1630_v17  ;;  %v287_v26 = vmul.f32 %v1578_v1, %v1633_v18  ;;  %s2545_s11 = sld [smem:[#allocation21_spill]]  ;;  %s2546_s12 = sld [smem:[#allocation22_spill]] }
  0x80   : >> { %v1656_v27 = vld [vmem:[%s1612_s19 + $0x30] sm:$0xff]  ;;  %v1659_v28 = vld [vmem:[%s1612_s19 + $0x38] sm:$0xff]  ;;  %v1662_v29 = vld [vmem:[%s1612_s19 + $0x40] sm:$0xff]  ;;  %v278_v30 = vmul.f32 %v1581_v2, %v1642_v21  ;;  %v280_v31 = vmul.f32 %v1584_v3, %v1645_v22  ;;  %v288_v32 = vmul.f32 %v1581_v2, %v1645_v22  ;;  %v294_v33 = vmul.f32 %v1575_v0, %v1633_v18  ;;  %s2548_s13 = sld [smem:[#allocation32_spill]] }
  0x81   : >> { %v1673_v34 = vld [vmem:[%s1612_s19 + $0x48] sm:$0xff]  ;;  %v281_v35 = vadd.f32 %v276_v24, %v274_v23  ;;  %v289_v36 = vmul.f32 %v1584_v3, %v1656_v27  ;;  %v290_v37 = vadd.f32 %v287_v26, %v286_v25  ;;  %v295_v38 = vmul.f32 %v1578_v1, %v1639_v20  ;;  %v1686_v43 = vld [vmem:[%s1612_s19 + $0x50] sm:$0xff]  ;;  %v1701_v56 = vld [vmem:[%s1612_s19 + $0x58] sm:$0xff] }
  0x82   : >> { %v282_v39 = vadd.f32 %v280_v31, %v278_v30  ;;  %v296_v40 = vmul.f32 %v1581_v2, %v1656_v27  ;;  %v297_v41 = vmul.f32 %v1584_v3, %v1659_v28  ;;  %v302_v42 = vmul.f32 %v1575_v0, %v1642_v21  ;;  %v1709_v61 = vld [vmem:[%s1612_s19 + $0x60] sm:$0xff]  ;;  %v1712_v62 = vld [vmem:[%s1612_s19 + $0x68] sm:$0xff] }
  0x83   : >> { %v291_v44 = vadd.f32 %v289_v36, %v288_v32  ;;  %v298_v45 = vadd.f32 %v295_v38, %v294_v33  ;;  %v303_v46 = vmul.f32 %v1578_v1, %v1645_v22  ;;  %v304_v47 = vmul.f32 %v1581_v2, %v1662_v29  ;;  %v1727_v33 = vld [vmem:[%s1612_s19 + $0x70] sm:$0xff] }
  0x84   : >> { %v283_v48 = vadd.f32 %v282_v39, %v281_v35  ;;  %v299_v49 = vadd.f32 %v297_v41, %v296_v40  ;;  %v305_v50 = vmul.f32 %v1584_v3, %v1673_v34  ;;  %v310_v51 = vmul.f32 %v1575_v0, %v1645_v22  ;;  %2534 = vst [vmem:[#allocation71_spill] sm:$0xff] %v1727_v33 }
  0x85   : >> { %v292_v52 = vadd.f32 %v291_v44, %v290_v37  ;;  %v306_v53 = vadd.f32 %v303_v46, %v302_v42  ;;  %v311_v54 = vmul.f32 %v1578_v1, %v1656_v27  ;;  %v312_v55 = vmul.f32 %v1581_v2, %v1673_v34  ;;  %v1743_v44 = vld [vmem:[%s1612_s19 + $0x78] sm:$0xff] }
  0x86   : >> { %v1704_v57 = vadd.f32 %v1587_v4, %v283_v48  ;;  %v300_v58 = vadd.f32 %v299_v49, %v298_v45  ;;  %v307_v59 = vadd.f32 %v305_v50, %v304_v47  ;;  %v313_v60 = vmul.f32 %v1584_v3, %v1686_v43  ;;  %2535 = vst [vmem:[#allocation72_spill] sm:$0xff] %v1743_v44 }
  0x87   : >> { %v1715_v63 = vadd.f32 %v292_v52, %v1587_v4  ;;  %v314_v23 = vadd.f32 %v311_v54, %v310_v51  ;;  %v318_v24 = vmul.f32 %v1575_v0, %v1656_v27  ;;  %v319_v25 = vmul.f32 %v1578_v1, %v1659_v28 }
  0x88   : >> { %v1722_v26 = vadd.f32 %v300_v58, %v1587_v4  ;;  %v308_v30 = vadd.f32 %v307_v59, %v306_v53  ;;  %v315_v31 = vadd.f32 %v313_v60, %v312_v55  ;;  %v320_v32 = vmul.f32 %v1581_v2, %v1686_v43 }
  0x89   : >> { %v321_v35 = vmul.f32 %v1584_v3, %v1701_v56  ;;  %v322_v36 = vadd.f32 %v319_v25, %v318_v24  ;;  %v326_v37 = vmul.f32 %v1575_v0, %v1662_v29  ;;  %v327_v38 = vmul.f32 %v1578_v1, %v1673_v34 }
  0x8a   : >> { %v1736_v39 = vadd.f32 %v308_v30, %v1587_v4  ;;  %v316_v40 = vadd.f32 %v315_v31, %v314_v23  ;;  %v328_v41 = vmul.f32 %v1581_v2, %v1709_v61  ;;  %v329_v42 = vmul.f32 %v1584_v3, %v1712_v62 }
  0x8b   : >> { %v323_v45 = vadd.f32 %v321_v35, %v320_v32  ;;  %v330_v46 = vadd.f32 %v327_v38, %v326_v37  ;;  %v334_v47 = vmul.f32 %v1575_v0, %v1673_v34  ;;  %v335_v48 = vmul.f32 %v1578_v1, %v1686_v43 }
  0x8c   : >> { %v1750_v49 = vadd.f32 %v316_v40, %v1587_v4  ;;  %v331_v50 = vadd.f32 %v329_v42, %v328_v41  ;;  %v336_v51 = vmul.f32 %v1581_v2, %v1712_v62  ;;  %v337_v52 = vmul.f32 %v1584_v3, %v1727_v33 }
  0x8d   : >> { %v324_v53 = vadd.f32 %v323_v45, %v322_v36  ;;  %v338_v54 = vadd.f32 %v335_v48, %v334_v47  ;;  %v342_v55 = vmul.f32 %v1575_v0, %v1686_v43  ;;  %v343_v58 = vmul.f32 %v1578_v1, %v1701_v56 }
  0x8e   : >> { %v332_v59 = vadd.f32 %v331_v50, %v330_v46  ;;  %v339_v60 = vadd.f32 %v337_v52, %v336_v51  ;;  %v344_v23 = vmul.f32 %v1581_v2, %v1727_v33  ;;  %v345_v24 = vmul.f32 %v1584_v3, %v1743_v44 }
  0x8f   : >> { %v1765_v25 = vadd.f32 %v324_v53, %v1587_v4  ;;  %v346_v30 = vadd.f32 %v343_v58, %v342_v55  ;;  %v351_v31 = vmul.f32 %v1590_v5, %v1627_v16  ;;  %v353_v0 = vmul.f32 %v1593_v6, %v1630_v17 }
  0x90   : >> { %v1772_v1 = vadd.f32 %v332_v59, %v1587_v4  ;;  %v340_v32 = vadd.f32 %v339_v60, %v338_v54  ;;  %v347_v35 = vadd.f32 %v345_v24, %v344_v23  ;;  %v355_v2 = vmul.f32 %v1596_v7, %v1642_v21 }
  0x91   : >> { %v357_v3 = vmul.f32 %v1600_v8, %v1645_v22  ;;  %v358_v36 = vadd.f32 %v353_v0, %v351_v31  ;;  %v363_v37 = vmul.f32 %v1590_v5, %v1630_v17  ;;  %v364_v38 = vmul.f32 %v1593_v6, %v1633_v18 }
  0x92   : >> { %v1783_v40 = vadd.f32 %v340_v32, %v1587_v4  ;;  %v348_v41 = vadd.f32 %v347_v35, %v346_v30  ;;  %v365_v42 = vmul.f32 %v1596_v7, %v1645_v22  ;;  %v366_v45 = vmul.f32 %v1600_v8, %v1656_v27 }
  0x93   : >> { %v359_v46 = vadd.f32 %v357_v3, %v355_v2  ;;  %v367_v47 = vadd.f32 %v364_v38, %v363_v37  ;;  %v371_v48 = vmul.f32 %v1590_v5, %v1633_v18  ;;  %v372_v50 = vmul.f32 %v1593_v6, %v1639_v20 }
  0x94   : >> { %v1794_v51 = vadd.f32 %v348_v41, %v1587_v4  ;;  %v368_v52 = vadd.f32 %v366_v45, %v365_v42  ;;  %v373_v53 = vmul.f32 %v1596_v7, %v1656_v27  ;;  %v374_v54 = vmul.f32 %v1600_v8, %v1659_v28 }
  0x95   : >> { %v360_v55 = vadd.f32 %v359_v46, %v358_v36  ;;  %v375_v58 = vadd.f32 %v372_v50, %v371_v48  ;;  %v379_v59 = vmul.f32 %v1590_v5, %v1642_v21  ;;  %v380_v60 = vmul.f32 %v1593_v6, %v1645_v22 }
  0x96   : >> { %v369_v23 = vadd.f32 %v368_v52, %v367_v47  ;;  %v376_v24 = vadd.f32 %v374_v54, %v373_v53  ;;  %v381_v4 = vmul.f32 %v1596_v7, %v1662_v29  ;;  %v382_v30 = vmul.f32 %v1600_v8, %v1673_v34 }
  0x97   : >> { %v362_v31 = vadd.f32 %v1603_v9, %v360_v55  ;;  %v383_v0 = vadd.f32 %v380_v60, %v379_v59  ;;  %v387_v32 = vmul.f32 %v1590_v5, %v1645_v22  ;;  %v388_v35 = vmul.f32 %v1593_v6, %v1656_v27 }
  0x98   : >> { %v370_v2 = vadd.f32 %v369_v23, %v1603_v9  ;;  %v377_v3 = vadd.f32 %v376_v24, %v375_v58  ;;  %v384_v36 = vadd.f32 %v382_v30, %v381_v4  ;;  %v389_v37 = vmul.f32 %v1596_v7, %v1673_v34 }
  0x99   : >> { %v390_v38 = vmul.f32 %v1600_v8, %v1686_v43  ;;  %v391_v41 = vadd.f32 %v388_v35, %v387_v32  ;;  %v395_v42 = vmul.f32 %v1590_v5, %v1656_v27  ;;  %v396_v45 = vmul.f32 %v1593_v6, %v1659_v28 }
  0x9a   : >> { %v378_v46 = vadd.f32 %v377_v3, %v1603_v9  ;;  %v385_v47 = vadd.f32 %v384_v36, %v383_v0  ;;  %v397_v48 = vmul.f32 %v1596_v7, %v1686_v43  ;;  %v398_v50 = vmul.f32 %v1600_v8, %v1701_v56 }
  0x9b   : >> { %v392_v52 = vadd.f32 %v390_v38, %v389_v37  ;;  %v399_v53 = vadd.f32 %v396_v45, %v395_v42  ;;  %v403_v54 = vmul.f32 %v1590_v5, %v1662_v29  ;;  %v404_v55 = vmul.f32 %v1593_v6, %v1673_v34 }
  0x9c   : >> { %v386_v58 = vadd.f32 %v385_v47, %v1603_v9  ;;  %v400_v59 = vadd.f32 %v398_v50, %v397_v48  ;;  %v405_v60 = vmul.f32 %v1596_v7, %v1709_v61  ;;  %v406_v23 = vmul.f32 %v1600_v8, %v1712_v62 }
  0x9d   : >> { %v393_v24 = vadd.f32 %v392_v52, %v391_v41  ;;  %v407_v4 = vadd.f32 %v404_v55, %v403_v54  ;;  %v411_v30 = vmul.f32 %v1590_v5, %v1673_v34  ;;  %v412_v0 = vmul.f32 %v1593_v6, %v1686_v43 }
  0x9e   : >> { %v401_v32 = vadd.f32 %v400_v59, %v399_v53  ;;  %v408_v35 = vadd.f32 %v406_v23, %v405_v60  ;;  %v413_v3 = vmul.f32 %v1596_v7, %v1712_v62  ;;  %v414_v36 = vmul.f32 %v1600_v8, %v1727_v33 }
  0x9f   : >> { %v394_v37 = vadd.f32 %v393_v24, %v1603_v9  ;;  %v415_v38 = vadd.f32 %v412_v0, %v411_v30  ;;  %v419_v41 = vmul.f32 %v1590_v5, %v1686_v43  ;;  %v420_v42 = vmul.f32 %v1593_v6, %v1701_v56 }
  0xa0   : >> { %v402_v45 = vadd.f32 %v401_v32, %v1603_v9  ;;  %v409_v47 = vadd.f32 %v408_v35, %v407_v4  ;;  %v416_v48 = vadd.f32 %v414_v36, %v413_v3  ;;  %v421_v50 = vmul.f32 %v1596_v7, %v1727_v33 }
  0xa1   : >> { %v422_v52 = vmul.f32 %v1600_v8, %v1743_v44  ;;  %v423_v53 = vadd.f32 %v420_v42, %v419_v41  ;;  %v1855_v54 = vmax.f32 %v1704_v57, 0.0  ;;  %v1858_v55 = vmax.f32 %v1715_v63, 0.0 }
  0xa2   : >> { %v410_v5 = vadd.f32 %v409_v47, %v1603_v9  ;;  %v417_v6 = vadd.f32 %v416_v48, %v415_v38  ;;  %v1862_v59 = vmax.f32 %v1722_v26, 0.0  ;;  %v1865_v60 = vmax.f32 %v1736_v39, 0.0 }
  0xa3   : >> { %v424_v7 = vadd.f32 %v422_v52, %v421_v50  ;;  %v1868_v23 = vmax.f32 %v1750_v49, 0.0  ;;  %v1871_v8 = vmax.f32 %v1765_v25, 0.0  ;;  %v1874_v57 = vmax.f32 %v1772_v1, 0.0 }
  0xa4   : >> { %v418_v63 = vadd.f32 %v417_v6, %v1603_v9  ;;  %v1878_v24 = vmax.f32 %v1783_v40, 0.0  ;;  %v1881_v26 = vmax.f32 %v1794_v51, 0.0  ;;  %v1883_v39 = vmax.f32 %v362_v31, 0.0 }
  0xa5   : >> { %v425_v4 = vadd.f32 %v424_v7, %v423_v53  ;;  %v1885_v30 = vmax.f32 %v370_v2, 0.0  ;;  %v1887_v49 = vmax.f32 %v378_v46, 0.0  ;;  %v1889_v25 = vmax.f32 %v386_v58, 0.0 }
  0xa6   : >> { %v1891_v1 = vmax.f32 %v394_v37, 0.0  ;;  %v1893_v0 = vmax.f32 %v402_v45, 0.0  ;;  %v1895_v40 = vmax.f32 %v410_v5, 0.0  ;;  %v1897_v32 = vmax.f32 %v418_v63, 0.0 }
  0xa7   : >> { %v426_v51 = vadd.f32 %v425_v4, %v1603_v9  ;;  %v446_v31 = vmul.f32 %v1606_v10, %v1855_v54  ;;  %v448_v2 = vmul.f32 %v1609_v11, %v1858_v55  ;;  %v450_v46 = vmul.f32 %v1615_v12, %v1865_v60 }
  0xa8   : >> { %v452_v58 = vmul.f32 %v1618_v13, %v1868_v23  ;;  %v454_v35 = vmul.f32 %v1621_v14, %v1883_v39  ;;  %v456_v3 = vmul.f32 %v1624_v15, %v1885_v30  ;;  %v458_v9 = vmul.f32 %v1636_v19, %v1889_v25 }
  0xa9   : >> { %v1914_v36 = vmax.f32 %v426_v51, 0.0  ;;  %v459_v37 = vstv %s1437_s17  ;;  %v461_v38 = vadd.f32 %v448_v2, %v446_v31  ;;  %v1918_v41 = vstv %s2536_s3  ;;  %s2539_s3 = sld [smem:[#allocation16_spill]] }
  0xaa   : >> { %v460_v42 = vmul.f32 %v459_v37, %v1891_v1  ;;  %v462_v45 = vadd.f32 %v452_v58, %v450_v46  ;;  %v463_v47 = vadd.f32 %v456_v3, %v454_v35  ;;  %v470_v48 = vmul.f32 %v1606_v10, %v1858_v55 }
  0xab   : >> { %v471_v50 = vmul.f32 %v1609_v11, %v1862_v59  ;;  %v472_v52 = vmul.f32 %v1615_v12, %v1868_v23  ;;  %v473_v53 = vmul.f32 %v1618_v13, %v1871_v8  ;;  %v474_v5 = vmul.f32 %v1621_v14, %v1885_v30 }
  0xac   : >> { %v464_v6 = vadd.f32 %v460_v42, %v458_v9  ;;  %v465_v7 = vadd.f32 %v462_v45, %v461_v38  ;;  %v475_v63 = vmul.f32 %v1624_v15, %v1887_v49  ;;  %v476_v4 = vmul.f32 %v1636_v19, %v1891_v1 }
  0xad   : >> { %v477_v51 = vmul.f32 %v459_v37, %v1893_v0  ;;  %v478_v31 = vadd.f32 %v471_v50, %v470_v48  ;;  %v479_v2 = vadd.f32 %v473_v53, %v472_v52  ;;  %v486_v46 = vmul.f32 %v1606_v10, %v1865_v60 }
  0xae   : >> { %v466_v58 = vadd.f32 %v464_v6, %v463_v47  ;;  %v480_v35 = vadd.f32 %v475_v63, %v474_v5  ;;  %v487_v3 = vmul.f32 %v1609_v11, %v1868_v23  ;;  %v488_v9 = vmul.f32 %v1615_v12, %v1874_v57 }
  0xaf   : >> { %v481_v38 = vadd.f32 %v477_v51, %v476_v4  ;;  %v482_v42 = vadd.f32 %v479_v2, %v478_v31  ;;  %v489_v45 = vmul.f32 %v1618_v13, %v1878_v24  ;;  %v490_v48 = vmul.f32 %v1621_v14, %v1889_v25 }
  0xb0   : >> { %v467_v50 = vadd.f32 %v466_v58, %v465_v7  ;;  %v491_v52 = vmul.f32 %v1624_v15, %v1891_v1  ;;  %v492_v47 = vmul.f32 %v1636_v19, %v1895_v40  ;;  %v493_v53 = vmul.f32 %v459_v37, %v1897_v32 }
  0xb1   : >> { %v483_v5 = vadd.f32 %v481_v38, %v480_v35  ;;  %v494_v6 = vadd.f32 %v487_v3, %v486_v46  ;;  %v495_v63 = vadd.f32 %v489_v45, %v488_v9  ;;  %v502_v4 = vmul.f32 %v1606_v10, %v1868_v23 }
  0xb2   : >> { %v1954_v51 = vadd.f32 %v1918_v41, %v467_v50  ;;  %v496_v31 = vadd.f32 %v491_v52, %v490_v48  ;;  %v497_v2 = vadd.f32 %v493_v53, %v492_v47  ;;  %v503_v7 = vmul.f32 %v1609_v11, %v1871_v8 }
  0xb3   : >> { %v484_v58 = vadd.f32 %v483_v5, %v482_v42  ;;  %v498_v44 = vadd.f32 %v495_v63, %v494_v6  ;;  %v504_v35 = vmul.f32 %v1615_v12, %v1878_v24  ;;  %v505_v46 = vmul.f32 %v1618_v13, %v1881_v26 }
  0xb4   : >> { %2537 = vst [vmem:[#allocation73_spill] sm:$0xff] %v1954_v51  ;;  %v499_v3 = vadd.f32 %v497_v2, %v496_v31  ;;  %v506_v10 = vmul.f32 %v1621_v14, %v1891_v1  ;;  %v507_v9 = vmul.f32 %v1624_v15, %v1893_v0  ;;  %v508_v11 = vmul.f32 %v1636_v19, %v1897_v32 }
  0xb5   : >> { %v1969_v38 = vadd.f32 %v484_v58, %v1918_v41  ;;  %v509_v12 = vmul.f32 %v459_v37, %v1914_v36  ;;  %v510_v42 = vadd.f32 %v503_v7, %v502_v4  ;;  %v511_v13 = vadd.f32 %v505_v46, %v504_v35 }
  0xb6   : >> { %v500_v45 = vadd.f32 %v499_v3, %v498_v44  ;;  %v512_v48 = vadd.f32 %v507_v9, %v506_v10  ;;  %v518_v14 = vstv %s2538_s2  ;;  %v520_v50 = vstv %s2539_s3  ;;  %s2557_s3 = sld [smem:[#allocation30_spill]]  ;;  %s2558_s2 = sld [smem:[#allocation33_spill]] }
  0xb7   : >> { %2543 = vst [vmem:[#allocation74_spill] sm:$0xff] %v1969_v38  ;;  %v513_v15 = vadd.f32 %v509_v12, %v508_v11  ;;  %v514_v52 = vadd.f32 %v511_v13, %v510_v42  ;;  %v519_v47 = vmul.f32 %v518_v14, %v1855_v54  ;;  %v521_v19 = vmul.f32 %v520_v50, %v1858_v55 }
  0xb8   : >> { %v1977_v53 = vadd.f32 %v500_v45, %v1918_v41  ;;  %v522_v5 = vstv %s2540_s6  ;;  %v524_v37 = vstv %s2541_s7  ;;  %v526_v6 = vstv %s2542_s8  ;;  %s2550_s6 = sld [smem:[#allocation23_spill]]  ;;  %s2551_s7 = sld [smem:[#allocation24_spill]] }
  0xb9   : >> { %v515_v44 = vadd.f32 %v513_v15, %v512_v48  ;;  %v523_v63 = vmul.f32 %v522_v5, %v1865_v60  ;;  %v525_v4 = vmul.f32 %v524_v37, %v1868_v23  ;;  %v527_v31 = vmul.f32 %v526_v6, %v1883_v39  ;;  %s2552_s8 = sld [smem:[#allocation25_spill]] }
  0xba   : >> { %2547 = vst [vmem:[#allocation75_spill] sm:$0xff] %v1977_v53  ;;  %v528_v2 = vstv %s2544_s10  ;;  %v530_v7 = vstv %s2545_s11  ;;  %v532_v58 = vstv %s2546_s12  ;;  %v534_v35 = vadd.f32 %v521_v19, %v519_v47  ;;  %s2553_s10 = sld [smem:[#allocation26_spill]]  ;;  %s2554_s11 = sld [smem:[#allocation27_spill]] }
  0xbb   : >> { %v516_v46 = vadd.f32 %v515_v44, %v514_v52  ;;  %v529_v3 = vmul.f32 %v528_v2, %v1885_v30  ;;  %v531_v10 = vmul.f32 %v530_v7, %v1889_v25  ;;  %v533_v9 = vmul.f32 %v532_v58, %v1891_v1  ;;  %s2555_s12 = sld [smem:[#allocation28_spill]] }
  0xbc   : >> { %v535_v11 = vadd.f32 %v525_v4, %v523_v63  ;;  %v1992_v12 = vstv %s2548_s13  ;;  %v543_v42 = vmul.f32 %v518_v14, %v1858_v55  ;;  %v544_v13 = vmul.f32 %v520_v50, %v1862_v59  ;;  %s2556_s13 = sld [smem:[#allocation29_spill]] }
  0xbd   : >> { %v1997_v45 = vadd.f32 %v516_v46, %v1918_v41  ;;  %v536_v48 = vadd.f32 %v529_v3, %v527_v31  ;;  %v537_v15 = vadd.f32 %v533_v9, %v531_v10  ;;  %v545_v52 = vmul.f32 %v522_v5, %v1868_v23 }
  0xbe   : >> { %v538_v47 = vadd.f32 %v535_v11, %v534_v35  ;;  %v546_v19 = vmul.f32 %v524_v37, %v1871_v8  ;;  %v547_v44 = vmul.f32 %v526_v6, %v1885_v30  ;;  %v548_v63 = vmul.f32 %v528_v2, %v1887_v49 }
  0xbf   : >> { %2549 = vst [vmem:[#allocation76_spill] sm:$0xff] %v1997_v45  ;;  %v539_v4 = vadd.f32 %v537_v15, %v536_v48  ;;  %v549_v53 = vmul.f32 %v530_v7, %v1891_v1  ;;  %v550_v38 = vmul.f32 %v532_v58, %v1893_v0  ;;  %v551_v51 = vadd.f32 %v544_v13, %v543_v42 }
  0xc0   : >> { %v552_v33 = vadd.f32 %v546_v19, %v545_v52  ;;  %v553_v41 = vadd.f32 %v548_v63, %v547_v44  ;;  %v559_v31 = vmul.f32 %v518_v14, %v1865_v60  ;;  %v560_v46 = vmul.f32 %v520_v50, %v1868_v23 }
  0xc1   : >> { %v540_v3 = vadd.f32 %v539_v4, %v538_v47  ;;  %v554_v35 = vadd.f32 %v550_v38, %v549_v53  ;;  %v561_v10 = vmul.f32 %v522_v5, %v1874_v57  ;;  %v562_v9 = vmul.f32 %v524_v37, %v1878_v24 }
  0xc2   : >> { %v555_v11 = vadd.f32 %v552_v33, %v551_v51  ;;  %v563_v48 = vmul.f32 %v526_v6, %v1889_v25  ;;  %v564_v15 = vmul.f32 %v528_v2, %v1891_v1  ;;  %v565_v45 = vmul.f32 %v530_v7, %v1895_v40 }
  0xc3   : >> { %v2013_v42 = vadd.f32 %v1992_v12, %v540_v3  ;;  %v556_v13 = vadd.f32 %v554_v35, %v553_v41  ;;  %v566_v52 = vmul.f32 %v532_v58, %v1897_v32  ;;  %v567_v19 = vadd.f32 %v560_v46, %v559_v31 }
  0xc4   : >> { %v568_v47 = vadd.f32 %v562_v9, %v561_v10  ;;  %v569_v38 = vadd.f32 %v564_v15, %v563_v48  ;;  %v575_v53 = vmul.f32 %v518_v14, %v1868_v23  ;;  %v576_v33 = vmul.f32 %v520_v50, %v1871_v8 }
  0xc5   : >> { %v557_v51 = vadd.f32 %v556_v13, %v555_v11  ;;  %v570_v44 = vadd.f32 %v566_v52, %v565_v45  ;;  %v577_v63 = vmul.f32 %v522_v5, %v1878_v24  ;;  %v578_v4 = vmul.f32 %v524_v37, %v1881_v26 }
  0xc6   : >> { %v571_v3 = vadd.f32 %v568_v47, %v567_v19  ;;  %v579_v41 = vmul.f32 %v526_v6, %v1891_v1  ;;  %v580_v31 = vmul.f32 %v528_v2, %v1893_v0  ;;  %v581_v46 = vmul.f32 %v530_v7, %v1897_v32 }
  0xc7   : >> { %v2024_v14 = vadd.f32 %v557_v51, %v1992_v12  ;;  %v572_v50 = vadd.f32 %v570_v44, %v569_v38  ;;  %v582_v45 = vmul.f32 %v532_v58, %v1914_v36  ;;  %v583_v35 = vadd.f32 %v576_v33, %v575_v53 }
  0xc8   : >> { %v584_v5 = vadd.f32 %v578_v4, %v577_v63  ;;  %v585_v10 = vadd.f32 %v580_v31, %v579_v41  ;;  %v591_v37 = vstv %s2550_s6  ;;  %v593_v6 = vstv %s2551_s7  ;;  %s2559_s6 = sld [smem:[#allocation34_spill]]  ;;  %s2560_s7 = sld [smem:[#allocation35_spill]] }
  0xc9   : >> { %v573_v9 = vadd.f32 %v572_v50, %v571_v3  ;;  %v586_v2 = vadd.f32 %v582_v45, %v581_v46  ;;  %v592_v11 = vmul.f32 %v591_v37, %v1855_v54  ;;  %v594_v7 = vmul.f32 %v593_v6, %v1858_v55 }
  0xca   : >> { %v587_v48 = vadd.f32 %v584_v5, %v583_v35  ;;  %v595_v15 = vstv %s2552_s8  ;;  %v597_v13 = vstv %s2553_s10  ;;  %v599_v52 = vstv %s2554_s11  ;;  %s2561_s8 = sld [smem:[#allocation36_spill]]  ;;  %s2562_s10 = sld [smem:[#allocation37_spill]] }
  0xcb   : >> { %v2035_v58 = vadd.f32 %v573_v9, %v1992_v12  ;;  %v588_v19 = vadd.f32 %v586_v2, %v585_v10  ;;  %v596_v47 = vmul.f32 %v595_v15, %v1865_v60  ;;  %v598_v38 = vmul.f32 %v597_v13, %v1868_v23  ;;  %s2563_s11 = sld [smem:[#allocation38_spill]] }
  0xcc   : >> { %v600_v53 = vmul.f32 %v599_v52, %v1883_v39  ;;  %v601_v33 = vstv %s2555_s12  ;;  %v603_v51 = vstv %s2556_s13  ;;  %v605_v54 = vstv %s2557_s3  ;;  %s2564_s12 = sld [smem:[#allocation39_spill]]  ;;  %s2565_s13 = sld [smem:[#allocation40_spill]] }
  0xcd   : >> { %v589_v44 = vadd.f32 %v588_v19, %v587_v48  ;;  %v602_v63 = vmul.f32 %v601_v33, %v1885_v30  ;;  %v604_v4 = vmul.f32 %v603_v51, %v1889_v25  ;;  %v606_v3 = vmul.f32 %v605_v54, %v1891_v1  ;;  %s2566_s3 = sld [smem:[#allocation41_spill]] }
  0xce   : >> { %v607_v41 = vadd.f32 %v594_v7, %v592_v11  ;;  %v608_v31 = vadd.f32 %v598_v38, %v596_v47  ;;  %v2047_v46 = vstv %s2558_s2  ;;  %v616_v50 = vmul.f32 %v591_v37, %v1858_v55  ;;  %s2567_s2 = sld [smem:[#allocation42_spill]] }
  0xcf   : >> { %v2051_v45 = vadd.f32 %v589_v44, %v1992_v12  ;;  %v609_v39 = vadd.f32 %v602_v63, %v600_v53  ;;  %v610_v35 = vadd.f32 %v606_v3, %v604_v4  ;;  %v617_v5 = vmul.f32 %v593_v6, %v1862_v59 }
  0xd0   : >> { %v611_v10 = vadd.f32 %v608_v31, %v607_v41  ;;  %v618_v9 = vmul.f32 %v595_v15, %v1868_v23  ;;  %v619_v2 = vmul.f32 %v597_v13, %v1871_v8  ;;  %v620_v48 = vmul.f32 %v599_v52, %v1885_v30 }
  0xd1   : >> { %v612_v11 = vadd.f32 %v610_v35, %v609_v39  ;;  %v621_v7 = vmul.f32 %v601_v33, %v1887_v49  ;;  %v622_v19 = vmul.f32 %v603_v51, %v1891_v1  ;;  %v623_v55 = vmul.f32 %v605_v54, %v1893_v0 }
  0xd2   : >> { %v624_v12 = vadd.f32 %v617_v5, %v616_v50  ;;  %v625_v47 = vadd.f32 %v619_v2, %v618_v9  ;;  %v632_v38 = vmul.f32 %v591_v37, %v1865_v60  ;;  %v633_v59 = vmul.f32 %v593_v6, %v1868_v23 }
  0xd3   : >> { %v613_v53 = vadd.f32 %v612_v11, %v611_v10  ;;  %v626_v44 = vadd.f32 %v621_v7, %v620_v48  ;;  %v627_v63 = vadd.f32 %v623_v55, %v622_v19  ;;  %v634_v4 = vmul.f32 %v595_v15, %v1874_v57 }
  0xd4   : >> { %v628_v3 = vadd.f32 %v625_v47, %v624_v12  ;;  %v635_v30 = vmul.f32 %v597_v13, %v1878_v24  ;;  %v636_v49 = vmul.f32 %v599_v52, %v1889_v25  ;;  %v637_v41 = vmul.f32 %v601_v33, %v1891_v1 }
  0xd5   : >> { %v2067_v31 = vadd.f32 %v2047_v46, %v613_v53  ;;  %v629_v50 = vadd.f32 %v627_v63, %v626_v44  ;;  %v638_v60 = vmul.f32 %v603_v51, %v1895_v40  ;;  %v639_v39 = vmul.f32 %v605_v54, %v1897_v32 }
  0xd6   : >> { %v640_v35 = vadd.f32 %v633_v59, %v632_v38  ;;  %v641_v5 = vadd.f32 %v635_v30, %v634_v4  ;;  %v642_v10 = vadd.f32 %v637_v41, %v636_v49  ;;  %v648_v57 = vmul.f32 %v591_v37, %v1868_v23 }
  0xd7   : >> { %v630_v9 = vadd.f32 %v629_v50, %v628_v3  ;;  %v643_v2 = vadd.f32 %v639_v39, %v638_v60  ;;  %v649_v25 = vmul.f32 %v593_v6, %v1871_v8  ;;  %v650_v48 = vmul.f32 %v595_v15, %v1878_v24 }
  0xd8   : >> { %v644_v11 = vadd.f32 %v641_v5, %v640_v35  ;;  %v651_v7 = vmul.f32 %v597_v13, %v1881_v26  ;;  %v652_v40 = vmul.f32 %v599_v52, %v1891_v1  ;;  %v653_v19 = vmul.f32 %v601_v33, %v1893_v0 }
  0xd9   : >> { %v2078_v55 = vadd.f32 %v630_v9, %v2047_v46  ;;  %v645_v23 = vadd.f32 %v643_v2, %v642_v10  ;;  %v654_v37 = vmul.f32 %v603_v51, %v1897_v32  ;;  %v655_v8 = vmul.f32 %v605_v54, %v1914_v36 }
  0xda   : >> { %v656_v6 = vadd.f32 %v649_v25, %v648_v57  ;;  %v657_v24 = vadd.f32 %v651_v7, %v650_v48  ;;  %v658_v15 = vadd.f32 %v653_v19, %v652_v40  ;;  %v2083_v26 = vstv %s2559_s6  ;;  %s2568_s6 = sld [smem:[#allocation52_spill]] }
  0xdb   : >> { %v646_v1 = vadd.f32 %v645_v23, %v644_v11  ;;  %v659_v0 = vadd.f32 %v655_v8, %v654_v37  ;;  %v665_v13 = vmul.f32 %v2083_v26, %v1627_v16  ;;  %v666_v52 = vstv %s2560_s7  ;;  %s2570_s7 = sld [smem:[#allocation43_spill]] }
  0xdc   : >> { %v660_v33 = vadd.f32 %v657_v24, %v656_v6  ;;  %v667_v32 = vmul.f32 %v666_v52, %v1630_v17  ;;  %v668_v36 = vstv %s2561_s8  ;;  %v670_v51 = vstv %s2562_s10  ;;  %s2571_s8 = sld [smem:[#allocation44_spill]]  ;;  %s2572_s10 = sld [smem:[#allocation45_spill]] }
  0xdd   : >> { %v2092_v54 = vadd.f32 %v646_v1, %v2047_v46  ;;  %v661_v12 = vadd.f32 %v659_v0, %v658_v15  ;;  %v669_v47 = vmul.f32 %v668_v36, %v1633_v18  ;;  %v671_v38 = vmul.f32 %v670_v51, %v1642_v21 }
  0xde   : >> { %v672_v59 = vstv %s2563_s11  ;;  %v674_v53 = vstv %s2564_s12  ;;  %v676_v44 = vstv %s2565_s13  ;;  %v678_v63 = vstv %s2566_s3  ;;  %s2574_s11 = sld [smem:[#allocation46_spill]]  ;;  %s2575_s12 = sld [smem:[#allocation47_spill]] }
  0xdf   : >> { %v662_v4 = vadd.f32 %v661_v12, %v660_v33  ;;  %v673_v3 = vmul.f32 %v672_v59, %v1645_v22  ;;  %v675_v30 = vmul.f32 %v674_v53, %v1656_v27  ;;  %v677_v49 = vmul.f32 %v676_v44, %v1662_v29  ;;  %s2576_s13 = sld [smem:[#allocation48_spill]]  ;;  %s2577_s3 = sld [smem:[#allocation49_spill]] }
  0xe0   : >> { %v679_v41 = vmul.f32 %v678_v63, %v1673_v34  ;;  %v680_v50 = vstv %s2567_s2  ;;  %v682_v60 = vadd.f32 %v667_v32, %v665_v13  ;;  %v683_v39 = vadd.f32 %v671_v38, %v669_v47  ;;  %s2578_s2 = sld [smem:[#allocation50_spill]] }
  0xe1   : >> { %v2106_v35 = vadd.f32 %v662_v4, %v2047_v46  ;;  %v681_v5 = vmul.f32 %v680_v50, %v1686_v43  ;;  %v684_v10 = vadd.f32 %v675_v30, %v673_v3  ;;  %v2110_v57 = vstv %s2568_s6  ;;  %s2579_s6 = sld [smem:[#allocation51_spill]] }
  0xe2   : >> { %v685_v9 = vadd.f32 %v679_v41, %v677_v49  ;;  %v686_v2 = vadd.f32 %v683_v39, %v682_v60  ;;  %v692_v25 = vmul.f32 %v2083_v26, %v1630_v17  ;;  %v693_v48 = vmul.f32 %v666_v52, %v1633_v18  ;;  %v2569_v60 = vld [vmem:[#allocation71_spill] sm:$0xff] }
  0xe3   : >> { %v694_v11 = vmul.f32 %v668_v36, %v1639_v20  ;;  %v695_v7 = vmul.f32 %v670_v51, %v1645_v22  ;;  %v696_v40 = vmul.f32 %v672_v59, %v1656_v27  ;;  %v697_v46 = vmul.f32 %v674_v53, %v1659_v28 }
  0xe4   : >> { %v687_v19 = vadd.f32 %v685_v9, %v684_v10  ;;  %v698_v23 = vmul.f32 %v676_v44, %v1673_v34  ;;  %v699_v37 = vmul.f32 %v678_v63, %v1686_v43  ;;  %v700_v8 = vmul.f32 %v680_v50, %v1701_v56 }
  0xe5   : >> { %v701_v6 = vadd.f32 %v693_v48, %v692_v25  ;;  %v702_v24 = vadd.f32 %v695_v7, %v694_v11  ;;  %v703_v15 = vadd.f32 %v697_v46, %v696_v40  ;;  %v710_v1 = vmul.f32 %v2083_v26, %v1642_v21 }
  0xe6   : >> { %v688_v0 = vadd.f32 %v687_v19, %v686_v2  ;;  %v704_v13 = vadd.f32 %v699_v37, %v698_v23  ;;  %v711_v33 = vmul.f32 %v666_v52, %v1645_v22  ;;  %v712_v32 = vmul.f32 %v668_v36, %v1656_v27 }
  0xe7   : >> { %v705_v12 = vadd.f32 %v702_v24, %v701_v6  ;;  %v713_v47 = vmul.f32 %v670_v51, %v1662_v29  ;;  %v714_v38 = vmul.f32 %v672_v59, %v1673_v34  ;;  %v715_v4 = vmul.f32 %v674_v53, %v1686_v43 }
  0xe8   : >> { %v689_v3 = vadd.f32 %v688_v0, %v681_v5  ;;  %v706_v30 = vadd.f32 %v704_v13, %v703_v15  ;;  %v716_v49 = vmul.f32 %v676_v44, %v1709_v61  ;;  %v717_v41 = vmul.f32 %v678_v63, %v1712_v62 }
  0xe9   : >> { %v718_v39 = vmul.f32 %v680_v50, %v2569_v60  ;;  %v719_v10 = vadd.f32 %v711_v33, %v710_v1  ;;  %v720_v9 = vadd.f32 %v713_v47, %v712_v32  ;;  %v721_v2 = vadd.f32 %v715_v4, %v714_v38  ;;  %v2573_v1 = vld [vmem:[#allocation72_spill] sm:$0xff] }
  0xea   : >> { %v2133_v25 = vadd.f32 %v2110_v57, %v689_v3  ;;  %v707_v48 = vadd.f32 %v706_v30, %v705_v12  ;;  %v722_v11 = vadd.f32 %v717_v41, %v716_v49  ;;  %v728_v7 = vmul.f32 %v2083_v26, %v1645_v22 }
  0xeb   : >> { %v723_v40 = vadd.f32 %v720_v9, %v719_v10  ;;  %v729_v5 = vmul.f32 %v666_v52, %v1656_v27  ;;  %v730_v46 = vmul.f32 %v668_v36, %v1659_v28  ;;  %v731_v19 = vmul.f32 %v670_v51, %v1673_v34 }
  0xec   : >> { %v708_v23 = vadd.f32 %v707_v48, %v700_v8  ;;  %v724_v37 = vadd.f32 %v722_v11, %v721_v2  ;;  %v732_v6 = vmul.f32 %v672_v59, %v1686_v43  ;;  %v733_v24 = vmul.f32 %v674_v53, %v1701_v56 }
  0xed   : >> { %v734_v15 = vmul.f32 %v676_v44, %v1712_v62  ;;  %v735_v26 = vmul.f32 %v678_v63, %v2569_v60  ;;  %v736_v0 = vmul.f32 %v680_v50, %v2573_v1  ;;  %v737_v52 = vadd.f32 %v729_v5, %v728_v7 }
  0xee   : >> { %v2146_v36 = vadd.f32 %v708_v23, %v2110_v57  ;;  %v725_v51 = vadd.f32 %v724_v37, %v723_v40  ;;  %v738_v13 = vadd.f32 %v731_v19, %v730_v46  ;;  %v739_v8 = vadd.f32 %v733_v24, %v732_v6 }
  0xef   : >> { %v740_v33 = vadd.f32 %v735_v26, %v734_v15  ;;  %v2149_v59 = vstv %s2570_s7  ;;  %v2152_v53 = vstv %s2571_s8  ;;  %v2155_v44 = vstv %s2572_s10  ;;  %s2580_s7 = sld [smem:[#allocation53_spill]]  ;;  %s2581_s8 = sld [smem:[#allocation54_spill]] }
  0xf0   : >> { %v726_v63 = vadd.f32 %v725_v51, %v718_v39  ;;  %v741_v50 = vadd.f32 %v738_v13, %v737_v52  ;;  %v747_v32 = vmul.f32 %v2149_v59, %v1627_v16  ;;  %v749_v12 = vmul.f32 %v2152_v53, %v1630_v17  ;;  %s2582_s10 = sld [smem:[#allocation55_spill]] }
  0xf1   : >> { %v742_v47 = vadd.f32 %v740_v33, %v739_v8  ;;  %v751_v38 = vmul.f32 %v2155_v44, %v1633_v18  ;;  %v2164_v4 = vstv %s2574_s11  ;;  %v2167_v3 = vstv %s2575_s12  ;;  %s2584_s11 = sld [smem:[#allocation56_spill]]  ;;  %s2585_s12 = sld [smem:[#allocation57_spill]] }
  0xf2   : >> { %v2170_v30 = vadd.f32 %v726_v63, %v2110_v57  ;;  %v753_v49 = vmul.f32 %v2164_v4, %v1642_v21  ;;  %v755_v16 = vmul.f32 %v2167_v3, %v1645_v22  ;;  %v756_v41 = vstv %s2576_s13  ;;  %s2586_s13 = sld [smem:[#allocation61_spill]] }
  0xf3   : >> { %v743_v39 = vadd.f32 %v742_v47, %v741_v50  ;;  %v757_v10 = vmul.f32 %v756_v41, %v1656_v27  ;;  %v758_v9 = vstv %s2577_s3  ;;  %v760_v2 = vstv %s2578_s2  ;;  %s2587_s3 = sld [smem:[#allocation58_spill]]  ;;  %s2588_s2 = sld [smem:[#allocation59_spill]] }
  0xf4   : >> { %v759_v48 = vmul.f32 %v758_v9, %v1662_v29  ;;  %v761_v11 = vmul.f32 %v760_v2, %v1673_v34  ;;  %v762_v7 = vstv %s2579_s6  ;;  %v764_v40 = vadd.f32 %v749_v12, %v747_v32  ;;  %s2589_s6 = sld [smem:[#allocation62_spill]] }
  0xf5   : >> { %v744_v5 = vadd.f32 %v743_v39, %v736_v0  ;;  %v763_v46 = vmul.f32 %v762_v7, %v1686_v43  ;;  %v765_v19 = vadd.f32 %v753_v49, %v751_v38  ;;  %v766_v23 = vadd.f32 %v757_v10, %v755_v16 }
  0xf6   : >> { %v767_v37 = vadd.f32 %v761_v11, %v759_v48  ;;  %v2185_v6 = vstv %s2580_s7  ;;  %v774_v24 = vmul.f32 %v2149_v59, %v1630_v17  ;;  %v775_v15 = vmul.f32 %v2152_v53, %v1633_v18  ;;  %s2591_s7 = sld [smem:[#allocation63_spill]] }
  0xf7   : >> { %v745_v26 = vadd.f32 %v744_v5, %v2110_v57  ;;  %v768_v52 = vadd.f32 %v765_v19, %v764_v40  ;;  %v776_v51 = vmul.f32 %v2155_v44, %v1639_v20  ;;  %v777_v0 = vmul.f32 %v2164_v4, %v1645_v22 }
  0xf8   : >> { %v769_v13 = vadd.f32 %v767_v37, %v766_v23  ;;  %v778_v8 = vmul.f32 %v2167_v3, %v1656_v27  ;;  %v779_v33 = vmul.f32 %v756_v41, %v1659_v28  ;;  %v780_v17 = vmul.f32 %v758_v9, %v1673_v34 }
  0xf9   : >> { %v781_v63 = vmul.f32 %v760_v2, %v1686_v43  ;;  %v782_v18 = vmul.f32 %v762_v7, %v1701_v56  ;;  %v783_v57 = vadd.f32 %v775_v15, %v774_v24  ;;  %v784_v50 = vadd.f32 %v777_v0, %v776_v51  ;;  %v1310_v24 = vld [vmem:[%s1612_s19 + $0x30] sm:$0xff]  ;;  %v1312_v0 = vld [vmem:[%s1612_s19 + $0x48] sm:$0xff] }
  0xfa   : >> { %v770_v32 = vadd.f32 %v769_v13, %v768_v52  ;;  %v785_v12 = vadd.f32 %v779_v33, %v778_v8  ;;  %v792_v20 = vmul.f32 %v2149_v59, %v1642_v21  ;;  %v793_v47 = vmul.f32 %v2152_v53, %v1645_v22 }
  0xfb   : >> { %v786_v38 = vadd.f32 %v781_v63, %v780_v17  ;;  %v787_v49 = vadd.f32 %v784_v50, %v783_v57  ;;  %v794_v28 = vmul.f32 %v2155_v44, %v1656_v27  ;;  %v795_v16 = vmul.f32 %v2164_v4, %v1662_v29 }
  0xfc   : >> { %v771_v39 = vadd.f32 %v770_v32, %v763_v46  ;;  %v796_v10 = vmul.f32 %v2167_v3, %v1673_v34  ;;  %v797_v21 = vmul.f32 %v756_v41, %v1686_v43  ;;  %v798_v48 = vmul.f32 %v758_v9, %v1709_v61  ;;  %v1309_v46 = vld [vmem:[%s1612_s19 + $0x28] sm:$0xff]  ;;  %v1311_v61 = vld [vmem:[%s1612_s19 + $0x38] sm:$0xff]  ;;  %s2583_s19 = sld [smem:[#allocation60_spill]] }
  0xfd   : >> { %v788_v22 = vadd.f32 %v786_v38, %v785_v12  ;;  %v799_v11 = vmul.f32 %v760_v2, %v1712_v62  ;;  %v800_v40 = vmul.f32 %v762_v7, %v2569_v60  ;;  %v801_v27 = vadd.f32 %v793_v47, %v792_v20 }
  0xfe   : >> { %v773_v5 = vadd.f32 %v2185_v6, %v771_v39  ;;  %v802_v29 = vadd.f32 %v795_v16, %v794_v28  ;;  %v803_v19 = vadd.f32 %v797_v21, %v796_v10  ;;  %v810_v23 = vmul.f32 %v1309_v46, %v2149_v59 }
  0xff   : >> { %v789_v34 = vadd.f32 %v788_v22, %v787_v49  ;;  %v804_v37 = vadd.f32 %v799_v11, %v798_v48  ;;  %v811_v15 = vmul.f32 %v1310_v24, %v2152_v53  ;;  %v812_v52 = vmul.f32 %v1311_v61, %v2155_v44 }
 0x100   : >> { %v805_v51 = vadd.f32 %v802_v29, %v801_v27  ;;  %v813_v13 = vmul.f32 %v1312_v0, %v2164_v4  ;;  %v814_v8 = vmul.f32 %v2167_v3, %v1686_v43  ;;  %v815_v33 = vmul.f32 %v756_v41, %v1701_v56 }
 0x101   : >> { %v790_v17 = vadd.f32 %v789_v34, %v782_v18  ;;  %v806_v63 = vadd.f32 %v804_v37, %v803_v19  ;;  %v816_v59 = vmul.f32 %v758_v9, %v1712_v62  ;;  %v817_v57 = vmul.f32 %v760_v2, %v2569_v60 }
 0x102   : >> { %v818_v53 = vmul.f32 %v762_v7, %v2573_v1  ;;  %v819_v50 = vadd.f32 %v811_v15, %v810_v23  ;;  %v820_v44 = vadd.f32 %v813_v13, %v812_v52  ;;  %v821_v32 = vadd.f32 %v815_v33, %v814_v8 }
 0x103   : >> { %v791_v4 = vadd.f32 %v790_v17, %v2185_v6  ;;  %v807_v43 = vadd.f32 %v806_v63, %v805_v51  ;;  %v822_v3 = vadd.f32 %v817_v57, %v816_v59  ;;  %v828_v56 = vmax.f32 %v2133_v25, 0.0 }
 0x104   : >> { %v823_v41 = vadd.f32 %v820_v44, %v819_v50  ;;  %v829_v62 = vmax.f32 %v2146_v36, 0.0  ;;  %v830_v60 = vmax.f32 %v2170_v30, 0.0  ;;  %v831_v9 = vmax.f32 %v745_v26, 0.0 }
 0x105   : >> { %v808_v1 = vadd.f32 %v807_v43, %v800_v40  ;;  %v824_v2 = vadd.f32 %v822_v3, %v821_v32  ;;  %v832_v7 = vmax.f32 %v773_v5, 0.0  ;;  %v833_v18 = vmax.f32 %v791_v4, 0.0 }
 0x106   : >> { %v836_v12 = vstv %s2581_s8  ;;  %v838_v20 = vstv %s2582_s10  ;;  %v841_v47 = vstv %s2583_s19  ;;  %v855_v38 = vstv %s2584_s11  ;;  %s2594_s8 = sld [smem:[#allocation64_spill]]  ;;  %s2596_s10 = sld [smem:[#allocation65_spill]] }
 0x107   : >> { %v809_v49 = vadd.f32 %v808_v1, %v2185_v6  ;;  %v825_v28 = vadd.f32 %v824_v2, %v823_v41  ;;  %v837_v25 = vmul.f32 %v836_v12, %v828_v56  ;;  %v839_v16 = vmul.f32 %v838_v20, %v832_v7  ;;  %s2597_s19 = sld [smem:[#allocation69_spill]]  ;;  %s2598_s11 = sld [smem:[#allocation66_spill]] }
 0x108   : >> { %v843_v39 = vmul.f32 %v836_v12, %v829_v62  ;;  %v844_v36 = vmul.f32 %v838_v20, %v833_v18  ;;  %v847_v10 = vmul.f32 %v836_v12, %v830_v60  ;;  %v851_v30 = vmul.f32 %v836_v12, %v831_v9 }
 0x109   : >> { %v826_v26 = vadd.f32 %v825_v28, %v818_v53  ;;  %v834_v21 = vmax.f32 %v809_v49, 0.0  ;;  %v840_v48 = vadd.f32 %v839_v16, %v837_v25  ;;  %v856_v22 = vmul.f32 %v855_v38, %v828_v56 }
 0x10a   : >> { %v845_v11 = vadd.f32 %v844_v36, %v843_v39  ;;  %v857_v40 = vstv %s2585_s12  ;;  %v860_v27 = vstv %s2586_s13  ;;  %v862_v5 = vmul.f32 %v855_v38, %v829_v62  ;;  %s2599_s12 = sld [smem:[#allocation67_spill]]  ;;  %s2600_s13 = sld [smem:[#allocation68_spill]] }
 0x10b   : >> { %v827_v29 = vadd.f32 %v826_v26, %v2185_v6  ;;  %v2243_v19 = vadd.f32 %v841_v47, %v840_v48  ;;  %v848_v46 = vmul.f32 %v838_v20, %v834_v21  ;;  %v858_v23 = vmul.f32 %v857_v40, %v832_v7  ;;  %v2593_v26 = vld [vmem:[#allocation75_spill] sm:$0xff] }
 0x10c   : >> { %v2245_v34 = vadd.f32 %v845_v11, %v841_v47  ;;  %v863_v37 = vmul.f32 %v857_v40, %v833_v18  ;;  %v866_v24 = vmul.f32 %v855_v38, %v830_v60  ;;  %v867_v15 = vmul.f32 %v857_v40, %v834_v21 }
 0x10d   : >> { %v835_v61 = vmax.f32 %v827_v29, 0.0  ;;  %v849_v52 = vadd.f32 %v848_v46, %v847_v10  ;;  %v859_v51 = vadd.f32 %v858_v23, %v856_v22  ;;  %v870_v0 = vmul.f32 %v855_v38, %v831_v9 }
 0x10e   : >> { %v864_v13 = vadd.f32 %v863_v37, %v862_v5  ;;  %v868_v8 = vadd.f32 %v867_v15, %v866_v24  ;;  %v874_v33 = vstv %s2587_s3  ;;  %v876_v17 = vstv %s2588_s2  ;;  %s2601_s3 = sld [smem:[#allocation70_spill]]  ;;  %s988_s2 = smul.u32 48, %s1346_s9 }
 0x10f   : >> { %v2249_v63 = vadd.f32 %v849_v52, %v841_v47  ;;  %v852_v6 = vmul.f32 %v838_v20, %v835_v61  ;;  %v2251_v59 = vadd.f32 %v860_v27, %v859_v51  ;;  %v871_v57 = vmul.f32 %v857_v40, %v835_v61  ;;  %s254_s9 = sadd.s32 1, %s1346_s9  }
 0x110   : >> { %v2253_v53 = vadd.f32 %v864_v13, %v860_v27  ;;  %v2255_v50 = vadd.f32 %v868_v8, %v860_v27  ;;  %v875_v44 = vmul.f32 %v874_v33, %v828_v56  ;;  %v877_v32 = vmul.f32 %v876_v17, %v832_v7  ;;  %v2590_v56 = vld [vmem:[#allocation73_spill] sm:$0xff]  ;;  %p251_p1 = scmp.ge.s32.totalorder %s254_s9, 2  }
 0x111   : >> { %v853_v4 = vadd.f32 %v852_v6, %v851_v30  ;;  %v872_v43 = vadd.f32 %v871_v57, %v870_v0  ;;  %v879_v3 = vstv %s2589_s6  ;;  %v881_v41 = vmul.f32 %v874_v33, %v829_v62  ;;  %v2592_v30 = vld [vmem:[#allocation74_spill] sm:$0xff]  ;;  %s2602_s6 = sld [smem:[#allocation7_spill]] }
 0x112   : >> { %v878_v1 = vadd.f32 %v877_v32, %v875_v44  ;;  %v882_v2 = vmul.f32 %v876_v17, %v833_v18  ;;  %v885_v12 = vmul.f32 %v874_v33, %v830_v60  ;;  %v886_v38 = vmul.f32 %v876_v17, %v834_v21  ;;  %v2595_v18 = vld [vmem:[#allocation76_spill] sm:$0xff] }
 0x113   : >> { %v2258_v49 = vadd.f32 %v853_v4, %v841_v47  ;;  %v2260_v20 = vadd.f32 %v872_v43, %v860_v27  ;;  %v889_v28 = vmul.f32 %v874_v33, %v831_v9  ;;  %v890_v25 = vmul.f32 %v876_v17, %v835_v61 }
 0x114   : >> { %v2262_v16 = vadd.f32 %v879_v3, %v878_v1  ;;  %v883_v39 = vadd.f32 %v882_v2, %v881_v41  ;;  %v887_v36 = vadd.f32 %v886_v38, %v885_v12  ;;  %v893_v7 = vmax.f32 %v2590_v56, 0.0 }
 0x115   : >> { %v891_v10 = vadd.f32 %v890_v25, %v889_v28  ;;  %v894_v62 = vmax.f32 %v2592_v30, 0.0  ;;  %v895_v60 = vmax.f32 %v2593_v26, 0.0  ;;  %v896_v47 = vmax.f32 %v2595_v18, 0.0 }
 0x116   : >> { %v2268_v21 = vadd.f32 %v883_v39, %v879_v3  ;;  %v2270_v9 = vadd.f32 %v887_v36, %v879_v3  ;;  %v897_v48 = vmax.f32 %v2013_v42, 0.0  ;;  %v898_v22 = vmax.f32 %v2024_v14, 0.0 }
 0x117   : >> { %v2274_v11 = vadd.f32 %v891_v10, %v879_v3  ;;  %v899_v40 = vmax.f32 %v2035_v58, 0.0  ;;  %v900_v27 = vmax.f32 %v2051_v45, 0.0  ;;  %v901_v5 = vmax.f32 %v2067_v31, 0.0 }
 0x118   : >> { %v902_v29 = vmax.f32 %v2078_v55, 0.0  ;;  %v903_v46 = vmax.f32 %v2092_v54, 0.0  ;;  %v904_v23 = vmax.f32 %v2106_v35, 0.0  ;;  %v2283_v37 = vstv %s2591_s7  ;;  %s2383_s7 = scalar_lea.vmem %s2602_s6, %s988_s2 }
 0x119   : >> { %v906_v42 = vmul.f32 %v2283_v37, %v893_v7  ;;  %v2287_v24 = vstv %s2594_s8  ;;  %v2290_v14 = vstv %s2596_s10  ;;  %v2293_v58 = vstv %s2597_s19 }
 0x11a   : >> { %v908_v45 = vmul.f32 %v2287_v24, %v897_v48  ;;  %v910_v31 = vmul.f32 %v2290_v14, %v901_v5  ;;  %v915_v55 = vmul.f32 %v2283_v37, %v894_v62  ;;  %v916_v54 = vmul.f32 %v2287_v24, %v898_v22 }
 0x11b   : >> { %v917_v35 = vmul.f32 %v2290_v14, %v902_v29  ;;  %v921_v15 = vmul.f32 %v2283_v37, %v895_v60  ;;  %v922_v61 = vmul.f32 %v2287_v24, %v899_v40  ;;  %v923_v52 = vmul.f32 %v2290_v14, %v903_v46 }
 0x11c   : >> { %v911_v51 = vadd.f32 %v908_v45, %v906_v42  ;;  %v918_v0 = vadd.f32 %v916_v54, %v915_v55  ;;  %v927_v13 = vmul.f32 %v2283_v37, %v896_v47  ;;  %v928_v8 = vmul.f32 %v2287_v24, %v900_v27 }
 0x11d   : >> { %v924_v33 = vadd.f32 %v922_v61, %v921_v15  ;;  %v929_v17 = vmul.f32 %v2290_v14, %v904_v23  ;;  %v2307_v6 = vstv %s2598_s11  ;;  %v2310_v57 = vstv %s2599_s12 }
 0x11e   : >> { %v912_v44 = vadd.f32 %v911_v51, %v910_v31  ;;  %v919_v32 = vadd.f32 %v918_v0, %v917_v35  ;;  %v930_v4 = vadd.f32 %v928_v8, %v927_v13  ;;  %v934_v43 = vmul.f32 %v2307_v6, %v893_v7 }
 0x11f   : >> { %v925_v3 = vadd.f32 %v924_v33, %v923_v52  ;;  %v936_v41 = vmul.f32 %v2310_v57, %v897_v48  ;;  %v2315_v1 = vstv %s2600_s13  ;;  %v2318_v2 = vstv %s1549_s5 }
 0x120   : >> { %v914_v12 = vadd.f32 %v2293_v58, %v912_v44  ;;  %v920_v38 = vadd.f32 %v919_v32, %v2293_v58  ;;  %v931_v28 = vadd.f32 %v930_v4, %v929_v17  ;;  %v938_v25 = vmul.f32 %v2315_v1, %v901_v5 }
 0x121   : >> { %v926_v39 = vadd.f32 %v925_v3, %v2293_v58  ;;  %v939_v36 = vadd.f32 %v936_v41, %v934_v43  ;;  %v943_v56 = vmul.f32 %v2307_v6, %v894_v62  ;;  %v944_v7 = vmul.f32 %v2310_v57, %v898_v22 }
 0x122   : >> { %v932_v10 = vadd.f32 %v931_v28, %v2293_v58  ;;  %v945_v30 = vmul.f32 %v2315_v1, %v902_v29  ;;  %v949_v26 = vmul.f32 %v2307_v6, %v895_v60  ;;  %v950_v18 = vmul.f32 %v2310_v57, %v899_v40 }
 0x123   : >> { %v940_v48 = vadd.f32 %v939_v36, %v938_v25  ;;  %v946_v5 = vadd.f32 %v944_v7, %v943_v56  ;;  %v951_v42 = vmul.f32 %v2315_v1, %v903_v46  ;;  %v955_v62 = vmul.f32 %v2307_v6, %v896_v47 }
 0x124   : >> { %v952_v22 = vadd.f32 %v950_v18, %v949_v26  ;;  %v956_v45 = vmul.f32 %v2310_v57, %v900_v27  ;;  %v957_v31 = vmul.f32 %v2315_v1, %v904_v23  ;;  %v961_v29 = vmax.f32 %v914_v12, %v920_v38 }
 0x125   : >> { %v942_v60 = vadd.f32 %v2318_v2, %v940_v48  ;;  %v947_v40 = vadd.f32 %v946_v5, %v945_v30  ;;  %v962_v55 = vmax.f32 %v926_v39, %v932_v10  ;;  %v967_v54 = vstv %s1551_s25 }
 0x126   : >> { %v953_v46 = vadd.f32 %v952_v22, %v951_v42  ;;  %v958_v35 = vadd.f32 %v956_v45, %v955_v62  ;;  %v969_v47 = vstv %s1553_s26  ;;  %v972_v15 = vstv %s1563_s0 }
 0x127   : >> { %v948_v27 = vadd.f32 %v947_v40, %v2318_v2  ;;  %v963_v23 = vmax.f32 %v961_v29, %v962_v55  ;;  %v974_v61 = vstv %s1555_s27  ;;  %v976_v52 = vstv %s1557_s28 }
 0x128   : >> { %v954_v51 = vadd.f32 %v953_v46, %v2318_v2  ;;  %v959_v0 = vadd.f32 %v958_v35, %v957_v31  ;;  %v979_v13 = vstv %s1565_s1  ;;  %v981_v8 = vstv %s1559_s18 }
 0x129   : >> { %v964_v33 = vmax.f32 %v942_v60, %v948_v27  ;;  %v968_v17 = vmul.f32 %v967_v54, %v963_v23  ;;  %v975_v44 = vmul.f32 %v974_v61, %v963_v23  ;;  %v982_v32 = vmul.f32 %v981_v8, %v963_v23 }
 0x12a   : >> { %v960_v4 = vadd.f32 %v959_v0, %v2318_v2  ;;  %v983_v43 = vstv %s1561_s4  ;;  %v986_v3 = vstv %s2601_s3  ;;  %v997_v41 = vmax.f32 %v2243_v19, 0.0 }
 0x12b   : >> { %v998_v12 = vmax.f32 %v2245_v34, 0.0  ;;  %v999_v38 = vmax.f32 %v2249_v63, 0.0  ;;  %v1000_v28 = vmax.f32 %v2258_v49, 0.0  ;;  %v1001_v25 = vmax.f32 %v2251_v59, 0.0 }
 0x12c   : >> { %v965_v39 = vmax.f32 %v954_v51, %v960_v4  ;;  %v1002_v36 = vmax.f32 %v2253_v53, 0.0  ;;  %v1003_v56 = vmax.f32 %v2255_v50, 0.0  ;;  %v1004_v7 = vmax.f32 %v2260_v20, 0.0 }
 0x12d   : >> { %v1005_v19 = vmax.f32 %v2262_v16, 0.0  ;;  %v1006_v34 = vmax.f32 %v2268_v21, 0.0  ;;  %v1007_v63 = vmax.f32 %v2270_v9, 0.0  ;;  %v1008_v49 = vmax.f32 %v2274_v11, 0.0 }
 0x12e   : >> { %v966_v10 = vmax.f32 %v964_v33, %v965_v39  ;;  %v1009_v59 = vmul.f32 %v997_v41, %v2283_v37  ;;  %v1010_v53 = vmul.f32 %v1001_v25, %v2287_v24  ;;  %v1015_v30 = vmul.f32 %v998_v12, %v2283_v37 }
 0x12f   : >> { %v1011_v50 = vmul.f32 %v1005_v19, %v2290_v14  ;;  %v1016_v20 = vmul.f32 %v1002_v36, %v2287_v24  ;;  %v1017_v16 = vmul.f32 %v1006_v34, %v2290_v14  ;;  %v1021_v21 = vmul.f32 %v999_v38, %v2283_v37 }
 0x130   : >> { %v970_v9 = vmul.f32 %v969_v47, %v966_v10  ;;  %v977_v11 = vmul.f32 %v976_v52, %v966_v10  ;;  %v984_v26 = vmul.f32 %v983_v43, %v966_v10  ;;  %v1012_v18 = vadd.f32 %v1010_v53, %v1009_v59 }
 0x131   : >> { %v1018_v48 = vadd.f32 %v1016_v20, %v1015_v30  ;;  %v1022_v5 = vmul.f32 %v1003_v56, %v2287_v24  ;;  %v1023_v42 = vmul.f32 %v1007_v63, %v2290_v14  ;;  %v1027_v62 = vmul.f32 %v1000_v28, %v2283_v37 }
 0x132   : >> { %v971_v22 = vadd.f32 %v970_v9, %v968_v17  ;;  %v978_v45 = vadd.f32 %v977_v11, %v975_v44  ;;  %v985_v31 = vadd.f32 %v984_v26, %v982_v32  ;;  %v1013_v29 = vadd.f32 %v1012_v18, %v1011_v50 }
 0x133   : >> { %v1019_v60 = vadd.f32 %v1018_v48, %v1017_v16  ;;  %v1024_v40 = vadd.f32 %v1022_v5, %v1021_v21  ;;  %v1028_v55 = vmul.f32 %v1004_v7, %v2287_v24  ;;  %v1029_v46 = vmul.f32 %v1008_v49, %v2290_v14 }
 0x134   : >> { %v973_v35 = vadd.f32 %v972_v15, %v971_v22  ;;  %v980_v27 = vadd.f32 %v979_v13, %v978_v45  ;;  %v987_v37 = vadd.f32 %v986_v3, %v985_v31  ;;  %v1014_v23 = vadd.f32 %v1013_v29, %v2293_v58 }
 0x135   : >> { %v1020_v51 = vadd.f32 %v1019_v60, %v2293_v58  ;;  %v1025_v0 = vadd.f32 %v1024_v40, %v1023_v42  ;;  %v1030_v33 = vadd.f32 %v1028_v55, %v1027_v62  ;;  %v1033_v17 = vmul.f32 %v997_v41, %v2307_v6 }
 0x136   : >> { %990 = vst [vmem:[%s2383_s7] sm:$0xff] %v973_v35  ;;  %1273 = vst [vmem:[%s2383_s7 + $0x8] sm:$0xff] %v980_v27  ;;  %v1034_v24 = vmul.f32 %v1001_v25, %v2310_v57  ;;  %v1035_v14 = vmul.f32 %v1005_v19, %v2315_v1  ;;  %v1039_v44 = vmul.f32 %v998_v12, %v2307_v6 }
 0x137   : >> { %1274 = vst [vmem:[%s2383_s7 + $0x10] sm:$0xff] %v987_v37  ;;  %v1040_v32 = vmul.f32 %v1002_v36, %v2310_v57  ;;  %v1026_v4 = vadd.f32 %v1025_v0, %v2293_v58  ;;  %v1031_v39 = vadd.f32 %v1030_v33, %v1029_v46  ;;  %v1041_v10 = vmul.f32 %v1006_v34, %v2315_v1 }
 0x138   : >> { %v1045_v59 = vmul.f32 %v999_v38, %v2307_v6  ;;  %v1036_v53 = vadd.f32 %v1034_v24, %v1033_v17  ;;  %v1046_v30 = vmul.f32 %v1003_v56, %v2310_v57  ;;  %v1047_v50 = vmul.f32 %v1007_v63, %v2315_v1 }
 0x139   : >> { %v1042_v41 = vadd.f32 %v1040_v32, %v1039_v44  ;;  %v1032_v25 = vadd.f32 %v1031_v39, %v2293_v58  ;;  %v1051_v19 = vmul.f32 %v1000_v28, %v2307_v6  ;;  %v1052_v12 = vmul.f32 %v1004_v7, %v2310_v57 }
 0x13a   : >> { %v1053_v36 = vmul.f32 %v1008_v49, %v2315_v1  ;;  %v1037_v20 = vadd.f32 %v1036_v53, %v1035_v14  ;;  %v1048_v34 = vadd.f32 %v1046_v30, %v1045_v59  ;;  %v1057_v21 = vmax.f32 %v1014_v23, %v1020_v51 }
 0x13b   : >> { %v1043_v16 = vadd.f32 %v1042_v41, %v1041_v10  ;;  %v1054_v38 = vadd.f32 %v1052_v12, %v1051_v19  ;;  %v1058_v56 = vmax.f32 %v1026_v4, %v1032_v25 }
 0x13c   : >> { %v1038_v58 = vadd.f32 %v1037_v20, %v2318_v2  ;;  %v1049_v28 = vadd.f32 %v1048_v34, %v1047_v50 }
 0x13d   : >> { %v1044_v6 = vadd.f32 %v1043_v16, %v2318_v2  ;;  %v1055_v57 = vadd.f32 %v1054_v38, %v1053_v36  ;;  %v1059_v63 = vmax.f32 %v1057_v21, %v1058_v56 }
 0x13e   : >> { %v1050_v1 = vadd.f32 %v1049_v28, %v2318_v2 }
 0x13f   : >> { %v1056_v7 = vadd.f32 %v1055_v57, %v2318_v2  ;;  %v1060_v49 = vmax.f32 %v1038_v58, %v1044_v6  ;;  %v1063_v26 = vmul.f32 %v1059_v63, %v967_v54  ;;  %v1067_v18 = vmul.f32 %v1059_v63, %v974_v61 }
 0x140   : >> { %v1071_v48 = vmul.f32 %v1059_v63, %v981_v8 }
 0x141   : >> { %v1061_v9 = vmax.f32 %v1050_v1, %v1056_v7 }
 0x143   : >> { %v1062_v11 = vmax.f32 %v1060_v49, %v1061_v9 }
 0x145   : >> { %v1064_v5 = vmul.f32 %v1062_v11, %v969_v47  ;;  %v1068_v42 = vmul.f32 %v1062_v11, %v976_v52  ;;  %v1072_v2 = vmul.f32 %v1062_v11, %v983_v43 }
 0x146   : > { %253 = sbr.rel (!%p251_p1) target bundleno = 118 (0x76), region = 77 }
 0x147   : >> { %v1065_v62 = vadd.f32 %v1064_v5, %v1063_v26  ;;  %v1069_v22 = vadd.f32 %v1068_v42, %v1067_v18  ;;  %v1073_v45 = vadd.f32 %v1072_v2, %v1071_v48 }
 0x149   : >> { %v1066_v31 = vadd.f32 %v1065_v62, %v972_v15  ;;  %v1070_v29 = vadd.f32 %v1069_v22, %v979_v13  ;;  %v1074_v60 = vadd.f32 %v1073_v45, %v986_v3 }
 0x14b   : >> { %1275 = vst [vmem:[%s2383_s7 + $0x18] sm:$0xff] %v1066_v31  ;;  %1276 = vst [vmem:[%s2383_s7 + $0x20] sm:$0xff] %v1070_v29 }
 0x14c   : >> { %1277 = vst [vmem:[%s2383_s7 + $0x28] sm:$0xff] %v1074_v60 }
 0x14d PF: > { %s2603_s8 = sld [smem:[#allocation5_spill]] }
 0x153   : > { %s13_s9 = sadd.s32 1, %s2603_s8  }
 0x154   : > { %p10_p2 = scmp.ge.s32.totalorder %s13_s9, 4  }
 0x156   :  { %12 = sbr.rel (!%p10_p2) target bundleno = 5 (0x5), region = 88 }
 0x15d   :  { %1108 = vsyncpa [#allocation3], 1 }
 0x15e   :  { %1110 = vsyncpa [#allocation3 + $0x1], 1 }

</bundles_post_ra>
